<compile_context>
chip_gen: v6e
topology: v6e:2x2x1
jax: 0.10.0
libtpu: 0.0.40
codegen_flags: <defaults>
</compile_context>

<pallas_src>
import jax
import jax.numpy as jnp
from jax import lax
from jax.experimental import pallas as pl
from jax.experimental.pallas import tpu as pltpu


def _round_up(x, m):
    return (x + m - 1) // m * m


def _sig(x):
    # sigmoid(x) = 0.5 * tanh(0.5 * x) + 0.5  -> exactly one EUP op (tanh) per gate,
    # the rest rides the VPU (recurrence is latency/EUP-bound, not throughput-bound).
    return 0.5 * jnp.tanh(0.5 * x) + 0.5


def _expand_gate_cols(w, H, HP):
    """(R, 4H) -> (R, 4*HP): gate g's H columns land at [g*HP, g*HP+H) (128-lane-aligned)."""
    R = w.shape[0]
    out = jnp.zeros((R, 4 * HP), jnp.float32)
    for g in range(4):
        out = out.at[:, g * HP:g * HP + H].set(w[:, g * H:(g + 1) * H].astype(jnp.float32))
    return out


def _vmem_capacity_bytes():
    try:
        return int(pltpu.get_tpu_info().vmem_capacity_bytes)
    except Exception:
        return 64 << 20  # conservative default (v7x per-TensorCore VMEM)


def _vmem_footprint_bytes(ct, BP, D, HP, LABP, seq_itemsize):
    f = 2 * ct * BP * D * seq_itemsize          # seq chunk (double-buffered input)
    f += ct * BP * 4 * HP * 4                   # gx scratch (f32, backward gates only)
    f += 2 * D * 4 * HP * seq_itemsize          # w_bx + w_fx (single-buffered)
    f += 2 * 4 * HP * 4                         # b_bx + b_fx
    f += HP * 4 * HP * 4                        # w_hh (f32)
    f += (2 * HP + 1) * LABP * 4                # w_lf + w_lb + b_lin
    f += 2 * BP * HP * 4                        # h / c scratch
    f += 2 * BP * LABP * 4                      # output block
    return f


def _auto_time_chunk(T, BP, D, HP, LABP, seq_itemsize, budget):
    # Target CT*BP >= 256 rows so the hoisted projection fills a 256-wide MXU (v6e/v7x);
    # 128 rows already saturate v5e, so the VMEM-budget loop below only ever shrinks CT.
    ct = max(8, -(-256 // BP))
    ct = min(ct, _round_up(T, 8), 128)
    ct = _round_up(ct, 8)
    while ct > 8 and _vmem_footprint_bytes(ct, BP, D, HP, LABP, seq_itemsize) > budget:
        ct -= 8
    return max(8, ct)


def re_forward(seq, params, *, time_chunk=None, compute_dtype=jnp.bfloat16):
    """seq: (B, T, D) float. params: natural (unpadded) weights, see make_params.

    compute_dtype: dtype of seq + input-projection weights fed to the MXU (bf16 halves
    HBM/VMEM traffic and ~2x MXU throughput). Gates, state, recurrence weights and the
    output stay f32. Pass jnp.float32 for bit-accurate validation.
    """
    B, T, D = seq.shape
    assert D % 2 == 0, "hidden_size must be even (bidirectional LSTM of width hidden/2)"
    H = D // 2
    lab = params["w_lin"].shape[1]

    HP = _round_up(max(H, 1), 128)      # lane-padded hidden width (one 128-lane block/gate)
    BP = _round_up(B, 8)                # sublane-padded batch
    LABP = _round_up(max(lab, 1), 128)  # lane-dense output width
    f32 = jnp.float32
    cdt = jnp.dtype(compute_dtype)

    phys_vmem = max(_vmem_capacity_bytes(), 48 << 20)
    if time_chunk is not None:
        CT = max(1, min(int(time_chunk), T))
    else:
        CT = _auto_time_chunk(T, BP, D, HP, LABP, cdt.itemsize,
                              min(phys_vmem // 2, 48 << 20))
    n_chunks = -(-T // CT)
    T_pad = n_chunks * CT
    needs_mask = T_pad != T

    fp = _vmem_footprint_bytes(CT, BP, D, HP, LABP, cdt.itemsize)
    vmem_limit = int(max(32 << 20, min(phys_vmem - (2 << 20), 2 * fp + (8 << 20))))

    # ---- layout plumbing (pure JAX, outside the kernel) -----------------------------
    # Single pad+transpose to time-major (T_pad, BP, D). Time REVERSAL happens in the
    # kernel (grid index_map + row addressing) -> no reversed HBM copy of the sequence.
    seq_tm = jnp.zeros((T_pad, BP, D), cdt).at[:T, :B].set(
        jnp.swapaxes(seq, 0, 1).astype(cdt))
    seq_flat = seq_tm.reshape(T_pad * BP, D)

    # Backward-direction input projection (the only per-chunk projection needed).
    w_bx = _expand_gate_cols(params["w_ih_b"], H, HP).astype(cdt)   # (D, 4*HP)
    b_bx = _expand_gate_cols(params["b_b"], H, HP)                  # (1, 4*HP) f32
    # Forward-direction weights: used ONCE on the t=0 rows inside the finalize block.
    w_fx = _expand_gate_cols(params["w_ih_f"], H, HP).astype(cdt)   # (D, 4*HP)
    b_fx = _expand_gate_cols(params["b_f"], H, HP)                  # (1, 4*HP) f32
    # Hidden->gate weights stay f32 (small; avoids per-step casts inside the recurrence).
    w_hh_b = jnp.zeros((HP, 4 * HP), f32).at[:H].set(
        _expand_gate_cols(params["w_hh_b"], H, HP))
    w_lin = params["w_lin"].astype(f32)
    w_lf = jnp.zeros((HP, LABP), f32).at[:H, :lab].set(w_lin[:H])
    w_lb = jnp.zeros((HP, LABP), f32).at[:H, :lab].set(w_lin[H:])
    b_lin = jnp.zeros((1, LABP), f32).at[:, :lab].set(params["b_lin"].astype(f32))

    # Keep live gate tiles under the 64-vreg ceiling when HP is large.
    unroll = min(CT, 8 if HP < 512 else 4)

    # TODO(synk): for H <= 32 pack all 4 gates into one 128-lane block (lane masks /
    # pltpu.roll in the step) instead of one 128-lane block per gate.
    def kernel(seq_ref, w_bx_ref, b_bx_ref, w_fx_ref, b_fx_ref, w_hh_ref,
               w_lf_ref, w_lb_ref, b_lin_ref, out_ref, gx_ref, h_ref, c_ref):
        g_idx = pl.program_id(0)

        @pl.when(g_idx == 0)
        def _init():
            h_ref[...] = jnp.zeros_like(h_ref)
            c_ref[...] = jnp.zeros_like(c_ref)

        # Hoisted BACKWARD-direction input projection for the whole chunk:
        # one lane-dense MXU matmul per chunk, bias folded in.
        gx_ref[...] = (jnp.dot(seq_ref[...], w_bx_ref[...],
                               preferred_element_type=jnp.float32) + b_bx_ref[...])

        # TODO(synk): hold w_hh in MXU weight registers across steps via
        # pltpu.matmul_push_rhs / matmul_acc_lhs instead of re-pushing it per jnp.dot.
        whh = w_hh_ref[...]
        chunk_t0 = (n_chunks - 1 - g_idx) * CT   # original timestep of this chunk's row 0

        def step(s, carry):
            h, c = carry
            lt = CT - 1 - s                      # walk the chunk back-to-front (reverse LSTM)
            row = pl.multiple_of(lt * BP, 8)
            gates = gx_ref[pl.ds(row, BP), :] + jnp.dot(
                h, whh, preferred_element_type=jnp.float32)
            i = _sig(gates[:, 0 * HP:1 * HP])    # 128-lane-aligned gate slices
            f = _sig(gates[:, 1 * HP:2 * HP])
            gc = jnp.tanh(gates[:, 2 * HP:3 * HP])
            o = _sig(gates[:, 3 * HP:4 * HP])
            c_new = f * c + i * gc
            h_new = o * jnp.tanh(c_new)
            if needs_mask:                       # static flag: only when T % CT != 0
                valid = (chunk_t0 + lt) < T      # skip padded timesteps (t >= T)
                h_new = jnp.where(valid, h_new, h)
                c_new = jnp.where(valid, c_new, c)
            return h_new, c_new

        h, c = lax.fori_loop(0, CT, step, (h_ref[...], c_ref[...]), unroll=unroll)
        h_ref[...] = h
        c_ref[...] = c

        @pl.when(g_idx == pl.num_programs(0) - 1)
        def _finalize():
            # Forward-direction LSTM cell at t=0 from zero state: c1 = i*g, h1 = o*tanh(i*g).
            # One tiny (BP, D) @ (D, 4*HP) matmul on the already-resident t=0 rows.
            gf = (jnp.dot(seq_ref[0:BP, :], w_fx_ref[...],
                          preferred_element_type=jnp.float32) + b_fx_ref[...])
            i = _sig(gf[:, 0 * HP:1 * HP])
            gc = jnp.tanh(gf[:, 2 * HP:3 * HP])
            o = _sig(gf[:, 3 * HP:4 * HP])
            h_fwd = o * jnp.tanh(i * gc)
            out_ref[...] = (
                jnp.dot(h_fwd, w_lf_ref[...], preferred_element_type=jnp.float32)
                + jnp.dot(h, w_lb_ref[...], preferred_element_type=jnp.float32)
                + b_lin_ref[...])

    def build(single_buffer_weights):
        def wspec(shape):
            idx = lambda g: (0,) * len(shape)
            if single_buffer_weights:
                # Constant-index weights are fetched once -> 1 VMEM buffer instead of 2.
                return pl.BlockSpec(shape, idx, pipeline_mode=pl.Buffered(1))
            return pl.BlockSpec(shape, idx)

        grid_spec = pltpu.PrefetchScalarGridSpec(
            num_scalar_prefetch=0,
            grid=(n_chunks,),
            in_specs=[
                # Streamed seq chunks; index_map walks chunks in REVERSE time order.
                pl.BlockSpec((CT * BP, D), lambda g: (n_chunks - 1 - g, 0)),
                wspec((D, 4 * HP)), wspec((1, 4 * HP)),
                wspec((D, 4 * HP)), wspec((1, 4 * HP)),
                wspec((HP, 4 * HP)),
                wspec((HP, LABP)), wspec((HP, LABP)), wspec((1, LABP)),
            ],
            out_specs=pl.BlockSpec((BP, LABP), lambda g: (0, 0)),
            scratch_shapes=[
                pltpu.VMEM((CT * BP, 4 * HP), f32),   # hoisted backward gate pre-activations
                pltpu.VMEM((BP, HP), f32),            # carried h (backward direction)
                pltpu.VMEM((BP, HP), f32),            # carried c
            ],
        )
        return pl.pallas_call(
            kernel,
            out_shape=jax.ShapeDtypeStruct((BP, LABP), f32),
            grid_spec=grid_spec,
            compiler_params=pltpu.CompilerParams(
                dimension_semantics=("arbitrary",),   # serial recurrence over time chunks
                vmem_limit_bytes=vmem_limit,
            ),
        )

    args = (seq_flat, w_bx, b_bx, w_fx, b_fx, w_hh_b, w_lf, w_lb, b_lin)
    try:
        out = jax.block_until_ready(build(True)(*args))
    except Exception:
        # pl.Buffered(1) not accepted by this jax build: fall back to default buffering.
        out = jax.block_until_ready(build(False)(*args))
    return out[:B, :lab]


def make_params(key, hidden_size, lab):
    """Natural (PyTorch-equivalent) parameters, pre-transposed to (in, out) layout."""
    assert hidden_size % 2 == 0
    H = hidden_size // 2
    D = hidden_size
    ks = jax.random.split(key, 10)
    bound = 1.0 / jnp.sqrt(H)

    def u(k, shape):
        return jax.random.uniform(k, shape, jnp.float32, -bound, bound)

    return {
        "w_ih_f": u(ks[0], (D, 4 * H)),
        "w_hh_f": u(ks[1], (H, 4 * H)),
        "b_f": u(ks[2], (1, 4 * H)) + u(ks[3], (1, 4 * H)),   # bias_ih + bias_hh
        "w_ih_b": u(ks[4], (D, 4 * H)),
        "w_hh_b": u(ks[5], (H, 4 * H)),
        "b_b": u(ks[6], (1, 4 * H)) + u(ks[7], (1, 4 * H)),
        "w_lin": jax.random.uniform(ks[8], (D, lab), jnp.float32,
                                    -1.0 / jnp.sqrt(D), 1.0 / jnp.sqrt(D)),
        "b_lin": jax.random.uniform(ks[9], (1, lab), jnp.float32,
                                    -1.0 / jnp.sqrt(D), 1.0 / jnp.sqrt(D)),
    }


def re_reference(seq, params):
    """Pure-JAX reference with identical math to the PyTorch module (for validation)."""
    B, T, D = seq.shape
    H = D // 2

    def step(x, h, c, w_ih, w_hh, b):
        gates = x @ w_ih + h @ w_hh + b
        i = jax.nn.sigmoid(gates[:, 0 * H:1 * H])
        f = jax.nn.sigmoid(gates[:, 1 * H:2 * H])
        g = jnp.tanh(gates[:, 2 * H:3 * H])
        o = jax.nn.sigmoid(gates[:, 3 * H:4 * H])
        c = f * c + i * g
        return o * jnp.tanh(c), c

    z = jnp.zeros((B, H), jnp.float32)
    h_f, _ = step(seq[:, 0, :], z, z, params["w_ih_f"], params["w_hh_f"], params["b_f"])
    h_b, c_b = z, z
    for t in range(T - 1, -1, -1):
        h_b, c_b = step(seq[:, t, :], h_b, c_b,
                        params["w_ih_b"], params["w_hh_b"], params["b_b"])
    h0 = jnp.concatenate([h_f, h_b], axis=-1)
    return h0 @ params["w_lin"] + params["b_lin"]


if __name__ == "__main__":
    B, T, hidden_size, lab = 2, 8, 32, 5

    key = jax.random.PRNGKey(0)
    k_seq, k_par = jax.random.split(key)
    seq = jax.random.normal(k_seq, (B, T, hidden_size), dtype=jnp.float32)
    params = make_params(k_par, hidden_size, lab)
    ref = re_reference(seq, params)

    # f32, forced 2 time-chunks: exercises streamed chunks, carried h/c scratch,
    # reverse-order index_map and the pl.when init/finalize paths (tight tolerance).
    out = jax.block_until_ready(
        re_forward(seq, params, time_chunk=4, compute_dtype=jnp.float32))
    assert out.shape == (B, lab)
    assert jnp.allclose(out, ref, atol=1e-4, rtol=1e-4), (
        "f32 multi-chunk mismatch (max abs err = %g)"
        % float(jnp.max(jnp.abs(out - ref))))

    # f32, CT=3 so T % CT != 0: exercises the padded-timestep masking path.
    out = jax.block_until_ready(
        re_forward(seq, params, time_chunk=3, compute_dtype=jnp.float32))
    assert jnp.allclose(out, ref, atol=1e-4, rtol=1e-4), (
        "f32 ragged-chunk mismatch (max abs err = %g)"
        % float(jnp.max(jnp.abs(out - ref))))

    # Default path: auto (MXU/VMEM-budgeted) chunking + bf16 seq/input-projection weights.
    out = jax.block_until_ready(re_forward(seq, params))
    assert jnp.allclose(out, ref, atol=3e-2, rtol=3e-2), (
        "bf16 mismatch (max abs err = %g)" % float(jnp.max(jnp.abs(out - ref))))

    print("KERNEL_OK")
</pallas_src>

<mosaic_0001>
module attributes {stable_mosaic.version = 11 : i64} {
  func.func @kernel(%arg0: i32, %arg1: memref<32x32xf32, #tpu.memory_space<vmem>>, %arg2: memref<32x512xf32, #tpu.memory_space<vmem>>, %arg3: memref<1x512xf32, #tpu.memory_space<vmem>>, %arg4: memref<32x512xf32, #tpu.memory_space<vmem>>, %arg5: memref<1x512xf32, #tpu.memory_space<vmem>>, %arg6: memref<128x512xf32, #tpu.memory_space<vmem>>, %arg7: memref<128x128xf32, #tpu.memory_space<vmem>>, %arg8: memref<128x128xf32, #tpu.memory_space<vmem>>, %arg9: memref<1x128xf32, #tpu.memory_space<vmem>>, %arg10: memref<8x128xf32, #tpu.memory_space<vmem>>, %arg11: memref<32x512xf32, #tpu.memory_space<vmem>>, %arg12: memref<8x128xf32, #tpu.memory_space<vmem>>, %arg13: memref<8x128xf32, #tpu.memory_space<vmem>>) attributes {dimension_semantics = [#tpu.dimension_semantics<arbitrary>], iteration_bounds = array<i64: 2>, scalar_prefetch = 0 : i64, scratch_operands = 3 : i64, tpu.core_type = #tpu.core_type<tc>, window_params = [{transform_indices = @transform_0, window_bounds = array<i64: 32, 32>}, {pipeline_mode = #tpu.pipeline_mode<synchronous>, transform_indices = @transform_1, window_bounds = array<i64: 32, 512>}, {pipeline_mode = #tpu.pipeline_mode<synchronous>, transform_indices = @transform_2, window_bounds = array<i64: 1, 512>}, {pipeline_mode = #tpu.pipeline_mode<synchronous>, transform_indices = @transform_3, window_bounds = array<i64: 32, 512>}, {pipeline_mode = #tpu.pipeline_mode<synchronous>, transform_indices = @transform_4, window_bounds = array<i64: 1, 512>}, {pipeline_mode = #tpu.pipeline_mode<synchronous>, transform_indices = @transform_5, window_bounds = array<i64: 128, 512>}, {pipeline_mode = #tpu.pipeline_mode<synchronous>, transform_indices = @transform_6, window_bounds = array<i64: 128, 128>}, {pipeline_mode = #tpu.pipeline_mode<synchronous>, transform_indices = @transform_7, window_bounds = array<i64: 128, 128>}, {pipeline_mode = #tpu.pipeline_mode<synchronous>, transform_indices = @transform_8, window_bounds = array<i64: 1, 128>}, {pipeline_mode = #tpu.pipeline_mode<synchronous>, transform_indices = @transform_9, window_bounds = array<i64: 8, 128>}]} {
    %c0_i32 = arith.constant 0 : i32
    %0 = arith.cmpi eq, %arg0, %c0_i32 : i32
    %1 = arith.extui %0 : i1 to i32
    %c0_i32_0 = arith.constant 0 : i32
    %2 = arith.cmpi ne, %1, %c0_i32_0 : i32
    scf.if %2 {
      %cst_72 = arith.constant 0.000000e+00 : f32
      %170 = vector.broadcast %cst_72 : f32 to vector<8x128xf32>
      %c0_73 = arith.constant 0 : index
      %c0_74 = arith.constant 0 : index
      %171 = vector.load %arg12[%c0_73, %c0_74] : memref<8x128xf32, #tpu.memory_space<vmem>>, vector<8x128xf32>
      tpu.vector_store %arg12[%c0_73, %c0_74], %170 {strides = array<i32>} : memref<8x128xf32, #tpu.memory_space<vmem>>, vector<8x128xf32>,
      %cst_75 = arith.constant 0.000000e+00 : f32
      %172 = vector.broadcast %cst_75 : f32 to vector<8x128xf32>
      %c0_76 = arith.constant 0 : index
      %c0_77 = arith.constant 0 : index
      %173 = vector.load %arg13[%c0_76, %c0_77] : memref<8x128xf32, #tpu.memory_space<vmem>>, vector<8x128xf32>
      tpu.vector_store %arg13[%c0_76, %c0_77], %172 {strides = array<i32>} : memref<8x128xf32, #tpu.memory_space<vmem>>, vector<8x128xf32>,
    } else {
    }
    %c0 = arith.constant 0 : index
    %c0_1 = arith.constant 0 : index
    %3 = vector.load %arg1[%c0, %c0_1] : memref<32x32xf32, #tpu.memory_space<vmem>>, vector<32x32xf32>
    %c0_2 = arith.constant 0 : index
    %c0_3 = arith.constant 0 : index
    %4 = vector.load %arg2[%c0_2, %c0_3] : memref<32x512xf32, #tpu.memory_space<vmem>>, vector<32x512xf32>
    %cst = arith.constant dense<0.000000e+00> : vector<32x512xf32>
    %5 = tpu.matmul %3, %4, %cst {dimension_numbers = #tpu.dot_dimension_numbers<[1], [0], [0], [1], [0, 0, 1, 1], [], []>} : vector<32x32xf32>, vector<32x512xf32>, vector<32x512xf32> -> vector<32x512xf32>
    %c0_4 = arith.constant 0 : index
    %c0_5 = arith.constant 0 : index
    %6 = vector.load %arg3[%c0_4, %c0_5] : memref<1x512xf32, #tpu.memory_space<vmem>>, vector<1x512xf32>
    %7 = vector.broadcast %6 : vector<1x512xf32> to vector<32x512xf32>
    %8 = arith.addf %5, %7 : vector<32x512xf32>
    %c0_6 = arith.constant 0 : index
    %c0_7 = arith.constant 0 : index
    %9 = vector.load %arg11[%c0_6, %c0_7] : memref<32x512xf32, #tpu.memory_space<vmem>>, vector<32x512xf32>
    tpu.vector_store %arg11[%c0_6, %c0_7], %8 {strides = array<i32>} : memref<32x512xf32, #tpu.memory_space<vmem>>, vector<32x512xf32>,
    %c0_8 = arith.constant 0 : index
    %c0_9 = arith.constant 0 : index
    %10 = vector.load %arg6[%c0_8, %c0_9] : memref<128x512xf32, #tpu.memory_space<vmem>>, vector<128x512xf32>
    %c0_10 = arith.constant 0 : index
    %c0_11 = arith.constant 0 : index
    %11 = vector.load %arg12[%c0_10, %c0_11] : memref<8x128xf32, #tpu.memory_space<vmem>>, vector<8x128xf32>
    %c0_12 = arith.constant 0 : index
    %c0_13 = arith.constant 0 : index
    %12 = vector.load %arg13[%c0_12, %c0_13] : memref<8x128xf32, #tpu.memory_space<vmem>>, vector<8x128xf32>
    %c0_i32_14 = arith.constant 0 : i32
    %c3_i32 = arith.constant 3 : i32
    %13 = arith.subi %c3_i32, %c0_i32_14 : i32
    %c8_i32 = arith.constant 8 : i32
    %14 = arith.muli %13, %c8_i32 : i32
    %15 = tpu.assume_multiple %14, 8 : i32
    %16 = arith.index_cast %15 : i32 to index
    %c0_15 = arith.constant 0 : index
    %17 = vector.load %arg11[%16, %c0_15] : memref<32x512xf32, #tpu.memory_space<vmem>>, vector<8x512xf32>
    %cst_16 = arith.constant dense<0.000000e+00> : vector<8x512xf32>
    %18 = tpu.matmul %11, %10, %cst_16 {dimension_numbers = #tpu.dot_dimension_numbers<[1], [0], [0], [1], [0, 0, 1, 1], [], []>} : vector<8x128xf32>, vector<128x512xf32>, vector<8x512xf32> -> vector<8x512xf32>
    %19 = arith.addf %17, %18 : vector<8x512xf32>
    %20 = vector.extract_strided_slice %19 {offsets = [0, 0], sizes = [8, 128], strides = [1, 1]} : vector<8x512xf32> to vector<8x128xf32>
    %cst_17 = arith.constant 5.000000e-01 : f32
    %21 = vector.broadcast %cst_17 : f32 to vector<8x128xf32>
    %22 = arith.mulf %21, %20 : vector<8x128xf32>
    %23 = math.tanh %22 : vector<8x128xf32>
    %cst_18 = arith.constant 5.000000e-01 : f32
    %24 = vector.broadcast %cst_18 : f32 to vector<8x128xf32>
    %25 = arith.mulf %24, %23 : vector<8x128xf32>
    %cst_19 = arith.constant 5.000000e-01 : f32
    %26 = vector.broadcast %cst_19 : f32 to vector<8x128xf32>
    %27 = arith.addf %25, %26 : vector<8x128xf32>
    %28 = vector.extract_strided_slice %19 {offsets = [0, 128], sizes = [8, 128], strides = [1, 1]} : vector<8x512xf32> to vector<8x128xf32>
    %cst_20 = arith.constant 5.000000e-01 : f32
    %29 = vector.broadcast %cst_20 : f32 to vector<8x128xf32>
    %30 = arith.mulf %29, %28 : vector<8x128xf32>
    %31 = math.tanh %30 : vector<8x128xf32>
    %cst_21 = arith.constant 5.000000e-01 : f32
    %32 = vector.broadcast %cst_21 : f32 to vector<8x128xf32>
    %33 = arith.mulf %32, %31 : vector<8x128xf32>
    %cst_22 = arith.constant 5.000000e-01 : f32
    %34 = vector.broadcast %cst_22 : f32 to vector<8x128xf32>
    %35 = arith.addf %33, %34 : vector<8x128xf32>
    %36 = vector.extract_strided_slice %19 {offsets = [0, 256], sizes = [8, 128], strides = [1, 1]} : vector<8x512xf32> to vector<8x128xf32>
    %37 = math.tanh %36 : vector<8x128xf32>
    %38 = vector.extract_strided_slice %19 {offsets = [0, 384], sizes = [8, 128], strides = [1, 1]} : vector<8x512xf32> to vector<8x128xf32>
    %cst_23 = arith.constant 5.000000e-01 : f32
    %39 = vector.broadcast %cst_23 : f32 to vector<8x128xf32>
    %40 = arith.mulf %39, %38 : vector<8x128xf32>
    %41 = math.tanh %40 : vector<8x128xf32>
    %cst_24 = arith.constant 5.000000e-01 : f32
    %42 = vector.broadcast %cst_24 : f32 to vector<8x128xf32>
    %43 = arith.mulf %42, %41 : vector<8x128xf32>
    %cst_25 = arith.constant 5.000000e-01 : f32
    %44 = vector.broadcast %cst_25 : f32 to vector<8x128xf32>
    %45 = arith.addf %43, %44 : vector<8x128xf32>
    %46 = arith.mulf %35, %12 : vector<8x128xf32>
    %47 = arith.mulf %27, %37 : vector<8x128xf32>
    %48 = arith.addf %46, %47 : vector<8x128xf32>
    %49 = math.tanh %48 : vector<8x128xf32>
    %50 = arith.mulf %45, %49 : vector<8x128xf32>
    %c1_i32 = arith.constant 1 : i32
    %c3_i32_26 = arith.constant 3 : i32
    %51 = arith.subi %c3_i32_26, %c1_i32 : i32
    %c8_i32_27 = arith.constant 8 : i32
    %52 = arith.muli %51, %c8_i32_27 : i32
    %53 = tpu.assume_multiple %52, 8 : i32
    %54 = arith.index_cast %53 : i32 to index
    %c0_28 = arith.constant 0 : index
    %55 = vector.load %arg11[%54, %c0_28] : memref<32x512xf32, #tpu.memory_space<vmem>>, vector<8x512xf32>
    %cst_29 = arith.constant dense<0.000000e+00> : vector<8x512xf32>
    %56 = tpu.matmul %50, %10, %cst_29 {dimension_numbers = #tpu.dot_dimension_numbers<[1], [0], [0], [1], [0, 0, 1, 1], [], []>} : vector<8x128xf32>, vector<128x512xf32>, vector<8x512xf32> -> vector<8x512xf32>
    %57 = arith.addf %55, %56 : vector<8x512xf32>
    %58 = vector.extract_strided_slice %57 {offsets = [0, 0], sizes = [8, 128], strides = [1, 1]} : vector<8x512xf32> to vector<8x128xf32>
    %cst_30 = arith.constant 5.000000e-01 : f32
    %59 = vector.broadcast %cst_30 : f32 to vector<8x128xf32>
    %60 = arith.mulf %59, %58 : vector<8x128xf32>
    %61 = math.tanh %60 : vector<8x128xf32>
    %cst_31 = arith.constant 5.000000e-01 : f32
    %62 = vector.broadcast %cst_31 : f32 to vector<8x128xf32>
    %63 = arith.mulf %62, %61 : vector<8x128xf32>
    %cst_32 = arith.constant 5.000000e-01 : f32
    %64 = vector.broadcast %cst_32 : f32 to vector<8x128xf32>
    %65 = arith.addf %63, %64 : vector<8x128xf32>
    %66 = vector.extract_strided_slice %57 {offsets = [0, 128], sizes = [8, 128], strides = [1, 1]} : vector<8x512xf32> to vector<8x128xf32>
    %cst_33 = arith.constant 5.000000e-01 : f32
    %67 = vector.broadcast %cst_33 : f32 to vector<8x128xf32>
    %68 = arith.mulf %67, %66 : vector<8x128xf32>
    %69 = math.tanh %68 : vector<8x128xf32>
    %cst_34 = arith.constant 5.000000e-01 : f32
    %70 = vector.broadcast %cst_34 : f32 to vector<8x128xf32>
    %71 = arith.mulf %70, %69 : vector<8x128xf32>
    %cst_35 = arith.constant 5.000000e-01 : f32
    %72 = vector.broadcast %cst_35 : f32 to vector<8x128xf32>
    %73 = arith.addf %71, %72 : vector<8x128xf32>
    %74 = vector.extract_strided_slice %57 {offsets = [0, 256], sizes = [8, 128], strides = [1, 1]} : vector<8x512xf32> to vector<8x128xf32>
    %75 = math.tanh %74 : vector<8x128xf32>
    %76 = vector.extract_strided_slice %57 {offsets = [0, 384], sizes = [8, 128], strides = [1, 1]} : vector<8x512xf32> to vector<8x128xf32>
    %cst_36 = arith.constant 5.000000e-01 : f32
    %77 = vector.broadcast %cst_36 : f32 to vector<8x128xf32>
    %78 = arith.mulf %77, %76 : vector<8x128xf32>
    %79 = math.tanh %78 : vector<8x128xf32>
    %cst_37 = arith.constant 5.000000e-01 : f32
    %80 = vector.broadcast %cst_37 : f32 to vector<8x128xf32>
    %81 = arith.mulf %80, %79 : vector<8x128xf32>
    %cst_38 = arith.constant 5.000000e-01 : f32
    %82 = vector.broadcast %cst_38 : f32 to vector<8x128xf32>
    %83 = arith.addf %81, %82 : vector<8x128xf32>
    %84 = arith.mulf %73, %48 : vector<8x128xf32>
    %85 = arith.mulf %65, %75 : vector<8x128xf32>
    %86 = arith.addf %84, %85 : vector<8x128xf32>
    %87 = math.tanh %86 : vector<8x128xf32>
    %88 = arith.mulf %83, %87 : vector<8x128xf32>
    %c2_i32 = arith.constant 2 : i32
    %c3_i32_39 = arith.constant 3 : i32
    %89 = arith.subi %c3_i32_39, %c2_i32 : i32
    %c8_i32_40 = arith.constant 8 : i32
    %90 = arith.muli %89, %c8_i32_40 : i32
    %91 = tpu.assume_multiple %90, 8 : i32
    %92 = arith.index_cast %91 : i32 to index
    %c0_41 = arith.constant 0 : index
    %93 = vector.load %arg11[%92, %c0_41] : memref<32x512xf32, #tpu.memory_space<vmem>>, vector<8x512xf32>
    %cst_42 = arith.constant dense<0.000000e+00> : vector<8x512xf32>
    %94 = tpu.matmul %88, %10, %cst_42 {dimension_numbers = #tpu.dot_dimension_numbers<[1], [0], [0], [1], [0, 0, 1, 1], [], []>} : vector<8x128xf32>, vector<128x512xf32>, vector<8x512xf32> -> vector<8x512xf32>
    %95 = arith.addf %93, %94 : vector<8x512xf32>
    %96 = vector.extract_strided_slice %95 {offsets = [0, 0], sizes = [8, 128], strides = [1, 1]} : vector<8x512xf32> to vector<8x128xf32>
    %cst_43 = arith.constant 5.000000e-01 : f32
    %97 = vector.broadcast %cst_43 : f32 to vector<8x128xf32>
    %98 = arith.mulf %97, %96 : vector<8x128xf32>
    %99 = math.tanh %98 : vector<8x128xf32>
    %cst_44 = arith.constant 5.000000e-01 : f32
    %100 = vector.broadcast %cst_44 : f32 to vector<8x128xf32>
    %101 = arith.mulf %100, %99 : vector<8x128xf32>
    %cst_45 = arith.constant 5.000000e-01 : f32
    %102 = vector.broadcast %cst_45 : f32 to vector<8x128xf32>
    %103 = arith.addf %101, %102 : vector<8x128xf32>
    %104 = vector.extract_strided_slice %95 {offsets = [0, 128], sizes = [8, 128], strides = [1, 1]} : vector<8x512xf32> to vector<8x128xf32>
    %cst_46 = arith.constant 5.000000e-01 : f32
    %105 = vector.broadcast %cst_46 : f32 to vector<8x128xf32>
    %106 = arith.mulf %105, %104 : vector<8x128xf32>
    %107 = math.tanh %106 : vector<8x128xf32>
    %cst_47 = arith.constant 5.000000e-01 : f32
    %108 = vector.broadcast %cst_47 : f32 to vector<8x128xf32>
    %109 = arith.mulf %108, %107 : vector<8x128xf32>
    %cst_48 = arith.constant 5.000000e-01 : f32
    %110 = vector.broadcast %cst_48 : f32 to vector<8x128xf32>
    %111 = arith.addf %109, %110 : vector<8x128xf32>
    %112 = vector.extract_strided_slice %95 {offsets = [0, 256], sizes = [8, 128], strides = [1, 1]} : vector<8x512xf32> to vector<8x128xf32>
    %113 = math.tanh %112 : vector<8x128xf32>
    %114 = vector.extract_strided_slice %95 {offsets = [0, 384], sizes = [8, 128], strides = [1, 1]} : vector<8x512xf32> to vector<8x128xf32>
    %cst_49 = arith.constant 5.000000e-01 : f32
    %115 = vector.broadcast %cst_49 : f32 to vector<8x128xf32>
    %116 = arith.mulf %115, %114 : vector<8x128xf32>
    %117 = math.tanh %116 : vector<8x128xf32>
    %cst_50 = arith.constant 5.000000e-01 : f32
    %118 = vector.broadcast %cst_50 : f32 to vector<8x128xf32>
    %119 = arith.mulf %118, %117 : vector<8x128xf32>
    %cst_51 = arith.constant 5.000000e-01 : f32
    %120 = vector.broadcast %cst_51 : f32 to vector<8x128xf32>
    %121 = arith.addf %119, %120 : vector<8x128xf32>
    %122 = arith.mulf %111, %86 : vector<8x128xf32>
    %123 = arith.mulf %103, %113 : vector<8x128xf32>
    %124 = arith.addf %122, %123 : vector<8x128xf32>
    %125 = math.tanh %124 : vector<8x128xf32>
    %126 = arith.mulf %121, %125 : vector<8x128xf32>
    %c3_i32_52 = arith.constant 3 : i32
    %c3_i32_53 = arith.constant 3 : i32
    %127 = arith.subi %c3_i32_53, %c3_i32_52 : i32
    %c8_i32_54 = arith.constant 8 : i32
    %128 = arith.muli %127, %c8_i32_54 : i32
    %129 = tpu.assume_multiple %128, 8 : i32
    %130 = arith.index_cast %129 : i32 to index
    %c0_55 = arith.constant 0 : index
    %131 = vector.load %arg11[%130, %c0_55] : memref<32x512xf32, #tpu.memory_space<vmem>>, vector<8x512xf32>
    %cst_56 = arith.constant dense<0.000000e+00> : vector<8x512xf32>
    %132 = tpu.matmul %126, %10, %cst_56 {dimension_numbers = #tpu.dot_dimension_numbers<[1], [0], [0], [1], [0, 0, 1, 1], [], []>} : vector<8x128xf32>, vector<128x512xf32>, vector<8x512xf32> -> vector<8x512xf32>
    %133 = arith.addf %131, %132 : vector<8x512xf32>
    %134 = vector.extract_strided_slice %133 {offsets = [0, 0], sizes = [8, 128], strides = [1, 1]} : vector<8x512xf32> to vector<8x128xf32>
    %cst_57 = arith.constant 5.000000e-01 : f32
    %135 = vector.broadcast %cst_57 : f32 to vector<8x128xf32>
    %136 = arith.mulf %135, %134 : vector<8x128xf32>
    %137 = math.tanh %136 : vector<8x128xf32>
    %cst_58 = arith.constant 5.000000e-01 : f32
    %138 = vector.broadcast %cst_58 : f32 to vector<8x128xf32>
    %139 = arith.mulf %138, %137 : vector<8x128xf32>
    %cst_59 = arith.constant 5.000000e-01 : f32
    %140 = vector.broadcast %cst_59 : f32 to vector<8x128xf32>
    %141 = arith.addf %139, %140 : vector<8x128xf32>
    %142 = vector.extract_strided_slice %133 {offsets = [0, 128], sizes = [8, 128], strides = [1, 1]} : vector<8x512xf32> to vector<8x128xf32>
    %cst_60 = arith.constant 5.000000e-01 : f32
    %143 = vector.broadcast %cst_60 : f32 to vector<8x128xf32>
    %144 = arith.mulf %143, %142 : vector<8x128xf32>
    %145 = math.tanh %144 : vector<8x128xf32>
    %cst_61 = arith.constant 5.000000e-01 : f32
    %146 = vector.broadcast %cst_61 : f32 to vector<8x128xf32>
    %147 = arith.mulf %146, %145 : vector<8x128xf32>
    %cst_62 = arith.constant 5.000000e-01 : f32
    %148 = vector.broadcast %cst_62 : f32 to vector<8x128xf32>
    %149 = arith.addf %147, %148 : vector<8x128xf32>
    %150 = vector.extract_strided_slice %133 {offsets = [0, 256], sizes = [8, 128], strides = [1, 1]} : vector<8x512xf32> to vector<8x128xf32>
    %151 = math.tanh %150 : vector<8x128xf32>
    %152 = vector.extract_strided_slice %133 {offsets = [0, 384], sizes = [8, 128], strides = [1, 1]} : vector<8x512xf32> to vector<8x128xf32>
    %cst_63 = arith.constant 5.000000e-01 : f32
    %153 = vector.broadcast %cst_63 : f32 to vector<8x128xf32>
    %154 = arith.mulf %153, %152 : vector<8x128xf32>
    %155 = math.tanh %154 : vector<8x128xf32>
    %cst_64 = arith.constant 5.000000e-01 : f32
    %156 = vector.broadcast %cst_64 : f32 to vector<8x128xf32>
    %157 = arith.mulf %156, %155 : vector<8x128xf32>
    %cst_65 = arith.constant 5.000000e-01 : f32
    %158 = vector.broadcast %cst_65 : f32 to vector<8x128xf32>
    %159 = arith.addf %157, %158 : vector<8x128xf32>
    %160 = arith.mulf %149, %124 : vector<8x128xf32>
    %161 = arith.mulf %141, %151 : vector<8x128xf32>
    %162 = arith.addf %160, %161 : vector<8x128xf32>
    %163 = math.tanh %162 : vector<8x128xf32>
    %164 = arith.mulf %159, %163 : vector<8x128xf32>
    %c4_i32 = arith.constant 4 : i32
    %c0_66 = arith.constant 0 : index
    %c0_67 = arith.constant 0 : index
    %165 = vector.load %arg12[%c0_66, %c0_67] : memref<8x128xf32, #tpu.memory_space<vmem>>, vector<8x128xf32>
    tpu.vector_store %arg12[%c0_66, %c0_67], %164 {strides = array<i32>} : memref<8x128xf32, #tpu.memory_space<vmem>>, vector<8x128xf32>,
    %c0_68 = arith.constant 0 : index
    %c0_69 = arith.constant 0 : index
    %166 = vector.load %arg13[%c0_68, %c0_69] : memref<8x128xf32, #tpu.memory_space<vmem>>, vector<8x128xf32>
    tpu.vector_store %arg13[%c0_68, %c0_69], %162 {strides = array<i32>} : memref<8x128xf32, #tpu.memory_space<vmem>>, vector<8x128xf32>,
    %c1_i32_70 = arith.constant 1 : i32
    %167 = arith.cmpi eq, %arg0, %c1_i32_70 : i32
    %168 = arith.extui %167 : i1 to i32
    %c0_i32_71 = arith.constant 0 : i32
    %169 = arith.cmpi ne, %168, %c0_i32_71 : i32
    scf.if %169 {
      %c0_72 = arith.constant 0 : index
      %c0_73 = arith.constant 0 : index
      %170 = vector.load %arg1[%c0_72, %c0_73] : memref<32x32xf32, #tpu.memory_space<vmem>>, vector<8x32xf32>
      %c0_74 = arith.constant 0 : index
      %c0_75 = arith.constant 0 : index
      %171 = vector.load %arg4[%c0_74, %c0_75] : memref<32x512xf32, #tpu.memory_space<vmem>>, vector<32x512xf32>
      %cst_76 = arith.constant dense<0.000000e+00> : vector<8x512xf32>
      %172 = tpu.matmul %170, %171, %cst_76 {dimension_numbers = #tpu.dot_dimension_numbers<[1], [0], [0], [1], [0, 0, 1, 1], [], []>} : vector<8x32xf32>, vector<32x512xf32>, vector<8x512xf32> -> vector<8x512xf32>
      %c0_77 = arith.constant 0 : index
      %c0_78 = arith.constant 0 : index
      %173 = vector.load %arg5[%c0_77, %c0_78] : memref<1x512xf32, #tpu.memory_space<vmem>>, vector<1x512xf32>
      %174 = vector.broadcast %173 : vector<1x512xf32> to vector<8x512xf32>
      %175 = arith.addf %172, %174 : vector<8x512xf32>
      %176 = vector.extract_strided_slice %175 {offsets = [0, 0], sizes = [8, 128], strides = [1, 1]} : vector<8x512xf32> to vector<8x128xf32>
      %cst_79 = arith.constant 5.000000e-01 : f32
      %177 = vector.broadcast %cst_79 : f32 to vector<8x128xf32>
      %178 = arith.mulf %177, %176 : vector<8x128xf32>
      %179 = math.tanh %178 : vector<8x128xf32>
      %cst_80 = arith.constant 5.000000e-01 : f32
      %180 = vector.broadcast %cst_80 : f32 to vector<8x128xf32>
      %181 = arith.mulf %180, %179 : vector<8x128xf32>
      %cst_81 = arith.constant 5.000000e-01 : f32
      %182 = vector.broadcast %cst_81 : f32 to vector<8x128xf32>
      %183 = arith.addf %181, %182 : vector<8x128xf32>
      %184 = vector.extract_strided_slice %175 {offsets = [0, 256], sizes = [8, 128], strides = [1, 1]} : vector<8x512xf32> to vector<8x128xf32>
      %185 = math.tanh %184 : vector<8x128xf32>
      %186 = vector.extract_strided_slice %175 {offsets = [0, 384], sizes = [8, 128], strides = [1, 1]} : vector<8x512xf32> to vector<8x128xf32>
      %cst_82 = arith.constant 5.000000e-01 : f32
      %187 = vector.broadcast %cst_82 : f32 to vector<8x128xf32>
      %188 = arith.mulf %187, %186 : vector<8x128xf32>
      %189 = math.tanh %188 : vector<8x128xf32>
      %cst_83 = arith.constant 5.000000e-01 : f32
      %190 = vector.broadcast %cst_83 : f32 to vector<8x128xf32>
      %191 = arith.mulf %190, %189 : vector<8x128xf32>
      %cst_84 = arith.constant 5.000000e-01 : f32
      %192 = vector.broadcast %cst_84 : f32 to vector<8x128xf32>
      %193 = arith.addf %191, %192 : vector<8x128xf32>
      %194 = arith.mulf %183, %185 : vector<8x128xf32>
      %195 = math.tanh %194 : vector<8x128xf32>
      %196 = arith.mulf %193, %195 : vector<8x128xf32>
      %c0_85 = arith.constant 0 : index
      %c0_86 = arith.constant 0 : index
      %197 = vector.load %arg7[%c0_85, %c0_86] : memref<128x128xf32, #tpu.memory_space<vmem>>, vector<128x128xf32>
      %cst_87 = arith.constant dense<0.000000e+00> : vector<8x128xf32>
      %198 = tpu.matmul %196, %197, %cst_87 {dimension_numbers = #tpu.dot_dimension_numbers<[1], [0], [0], [1], [0, 0, 1, 1], [], []>} : vector<8x128xf32>, vector<128x128xf32>, vector<8x128xf32> -> vector<8x128xf32>
      %c0_88 = arith.constant 0 : index
      %c0_89 = arith.constant 0 : index
      %199 = vector.load %arg8[%c0_88, %c0_89] : memref<128x128xf32, #tpu.memory_space<vmem>>, vector<128x128xf32>
      %cst_90 = arith.constant dense<0.000000e+00> : vector<8x128xf32>
      %200 = tpu.matmul %164, %199, %cst_90 {dimension_numbers = #tpu.dot_dimension_numbers<[1], [0], [0], [1], [0, 0, 1, 1], [], []>} : vector<8x128xf32>, vector<128x128xf32>, vector<8x128xf32> -> vector<8x128xf32>
      %201 = arith.addf %198, %200 : vector<8x128xf32>
      %c0_91 = arith.constant 0 : index
      %c0_92 = arith.constant 0 : index
      %202 = vector.load %arg9[%c0_91, %c0_92] : memref<1x128xf32, #tpu.memory_space<vmem>>, vector<1x128xf32>
      %203 = vector.broadcast %202 : vector<1x128xf32> to vector<8x128xf32>
      %204 = arith.addf %201, %203 : vector<8x128xf32>
      %c0_93 = arith.constant 0 : index
      %c0_94 = arith.constant 0 : index
      %205 = vector.load %arg10[%c0_93, %c0_94] : memref<8x128xf32, #tpu.memory_space<vmem>>, vector<8x128xf32>
      tpu.vector_store %arg10[%c0_93, %c0_94], %204 {strides = array<i32>} : memref<8x128xf32, #tpu.memory_space<vmem>>, vector<8x128xf32>,
    } else {
    }
    return
  }
  func.func @transform_0(%arg0: i32) -> (i32, i32) {
    %c1_i32 = arith.constant 1 : i32
    %0 = arith.subi %c1_i32, %arg0 : i32
    %c0_i32 = arith.constant 0 : i32
    %c0_i32_0 = arith.constant 0 : i32
    return %0, %c0_i32 : i32, i32
  }
  func.func @transform_1(%arg0: i32) -> (i32, i32) {
    %c0_i32 = arith.constant 0 : i32
    %c0_i32_0 = arith.constant 0 : i32
    %c0_i32_1 = arith.constant 0 : i32
    return %c0_i32, %c0_i32_0 : i32, i32
  }
  func.func @transform_2(%arg0: i32) -> (i32, i32) {
    %c0_i32 = arith.constant 0 : i32
    %c0_i32_0 = arith.constant 0 : i32
    %c0_i32_1 = arith.constant 0 : i32
    return %c0_i32, %c0_i32_0 : i32, i32
  }
  func.func @transform_3(%arg0: i32) -> (i32, i32) {
    %c0_i32 = arith.constant 0 : i32
    %c0_i32_0 = arith.constant 0 : i32
    %c0_i32_1 = arith.constant 0 : i32
    return %c0_i32, %c0_i32_0 : i32, i32
  }
  func.func @transform_4(%arg0: i32) -> (i32, i32) {
    %c0_i32 = arith.constant 0 : i32
    %c0_i32_0 = arith.constant 0 : i32
    %c0_i32_1 = arith.constant 0 : i32
    return %c0_i32, %c0_i32_0 : i32, i32
  }
  func.func @transform_5(%arg0: i32) -> (i32, i32) {
    %c0_i32 = arith.constant 0 : i32
    %c0_i32_0 = arith.constant 0 : i32
    %c0_i32_1 = arith.constant 0 : i32
    return %c0_i32, %c0_i32_0 : i32, i32
  }
  func.func @transform_6(%arg0: i32) -> (i32, i32) {
    %c0_i32 = arith.constant 0 : i32
    %c0_i32_0 = arith.constant 0 : i32
    %c0_i32_1 = arith.constant 0 : i32
    return %c0_i32, %c0_i32_0 : i32, i32
  }
  func.func @transform_7(%arg0: i32) -> (i32, i32) {
    %c0_i32 = arith.constant 0 : i32
    %c0_i32_0 = arith.constant 0 : i32
    %c0_i32_1 = arith.constant 0 : i32
    return %c0_i32, %c0_i32_0 : i32, i32
  }
  func.func @transform_8(%arg0: i32) -> (i32, i32) {
    %c0_i32 = arith.constant 0 : i32
    %c0_i32_0 = arith.constant 0 : i32
    %c0_i32_1 = arith.constant 0 : i32
    return %c0_i32, %c0_i32_0 : i32, i32
  }
  func.func @transform_9(%arg0: i32) -> (i32, i32) {
    %c0_i32 = arith.constant 0 : i32
    %c0_i32_0 = arith.constant 0 : i32
    %c0_i32_1 = arith.constant 0 : i32
    return %c0_i32, %c0_i32_0 : i32, i32
  }
}

module attributes {stable_mosaic.version = 11 : i64} {
  func.func @kernel(%arg0: i32, %arg1: memref<32x32xf32, #tpu.memory_space<vmem>>, %arg2: memref<32x512xf32, #tpu.memory_space<vmem>>, %arg3: memref<1x512xf32, #tpu.memory_space<vmem>>, %arg4: memref<32x512xf32, #tpu.memory_space<vmem>>, %arg5: memref<1x512xf32, #tpu.memory_space<vmem>>, %arg6: memref<128x512xf32, #tpu.memory_space<vmem>>, %arg7: memref<128x128xf32, #tpu.memory_space<vmem>>, %arg8: memref<128x128xf32, #tpu.memory_space<vmem>>, %arg9: memref<1x128xf32, #tpu.memory_space<vmem>>, %arg10: memref<8x128xf32, #tpu.memory_space<vmem>>, %arg11: memref<32x512xf32, #tpu.memory_space<vmem>>, %arg12: memref<8x128xf32, #tpu.memory_space<vmem>>, %arg13: memref<8x128xf32, #tpu.memory_space<vmem>>) attributes {dimension_semantics = [#tpu.dimension_semantics<arbitrary>], iteration_bounds = array<i64: 2>, scalar_prefetch = 0 : i64, scratch_operands = 3 : i64, tpu.core_type = #tpu.core_type<tc>, window_params = [{transform_indices = @transform_0, window_bounds = array<i64: 32, 32>}, {pipeline_mode = #tpu.pipeline_mode<synchronous>, transform_indices = @transform_1, window_bounds = array<i64: 32, 512>}, {pipeline_mode = #tpu.pipeline_mode<synchronous>, transform_indices = @transform_2, window_bounds = array<i64: 1, 512>}, {pipeline_mode = #tpu.pipeline_mode<synchronous>, transform_indices = @transform_3, window_bounds = array<i64: 32, 512>}, {pipeline_mode = #tpu.pipeline_mode<synchronous>, transform_indices = @transform_4, window_bounds = array<i64: 1, 512>}, {pipeline_mode = #tpu.pipeline_mode<synchronous>, transform_indices = @transform_5, window_bounds = array<i64: 128, 512>}, {pipeline_mode = #tpu.pipeline_mode<synchronous>, transform_indices = @transform_6, window_bounds = array<i64: 128, 128>}, {pipeline_mode = #tpu.pipeline_mode<synchronous>, transform_indices = @transform_7, window_bounds = array<i64: 128, 128>}, {pipeline_mode = #tpu.pipeline_mode<synchronous>, transform_indices = @transform_8, window_bounds = array<i64: 1, 128>}, {pipeline_mode = #tpu.pipeline_mode<synchronous>, transform_indices = @transform_9, window_bounds = array<i64: 8, 128>}]} {
    %c0_i32 = arith.constant 0 : i32
    %0 = arith.cmpi eq, %arg0, %c0_i32 : i32
    %1 = arith.extui %0 : i1 to i32
    %c0_i32_0 = arith.constant 0 : i32
    %2 = arith.cmpi ne, %1, %c0_i32_0 : i32
    scf.if %2 {
      %cst_72 = arith.constant 0.000000e+00 : f32
      %170 = vector.broadcast %cst_72 : f32 to vector<8x128xf32>
      %c0_73 = arith.constant 0 : index
      %c0_74 = arith.constant 0 : index
      %171 = vector.load %arg12[%c0_73, %c0_74] : memref<8x128xf32, #tpu.memory_space<vmem>>, vector<8x128xf32>
      tpu.vector_store %arg12[%c0_73, %c0_74], %170 {strides = array<i32>} : memref<8x128xf32, #tpu.memory_space<vmem>>, vector<8x128xf32>,
      %cst_75 = arith.constant 0.000000e+00 : f32
      %172 = vector.broadcast %cst_75 : f32 to vector<8x128xf32>
      %c0_76 = arith.constant 0 : index
      %c0_77 = arith.constant 0 : index
      %173 = vector.load %arg13[%c0_76, %c0_77] : memref<8x128xf32, #tpu.memory_space<vmem>>, vector<8x128xf32>
      tpu.vector_store %arg13[%c0_76, %c0_77], %172 {strides = array<i32>} : memref<8x128xf32, #tpu.memory_space<vmem>>, vector<8x128xf32>,
    } else {
    }
    %c0 = arith.constant 0 : index
    %c0_1 = arith.constant 0 : index
    %3 = vector.load %arg1[%c0, %c0_1] : memref<32x32xf32, #tpu.memory_space<vmem>>, vector<32x32xf32>
    %c0_2 = arith.constant 0 : index
    %c0_3 = arith.constant 0 : index
    %4 = vector.load %arg2[%c0_2, %c0_3] : memref<32x512xf32, #tpu.memory_space<vmem>>, vector<32x512xf32>
    %cst = arith.constant dense<0.000000e+00> : vector<32x512xf32>
    %5 = tpu.matmul %3, %4, %cst {dimension_numbers = #tpu.dot_dimension_numbers<[1], [0], [0], [1], [0, 0, 1, 1], [], []>} : vector<32x32xf32>, vector<32x512xf32>, vector<32x512xf32> -> vector<32x512xf32>
    %c0_4 = arith.constant 0 : index
    %c0_5 = arith.constant 0 : index
    %6 = vector.load %arg3[%c0_4, %c0_5] : memref<1x512xf32, #tpu.memory_space<vmem>>, vector<1x512xf32>
    %7 = vector.broadcast %6 : vector<1x512xf32> to vector<32x512xf32>
    %8 = arith.addf %5, %7 : vector<32x512xf32>
    %c0_6 = arith.constant 0 : index
    %c0_7 = arith.constant 0 : index
    %9 = vector.load %arg11[%c0_6, %c0_7] : memref<32x512xf32, #tpu.memory_space<vmem>>, vector<32x512xf32>
    tpu.vector_store %arg11[%c0_6, %c0_7], %8 {strides = array<i32>} : memref<32x512xf32, #tpu.memory_space<vmem>>, vector<32x512xf32>,
    %c0_8 = arith.constant 0 : index
    %c0_9 = arith.constant 0 : index
    %10 = vector.load %arg6[%c0_8, %c0_9] : memref<128x512xf32, #tpu.memory_space<vmem>>, vector<128x512xf32>
    %c0_10 = arith.constant 0 : index
    %c0_11 = arith.constant 0 : index
    %11 = vector.load %arg12[%c0_10, %c0_11] : memref<8x128xf32, #tpu.memory_space<vmem>>, vector<8x128xf32>
    %c0_12 = arith.constant 0 : index
    %c0_13 = arith.constant 0 : index
    %12 = vector.load %arg13[%c0_12, %c0_13] : memref<8x128xf32, #tpu.memory_space<vmem>>, vector<8x128xf32>
    %c0_i32_14 = arith.constant 0 : i32
    %c3_i32 = arith.constant 3 : i32
    %13 = arith.subi %c3_i32, %c0_i32_14 : i32
    %c8_i32 = arith.constant 8 : i32
    %14 = arith.muli %13, %c8_i32 : i32
    %15 = tpu.assume_multiple %14, 8 : i32
    %16 = arith.index_cast %15 : i32 to index
    %c0_15 = arith.constant 0 : index
    %17 = vector.load %arg11[%16, %c0_15] : memref<32x512xf32, #tpu.memory_space<vmem>>, vector<8x512xf32>
    %cst_16 = arith.constant dense<0.000000e+00> : vector<8x512xf32>
    %18 = tpu.matmul %11, %10, %cst_16 {dimension_numbers = #tpu.dot_dimension_numbers<[1], [0], [0], [1], [0, 0, 1, 1], [], []>} : vector<8x128xf32>, vector<128x512xf32>, vector<8x512xf32> -> vector<8x512xf32>
    %19 = arith.addf %17, %18 : vector<8x512xf32>
    %20 = vector.extract_strided_slice %19 {offsets = [0, 0], sizes = [8, 128], strides = [1, 1]} : vector<8x512xf32> to vector<8x128xf32>
    %cst_17 = arith.constant 5.000000e-01 : f32
    %21 = vector.broadcast %cst_17 : f32 to vector<8x128xf32>
    %22 = arith.mulf %21, %20 : vector<8x128xf32>
    %23 = math.tanh %22 : vector<8x128xf32>
    %cst_18 = arith.constant 5.000000e-01 : f32
    %24 = vector.broadcast %cst_18 : f32 to vector<8x128xf32>
    %25 = arith.mulf %24, %23 : vector<8x128xf32>
    %cst_19 = arith.constant 5.000000e-01 : f32
    %26 = vector.broadcast %cst_19 : f32 to vector<8x128xf32>
    %27 = arith.addf %25, %26 : vector<8x128xf32>
    %28 = vector.extract_strided_slice %19 {offsets = [0, 128], sizes = [8, 128], strides = [1, 1]} : vector<8x512xf32> to vector<8x128xf32>
    %cst_20 = arith.constant 5.000000e-01 : f32
    %29 = vector.broadcast %cst_20 : f32 to vector<8x128xf32>
    %30 = arith.mulf %29, %28 : vector<8x128xf32>
    %31 = math.tanh %30 : vector<8x128xf32>
    %cst_21 = arith.constant 5.000000e-01 : f32
    %32 = vector.broadcast %cst_21 : f32 to vector<8x128xf32>
    %33 = arith.mulf %32, %31 : vector<8x128xf32>
    %cst_22 = arith.constant 5.000000e-01 : f32
    %34 = vector.broadcast %cst_22 : f32 to vector<8x128xf32>
    %35 = arith.addf %33, %34 : vector<8x128xf32>
    %36 = vector.extract_strided_slice %19 {offsets = [0, 256], sizes = [8, 128], strides = [1, 1]} : vector<8x512xf32> to vector<8x128xf32>
    %37 = math.tanh %36 : vector<8x128xf32>
    %38 = vector.extract_strided_slice %19 {offsets = [0, 384], sizes = [8, 128], strides = [1, 1]} : vector<8x512xf32> to vector<8x128xf32>
    %cst_23 = arith.constant 5.000000e-01 : f32
    %39 = vector.broadcast %cst_23 : f32 to vector<8x128xf32>
    %40 = arith.mulf %39, %38 : vector<8x128xf32>
    %41 = math.tanh %40 : vector<8x128xf32>
    %cst_24 = arith.constant 5.000000e-01 : f32
    %42 = vector.broadcast %cst_24 : f32 to vector<8x128xf32>
    %43 = arith.mulf %42, %41 : vector<8x128xf32>
    %cst_25 = arith.constant 5.000000e-01 : f32
    %44 = vector.broadcast %cst_25 : f32 to vector<8x128xf32>
    %45 = arith.addf %43, %44 : vector<8x128xf32>
    %46 = arith.mulf %35, %12 : vector<8x128xf32>
    %47 = arith.mulf %27, %37 : vector<8x128xf32>
    %48 = arith.addf %46, %47 : vector<8x128xf32>
    %49 = math.tanh %48 : vector<8x128xf32>
    %50 = arith.mulf %45, %49 : vector<8x128xf32>
    %c1_i32 = arith.constant 1 : i32
    %c3_i32_26 = arith.constant 3 : i32
    %51 = arith.subi %c3_i32_26, %c1_i32 : i32
    %c8_i32_27 = arith.constant 8 : i32
    %52 = arith.muli %51, %c8_i32_27 : i32
    %53 = tpu.assume_multiple %52, 8 : i32
    %54 = arith.index_cast %53 : i32 to index
    %c0_28 = arith.constant 0 : index
    %55 = vector.load %arg11[%54, %c0_28] : memref<32x512xf32, #tpu.memory_space<vmem>>, vector<8x512xf32>
    %cst_29 = arith.constant dense<0.000000e+00> : vector<8x512xf32>
    %56 = tpu.matmul %50, %10, %cst_29 {dimension_numbers = #tpu.dot_dimension_numbers<[1], [0], [0], [1], [0, 0, 1, 1], [], []>} : vector<8x128xf32>, vector<128x512xf32>, vector<8x512xf32> -> vector<8x512xf32>
    %57 = arith.addf %55, %56 : vector<8x512xf32>
    %58 = vector.extract_strided_slice %57 {offsets = [0, 0], sizes = [8, 128], strides = [1, 1]} : vector<8x512xf32> to vector<8x128xf32>
    %cst_30 = arith.constant 5.000000e-01 : f32
    %59 = vector.broadcast %cst_30 : f32 to vector<8x128xf32>
    %60 = arith.mulf %59, %58 : vector<8x128xf32>
    %61 = math.tanh %60 : vector<8x128xf32>
    %cst_31 = arith.constant 5.000000e-01 : f32
    %62 = vector.broadcast %cst_31 : f32 to vector<8x128xf32>
    %63 = arith.mulf %62, %61 : vector<8x128xf32>
    %cst_32 = arith.constant 5.000000e-01 : f32
    %64 = vector.broadcast %cst_32 : f32 to vector<8x128xf32>
    %65 = arith.addf %63, %64 : vector<8x128xf32>
    %66 = vector.extract_strided_slice %57 {offsets = [0, 128], sizes = [8, 128], strides = [1, 1]} : vector<8x512xf32> to vector<8x128xf32>
    %cst_33 = arith.constant 5.000000e-01 : f32
    %67 = vector.broadcast %cst_33 : f32 to vector<8x128xf32>
    %68 = arith.mulf %67, %66 : vector<8x128xf32>
    %69 = math.tanh %68 : vector<8x128xf32>
    %cst_34 = arith.constant 5.000000e-01 : f32
    %70 = vector.broadcast %cst_34 : f32 to vector<8x128xf32>
    %71 = arith.mulf %70, %69 : vector<8x128xf32>
    %cst_35 = arith.constant 5.000000e-01 : f32
    %72 = vector.broadcast %cst_35 : f32 to vector<8x128xf32>
    %73 = arith.addf %71, %72 : vector<8x128xf32>
    %74 = vector.extract_strided_slice %57 {offsets = [0, 256], sizes = [8, 128], strides = [1, 1]} : vector<8x512xf32> to vector<8x128xf32>
    %75 = math.tanh %74 : vector<8x128xf32>
    %76 = vector.extract_strided_slice %57 {offsets = [0, 384], sizes = [8, 128], strides = [1, 1]} : vector<8x512xf32> to vector<8x128xf32>
    %cst_36 = arith.constant 5.000000e-01 : f32
    %77 = vector.broadcast %cst_36 : f32 to vector<8x128xf32>
    %78 = arith.mulf %77, %76 : vector<8x128xf32>
    %79 = math.tanh %78 : vector<8x128xf32>
    %cst_37 = arith.constant 5.000000e-01 : f32
    %80 = vector.broadcast %cst_37 : f32 to vector<8x128xf32>
    %81 = arith.mulf %80, %79 : vector<8x128xf32>
    %cst_38 = arith.constant 5.000000e-01 : f32
    %82 = vector.broadcast %cst_38 : f32 to vector<8x128xf32>
    %83 = arith.addf %81, %82 : vector<8x128xf32>
    %84 = arith.mulf %73, %48 : vector<8x128xf32>
    %85 = arith.mulf %65, %75 : vector<8x128xf32>
    %86 = arith.addf %84, %85 : vector<8x128xf32>
    %87 = math.tanh %86 : vector<8x128xf32>
    %88 = arith.mulf %83, %87 : vector<8x128xf32>
    %c2_i32 = arith.constant 2 : i32
    %c3_i32_39 = arith.constant 3 : i32
    %89 = arith.subi %c3_i32_39, %c2_i32 : i32
    %c8_i32_40 = arith.constant 8 : i32
    %90 = arith.muli %89, %c8_i32_40 : i32
    %91 = tpu.assume_multiple %90, 8 : i32
    %92 = arith.index_cast %91 : i32 to index
    %c0_41 = arith.constant 0 : index
    %93 = vector.load %arg11[%92, %c0_41] : memref<32x512xf32, #tpu.memory_space<vmem>>, vector<8x512xf32>
    %cst_42 = arith.constant dense<0.000000e+00> : vector<8x512xf32>
    %94 = tpu.matmul %88, %10, %cst_42 {dimension_numbers = #tpu.dot_dimension_numbers<[1], [0], [0], [1], [0, 0, 1, 1], [], []>} : vector<8x128xf32>, vector<128x512xf32>, vector<8x512xf32> -> vector<8x512xf32>
    %95 = arith.addf %93, %94 : vector<8x512xf32>
    %96 = vector.extract_strided_slice %95 {offsets = [0, 0], sizes = [8, 128], strides = [1, 1]} : vector<8x512xf32> to vector<8x128xf32>
    %cst_43 = arith.constant 5.000000e-01 : f32
    %97 = vector.broadcast %cst_43 : f32 to vector<8x128xf32>
    %98 = arith.mulf %97, %96 : vector<8x128xf32>
    %99 = math.tanh %98 : vector<8x128xf32>
    %cst_44 = arith.constant 5.000000e-01 : f32
    %100 = vector.broadcast %cst_44 : f32 to vector<8x128xf32>
    %101 = arith.mulf %100, %99 : vector<8x128xf32>
    %cst_45 = arith.constant 5.000000e-01 : f32
    %102 = vector.broadcast %cst_45 : f32 to vector<8x128xf32>
    %103 = arith.addf %101, %102 : vector<8x128xf32>
    %104 = vector.extract_strided_slice %95 {offsets = [0, 128], sizes = [8, 128], strides = [1, 1]} : vector<8x512xf32> to vector<8x128xf32>
    %cst_46 = arith.constant 5.000000e-01 : f32
    %105 = vector.broadcast %cst_46 : f32 to vector<8x128xf32>
    %106 = arith.mulf %105, %104 : vector<8x128xf32>
    %107 = math.tanh %106 : vector<8x128xf32>
    %cst_47 = arith.constant 5.000000e-01 : f32
    %108 = vector.broadcast %cst_47 : f32 to vector<8x128xf32>
    %109 = arith.mulf %108, %107 : vector<8x128xf32>
    %cst_48 = arith.constant 5.000000e-01 : f32
    %110 = vector.broadcast %cst_48 : f32 to vector<8x128xf32>
    %111 = arith.addf %109, %110 : vector<8x128xf32>
    %112 = vector.extract_strided_slice %95 {offsets = [0, 256], sizes = [8, 128], strides = [1, 1]} : vector<8x512xf32> to vector<8x128xf32>
    %113 = math.tanh %112 : vector<8x128xf32>
    %114 = vector.extract_strided_slice %95 {offsets = [0, 384], sizes = [8, 128], strides = [1, 1]} : vector<8x512xf32> to vector<8x128xf32>
    %cst_49 = arith.constant 5.000000e-01 : f32
    %115 = vector.broadcast %cst_49 : f32 to vector<8x128xf32>
    %116 = arith.mulf %115, %114 : vector<8x128xf32>
    %117 = math.tanh %116 : vector<8x128xf32>
    %cst_50 = arith.constant 5.000000e-01 : f32
    %118 = vector.broadcast %cst_50 : f32 to vector<8x128xf32>
    %119 = arith.mulf %118, %117 : vector<8x128xf32>
    %cst_51 = arith.constant 5.000000e-01 : f32
    %120 = vector.broadcast %cst_51 : f32 to vector<8x128xf32>
    %121 = arith.addf %119, %120 : vector<8x128xf32>
    %122 = arith.mulf %111, %86 : vector<8x128xf32>
    %123 = arith.mulf %103, %113 : vector<8x128xf32>
    %124 = arith.addf %122, %123 : vector<8x128xf32>
    %125 = math.tanh %124 : vector<8x128xf32>
    %126 = arith.mulf %121, %125 : vector<8x128xf32>
    %c3_i32_52 = arith.constant 3 : i32
    %c3_i32_53 = arith.constant 3 : i32
    %127 = arith.subi %c3_i32_53, %c3_i32_52 : i32
    %c8_i32_54 = arith.constant 8 : i32
    %128 = arith.muli %127, %c8_i32_54 : i32
    %129 = tpu.assume_multiple %128, 8 : i32
    %130 = arith.index_cast %129 : i32 to index
    %c0_55 = arith.constant 0 : index
    %131 = vector.load %arg11[%130, %c0_55] : memref<32x512xf32, #tpu.memory_space<vmem>>, vector<8x512xf32>
    %cst_56 = arith.constant dense<0.000000e+00> : vector<8x512xf32>
    %132 = tpu.matmul %126, %10, %cst_56 {dimension_numbers = #tpu.dot_dimension_numbers<[1], [0], [0], [1], [0, 0, 1, 1], [], []>} : vector<8x128xf32>, vector<128x512xf32>, vector<8x512xf32> -> vector<8x512xf32>
    %133 = arith.addf %131, %132 : vector<8x512xf32>
    %134 = vector.extract_strided_slice %133 {offsets = [0, 0], sizes = [8, 128], strides = [1, 1]} : vector<8x512xf32> to vector<8x128xf32>
    %cst_57 = arith.constant 5.000000e-01 : f32
    %135 = vector.broadcast %cst_57 : f32 to vector<8x128xf32>
    %136 = arith.mulf %135, %134 : vector<8x128xf32>
    %137 = math.tanh %136 : vector<8x128xf32>
    %cst_58 = arith.constant 5.000000e-01 : f32
    %138 = vector.broadcast %cst_58 : f32 to vector<8x128xf32>
    %139 = arith.mulf %138, %137 : vector<8x128xf32>
    %cst_59 = arith.constant 5.000000e-01 : f32
    %140 = vector.broadcast %cst_59 : f32 to vector<8x128xf32>
    %141 = arith.addf %139, %140 : vector<8x128xf32>
    %142 = vector.extract_strided_slice %133 {offsets = [0, 128], sizes = [8, 128], strides = [1, 1]} : vector<8x512xf32> to vector<8x128xf32>
    %cst_60 = arith.constant 5.000000e-01 : f32
    %143 = vector.broadcast %cst_60 : f32 to vector<8x128xf32>
    %144 = arith.mulf %143, %142 : vector<8x128xf32>
    %145 = math.tanh %144 : vector<8x128xf32>
    %cst_61 = arith.constant 5.000000e-01 : f32
    %146 = vector.broadcast %cst_61 : f32 to vector<8x128xf32>
    %147 = arith.mulf %146, %145 : vector<8x128xf32>
    %cst_62 = arith.constant 5.000000e-01 : f32
    %148 = vector.broadcast %cst_62 : f32 to vector<8x128xf32>
    %149 = arith.addf %147, %148 : vector<8x128xf32>
    %150 = vector.extract_strided_slice %133 {offsets = [0, 256], sizes = [8, 128], strides = [1, 1]} : vector<8x512xf32> to vector<8x128xf32>
    %151 = math.tanh %150 : vector<8x128xf32>
    %152 = vector.extract_strided_slice %133 {offsets = [0, 384], sizes = [8, 128], strides = [1, 1]} : vector<8x512xf32> to vector<8x128xf32>
    %cst_63 = arith.constant 5.000000e-01 : f32
    %153 = vector.broadcast %cst_63 : f32 to vector<8x128xf32>
    %154 = arith.mulf %153, %152 : vector<8x128xf32>
    %155 = math.tanh %154 : vector<8x128xf32>
    %cst_64 = arith.constant 5.000000e-01 : f32
    %156 = vector.broadcast %cst_64 : f32 to vector<8x128xf32>
    %157 = arith.mulf %156, %155 : vector<8x128xf32>
    %cst_65 = arith.constant 5.000000e-01 : f32
    %158 = vector.broadcast %cst_65 : f32 to vector<8x128xf32>
    %159 = arith.addf %157, %158 : vector<8x128xf32>
    %160 = arith.mulf %149, %124 : vector<8x128xf32>
    %161 = arith.mulf %141, %151 : vector<8x128xf32>
    %162 = arith.addf %160, %161 : vector<8x128xf32>
    %163 = math.tanh %162 : vector<8x128xf32>
    %164 = arith.mulf %159, %163 : vector<8x128xf32>
    %c4_i32 = arith.constant 4 : i32
    %c0_66 = arith.constant 0 : index
    %c0_67 = arith.constant 0 : index
    %165 = vector.load %arg12[%c0_66, %c0_67] : memref<8x128xf32, #tpu.memory_space<vmem>>, vector<8x128xf32>
    tpu.vector_store %arg12[%c0_66, %c0_67], %164 {strides = array<i32>} : memref<8x128xf32, #tpu.memory_space<vmem>>, vector<8x128xf32>,
    %c0_68 = arith.constant 0 : index
    %c0_69 = arith.constant 0 : index
    %166 = vector.load %arg13[%c0_68, %c0_69] : memref<8x128xf32, #tpu.memory_space<vmem>>, vector<8x128xf32>
    tpu.vector_store %arg13[%c0_68, %c0_69], %162 {strides = array<i32>} : memref<8x128xf32, #tpu.memory_space<vmem>>, vector<8x128xf32>,
    %c1_i32_70 = arith.constant 1 : i32
    %167 = arith.cmpi eq, %arg0, %c1_i32_70 : i32
    %168 = arith.extui %167 : i1 to i32
    %c0_i32_71 = arith.constant 0 : i32
    %169 = arith.cmpi ne, %168, %c0_i32_71 : i32
    scf.if %169 {
      %c0_72 = arith.constant 0 : index
      %c0_73 = arith.constant 0 : index
      %170 = vector.load %arg1[%c0_72, %c0_73] : memref<32x32xf32, #tpu.memory_space<vmem>>, vector<8x32xf32>
      %c0_74 = arith.constant 0 : index
      %c0_75 = arith.constant 0 : index
      %171 = vector.load %arg4[%c0_74, %c0_75] : memref<32x512xf32, #tpu.memory_space<vmem>>, vector<32x512xf32>
      %cst_76 = arith.constant dense<0.000000e+00> : vector<8x512xf32>
      %172 = tpu.matmul %170, %171, %cst_76 {dimension_numbers = #tpu.dot_dimension_numbers<[1], [0], [0], [1], [0, 0, 1, 1], [], []>} : vector<8x32xf32>, vector<32x512xf32>, vector<8x512xf32> -> vector<8x512xf32>
      %c0_77 = arith.constant 0 : index
      %c0_78 = arith.constant 0 : index
      %173 = vector.load %arg5[%c0_77, %c0_78] : memref<1x512xf32, #tpu.memory_space<vmem>>, vector<1x512xf32>
      %174 = vector.broadcast %173 : vector<1x512xf32> to vector<8x512xf32>
      %175 = arith.addf %172, %174 : vector<8x512xf32>
      %176 = vector.extract_strided_slice %175 {offsets = [0, 0], sizes = [8, 128], strides = [1, 1]} : vector<8x512xf32> to vector<8x128xf32>
      %cst_79 = arith.constant 5.000000e-01 : f32
      %177 = vector.broadcast %cst_79 : f32 to vector<8x128xf32>
      %178 = arith.mulf %177, %176 : vector<8x128xf32>
      %179 = math.tanh %178 : vector<8x128xf32>
      %cst_80 = arith.constant 5.000000e-01 : f32
      %180 = vector.broadcast %cst_80 : f32 to vector<8x128xf32>
      %181 = arith.mulf %180, %179 : vector<8x128xf32>
      %cst_81 = arith.constant 5.000000e-01 : f32
      %182 = vector.broadcast %cst_81 : f32 to vector<8x128xf32>
      %183 = arith.addf %181, %182 : vector<8x128xf32>
      %184 = vector.extract_strided_slice %175 {offsets = [0, 256], sizes = [8, 128], strides = [1, 1]} : vector<8x512xf32> to vector<8x128xf32>
      %185 = math.tanh %184 : vector<8x128xf32>
      %186 = vector.extract_strided_slice %175 {offsets = [0, 384], sizes = [8, 128], strides = [1, 1]} : vector<8x512xf32> to vector<8x128xf32>
      %cst_82 = arith.constant 5.000000e-01 : f32
      %187 = vector.broadcast %cst_82 : f32 to vector<8x128xf32>
      %188 = arith.mulf %187, %186 : vector<8x128xf32>
      %189 = math.tanh %188 : vector<8x128xf32>
      %cst_83 = arith.constant 5.000000e-01 : f32
      %190 = vector.broadcast %cst_83 : f32 to vector<8x128xf32>
      %191 = arith.mulf %190, %189 : vector<8x128xf32>
      %cst_84 = arith.constant 5.000000e-01 : f32
      %192 = vector.broadcast %cst_84 : f32 to vector<8x128xf32>
      %193 = arith.addf %191, %192 : vector<8x128xf32>
      %194 = arith.mulf %183, %185 : vector<8x128xf32>
      %195 = math.tanh %194 : vector<8x128xf32>
      %196 = arith.mulf %193, %195 : vector<8x128xf32>
      %c0_85 = arith.constant 0 : index
      %c0_86 = arith.constant 0 : index
      %197 = vector.load %arg7[%c0_85, %c0_86] : memref<128x128xf32, #tpu.memory_space<vmem>>, vector<128x128xf32>
      %cst_87 = arith.constant dense<0.000000e+00> : vector<8x128xf32>
      %198 = tpu.matmul %196, %197, %cst_87 {dimension_numbers = #tpu.dot_dimension_numbers<[1], [0], [0], [1], [0, 0, 1, 1], [], []>} : vector<8x128xf32>, vector<128x128xf32>, vector<8x128xf32> -> vector<8x128xf32>
      %c0_88 = arith.constant 0 : index
      %c0_89 = arith.constant 0 : index
      %199 = vector.load %arg8[%c0_88, %c0_89] : memref<128x128xf32, #tpu.memory_space<vmem>>, vector<128x128xf32>
      %cst_90 = arith.constant dense<0.000000e+00> : vector<8x128xf32>
      %200 = tpu.matmul %164, %199, %cst_90 {dimension_numbers = #tpu.dot_dimension_numbers<[1], [0], [0], [1], [0, 0, 1, 1], [], []>} : vector<8x128xf32>, vector<128x128xf32>, vector<8x128xf32> -> vector<8x128xf32>
      %201 = arith.addf %198, %200 : vector<8x128xf32>
      %c0_91 = arith.constant 0 : index
      %c0_92 = arith.constant 0 : index
      %202 = vector.load %arg9[%c0_91, %c0_92] : memref<1x128xf32, #tpu.memory_space<vmem>>, vector<1x128xf32>
      %203 = vector.broadcast %202 : vector<1x128xf32> to vector<8x128xf32>
      %204 = arith.addf %201, %203 : vector<8x128xf32>
      %c0_93 = arith.constant 0 : index
      %c0_94 = arith.constant 0 : index
      %205 = vector.load %arg10[%c0_93, %c0_94] : memref<8x128xf32, #tpu.memory_space<vmem>>, vector<8x128xf32>
      tpu.vector_store %arg10[%c0_93, %c0_94], %204 {strides = array<i32>} : memref<8x128xf32, #tpu.memory_space<vmem>>, vector<8x128xf32>,
    } else {
    }
    return
  }
  func.func @transform_0(%arg0: i32) -> (i32, i32) {
    %c1_i32 = arith.constant 1 : i32
    %0 = arith.subi %c1_i32, %arg0 : i32
    %c0_i32 = arith.constant 0 : i32
    %c0_i32_0 = arith.constant 0 : i32
    return %0, %c0_i32 : i32, i32
  }
  func.func @transform_1(%arg0: i32) -> (i32, i32) {
    %c0_i32 = arith.constant 0 : i32
    %c0_i32_0 = arith.constant 0 : i32
    %c0_i32_1 = arith.constant 0 : i32
    return %c0_i32, %c0_i32_0 : i32, i32
  }
  func.func @transform_2(%arg0: i32) -> (i32, i32) {
    %c0_i32 = arith.constant 0 : i32
    %c0_i32_0 = arith.constant 0 : i32
    %c0_i32_1 = arith.constant 0 : i32
    return %c0_i32, %c0_i32_0 : i32, i32
  }
  func.func @transform_3(%arg0: i32) -> (i32, i32) {
    %c0_i32 = arith.constant 0 : i32
    %c0_i32_0 = arith.constant 0 : i32
    %c0_i32_1 = arith.constant 0 : i32
    return %c0_i32, %c0_i32_0 : i32, i32
  }
  func.func @transform_4(%arg0: i32) -> (i32, i32) {
    %c0_i32 = arith.constant 0 : i32
    %c0_i32_0 = arith.constant 0 : i32
    %c0_i32_1 = arith.constant 0 : i32
    return %c0_i32, %c0_i32_0 : i32, i32
  }
  func.func @transform_5(%arg0: i32) -> (i32, i32) {
    %c0_i32 = arith.constant 0 : i32
    %c0_i32_0 = arith.constant 0 : i32
    %c0_i32_1 = arith.constant 0 : i32
    return %c0_i32, %c0_i32_0 : i32, i32
  }
  func.func @transform_6(%arg0: i32) -> (i32, i32) {
    %c0_i32 = arith.constant 0 : i32
    %c0_i32_0 = arith.constant 0 : i32
    %c0_i32_1 = arith.constant 0 : i32
    return %c0_i32, %c0_i32_0 : i32, i32
  }
  func.func @transform_7(%arg0: i32) -> (i32, i32) {
    %c0_i32 = arith.constant 0 : i32
    %c0_i32_0 = arith.constant 0 : i32
    %c0_i32_1 = arith.constant 0 : i32
    return %c0_i32, %c0_i32_0 : i32, i32
  }
  func.func @transform_8(%arg0: i32) -> (i32, i32) {
    %c0_i32 = arith.constant 0 : i32
    %c0_i32_0 = arith.constant 0 : i32
    %c0_i32_1 = arith.constant 0 : i32
    return %c0_i32, %c0_i32_0 : i32, i32
  }
  func.func @transform_9(%arg0: i32) -> (i32, i32) {
    %c0_i32 = arith.constant 0 : i32
    %c0_i32_0 = arith.constant 0 : i32
    %c0_i32_1 = arith.constant 0 : i32
    return %c0_i32, %c0_i32_0 : i32, i32
  }
}

</mosaic_0001>

<bundles_post_ra>
// kernel: tpu_custom_call.1
= control target key start
LH: loop header
LB: loop body
LE: loop exit
PB: predicated region body
PF: predicated region fallthrough
CT: control target
= control target key end

     0   :  { %14 = vsyncpa [#allocation6], 0  ;;  %s3037_s0 = inlined_call_operand.vmem [shape: f32[64,32], index: 0, kind: input, shape index: {}]   ;;  %s3038_s1 = inlined_call_operand.hbm [shape: f32[32,512], index: 1, kind: input, shape index: {}]   ;;  %s3039_s2 = inlined_call_operand.vmem [shape: f32[1,512], index: 2, kind: input, shape index: {}]   ;;  %s3040_s3 = inlined_call_operand.hbm [shape: f32[32,512], index: 3, kind: input, shape index: {}]   ;;  %s3041_s4 = inlined_call_operand.vmem [shape: f32[1,512], index: 4, kind: input, shape index: {}]   ;;  %s3042_s5 = inlined_call_operand.hbm [shape: f32[128,512], index: 5, kind: input, shape index: {}]   ;;  %s3043_s6 = inlined_call_operand.hbm [shape: f32[128,128], index: 6, kind: input, shape index: {}]   ;;  %s3044_s7 = inlined_call_operand.hbm [shape: f32[128,128], index: 7, kind: input, shape index: {}]   ;;  %s3045_s8 = inlined_call_operand.vmem [shape: f32[1,128], index: 8, kind: input, shape index: {}]   ;;  %s3046_s9 = inlined_call_operand.hbm [shape: f32[8,128], index: 9, kind: output, shape index: {}]  }
   0x1   :  { %15 = vsyncpa [#allocation9], 0 }
   0x2   :  { %16 = vsyncpa [#allocation12], 0 }
   0x3   :  { %17 = vsyncpa [#allocation7], 0  ;;  %s2383_s30 = smov 0  }
   0x4 LB: > { %s2389_s10 = sadd.s32 4294967295, %s2317_s30   ;;  %p1883_p0 = scmp.ge.s32.totalorder %s2317_s30, 1  ;;  %s2317_s30 = sphi %s2383_s30, %s23_s30  }
   0x5   : > { %p245_p1 = scmp.lt.s32.totalorder %s2317_s30, 3  ;;  %p1884_p2 = scmp.ne.s32.totalorder %s2389_s10, 0 }
   0x6   : > { %p2059_p3 = scmp.eq.s32.totalorder %s2389_s10, 0  ;;  %s2319_s12 = smov [#allocation8]  }
   0x7   : > { %p2395_p4 = pnand %p1883_p0, %p245_p1  ;;  %s273_s13 = sshll.u32 %s2319_s12, 4  ;;  %s274_s13 = int_to_ptr.vmem [resolvable:$true] %s273_s13 }
   0x8   : > { %s2320_s14 = smov [#allocation11]   ;;  %s2321_s17 = smov [#allocation5]  }
   0x9   : > { %p2043_p5 = pneg %p2395_p4  ;;  %s302_s15 = sshll.u32 %s2320_s14, 4  ;;  %s2401_s15 = int_to_ptr.vmem [resolvable:$true] %s302_s15 }
   0xa   : > { %s2409_s18 = sshll.u32 %s2321_s17, 4  ;;  %s2152_s20 = scalar_lea.vmem %s274_s13, 2048  ;;  %s258_s18 = int_to_ptr.vmem [resolvable:$true] %s2409_s18 }
   0xb   : > { %p2405_p6 = pnand %p2059_p3, %p2043_p5  ;;  %p2153_p8 = scmp.ne.s32.totalorder %s274_s13, %s2152_s20 }
   0xc   : > { %p2160_p11 = scmp.lt.s32.totalorder %s274_s13, %s274_s13  ;;  %p2161_p12 = scmp.lt.s32.totalorder %s2152_s20, %s2152_s20 }
   0xd   : > { %p2413_p7 = pneg %p2405_p6 }
   0xe   : > { %p2162_p13 = por %p2161_p12, %p2160_p11 }
   0xf   : > { %p2155_p9 = pnand %p2153_p8, %p2413_p7 }
  0x11   : > { %p2156_p10 = pneg %p2155_p9 }
  0x13   : > { %p2163_p0 = pnand %p2162_p13, %p2156_p10 }
  0x15   : > { %2166 = shalt.err (!%p2163_p0)
}
  0x16   : > { %s2322_s21 = smov 512   ;;  %s2323_s22 = smov 32  }
  0x17   : > { %2049 = dma.hbm_to_vmem [thread:$0]  (!%p2405_p6), %s3040_s3, 2048, %s274_s13, [#allocation9], %s2322_s21, %s2322_s21, %s2323_s22  }
  0x18   : > { %s2178_s25 = scalar_lea.vmem %s2401_s15, 2048  ;;  %p2186_p9 = scmp.lt.s32.totalorder %s2401_s15, %s2401_s15 }
  0x19   : > { %p2179_p1 = scmp.ne.s32.totalorder %s2401_s15, %s2178_s25  ;;  %p2187_p10 = scmp.lt.s32.totalorder %s2178_s25, %s2178_s25 }
  0x1b   : > { %p2181_p5 = pnand %p2179_p1, %p2413_p7  ;;  %p2188_p11 = por %p2187_p10, %p2186_p9 }
  0x1d   : > { %p2182_p8 = pneg %p2181_p5 }
  0x1f   : > { %p2189_p12 = pnand %p2188_p11, %p2182_p8 }
  0x21   : > { %2192 = shalt.err (!%p2189_p12)
}
  0x22   : > { %s2324_s26 = smov 128   ;;  %s2325_s27 = smov 8  }
  0x23   : > { %2055 = dma.hbm_to_vmem [thread:$0]  (!%p2405_p6), %s3043_s6, 2048, %s2401_s15, [#allocation12], %s2324_s26, %s2324_s26, %s2325_s27  }
  0x24   : > { %s2326_s12 = smov [#allocation10]   ;;  %s2204_s14 = scalar_lea.vmem %s258_s18, 2048 }
  0x25   : > { %s289_s13 = sshll.u32 %s2326_s12, 4  ;;  %p2205_p13 = scmp.ne.s32.totalorder %s258_s18, %s2204_s14  ;;  %s290_s13 = int_to_ptr.vmem [resolvable:$true] %s289_s13 }
  0x26   : > { %p2212_p5 = scmp.lt.s32.totalorder %s258_s18, %s258_s18  ;;  %p2213_p8 = scmp.lt.s32.totalorder %s2204_s14, %s2204_s14 }
  0x27   : > { %p2207_p0 = pnand %p2205_p13, %p2413_p7 }
  0x28   : > { %p2214_p9 = por %p2213_p8, %p2212_p5 }
  0x29   : > { %p2208_p1 = pneg %p2207_p0 }
  0x2b   : > { %p2215_p10 = pnand %p2214_p9, %p2208_p1 }
  0x2d   : > { %2218 = shalt.err (!%p2215_p10)
}
  0x2e   : > { %2046 = dma.hbm_to_vmem [thread:$0]  (!%p2405_p6), %s3038_s1, 2048, %s258_s18, [#allocation6], %s2322_s21, %s2322_s21, %s2323_s22  }
  0x2f   : > { %s2230_s20 = scalar_lea.vmem %s290_s13, 8192  ;;  %p2238_p0 = scmp.lt.s32.totalorder %s290_s13, %s290_s13 }
  0x30   : > { %p2231_p11 = scmp.ne.s32.totalorder %s290_s13, %s2230_s20  ;;  %p2239_p5 = scmp.lt.s32.totalorder %s2230_s20, %s2230_s20 }
  0x32   : > { %p2233_p12 = pnand %p2231_p11, %p2413_p7  ;;  %p2240_p1 = por %p2239_p5, %p2238_p0 }
  0x34   : > { %p2234_p13 = pneg %p2233_p12 }
  0x36   : > { %p2241_p8 = pnand %p2240_p1, %p2234_p13 }
  0x38   : > { %2244 = shalt.err (!%p2241_p8)
}
  0x39   : > { %2052 = dma.hbm_to_vmem [thread:$0]  (!%p2405_p6), %s3042_s5, 8192, %s290_s13, [#allocation9], %s2322_s21, %s2322_s21, %s2323_s22  }
  0x3a   : > { %s2327_s18 = smov [#allocation13]  }
  0x3b   : > { %s315_s25 = sshll.u32 %s2327_s18, 4  ;;  %s316_s25 = int_to_ptr.vmem [resolvable:$true] %s315_s25 }
  0x3c   : > { %s2256_s28 = scalar_lea.vmem %s316_s25, 2048  ;;  %p2264_p12 = scmp.lt.s32.totalorder %s316_s25, %s316_s25 }
  0x3d   : > { %p2257_p9 = scmp.ne.s32.totalorder %s316_s25, %s2256_s28  ;;  %p2265_p13 = scmp.lt.s32.totalorder %s2256_s28, %s2256_s28 }
  0x3f   : > { %p2259_p10 = pnand %p2257_p9, %p2413_p7  ;;  %p2266_p0 = por %p2265_p13, %p2264_p12 }
  0x41   : > { %p2260_p11 = pneg %p2259_p10 }
  0x43   : > { %p2267_p5 = pnand %p2266_p0, %p2260_p11 }
  0x45   : > { %2270 = shalt.err (!%p2267_p5)
}
  0x46   : > { %2058 = dma.hbm_to_vmem [thread:$0]  (!%p2405_p6), %s3044_s7, 2048, %s316_s25, [#allocation12], %s2324_s26, %s2324_s26, %s2325_s27  }
  0x47   : > { %345 = sbr.rel (%p2395_p4) target bundleno = 1541 (0x605), region = 56 }
  0x4c   : > { %2300 = dma.done.wait (%p2059_p3), [#allocation6], 2048  }
  0x4d   : > { %2302 = vsyncadd (%p2059_p3), [#allocation6], 4294965248 }
  0x4e   : > { %2304 = dma.done.wait (%p2059_p3), [#allocation9], 10240  }
  0x4f   : > { %2306 = vsyncadd (%p2059_p3), [#allocation9], 4294957056 }
  0x50   : > { %2308 = dma.done.wait (%p2059_p3), [#allocation12], 4096  }
  0x51   : > { %2310 = vsyncadd (%p2059_p3), [#allocation12], 4294963200  ;;  %s393_s11 = ssub.s32 1, %s2389_s10 }
  0x52   : > { %s1896_s16 = sshll.u32 %s393_s11, 2 }
  0x53   : > { %p395_p4 = scmp.lt.s32.totalorder %s1896_s16, 7  ;;  %404 = sbr.rel (%p1884_p2) target bundleno = 90 (0x5a), region = 80 }
  0x55   : > { %s3208_s16 = smov (!%p395_p4, %s1896_s16), 7 }
  0x56   : > { %s1897_s19 = sshll.u32 %s3208_s16, 3 }
  0x57   : > { %s2491_s27 = scalar_lea.vmem %s3037_s0, %s1897_s19 }
  0x58   : > { %v2328_v0 = vmov 0.0  }
  0x59   : > { %405 = vst [vmem:[#allocation3] sm:$0xff] %v2328_v0  ;;  %406 = vst [vmem:[#allocation4] sm:$0xff] %v2328_v0 }
  0x5a PF: > { %v424_v1 = vld [vmem:[#allocation5 + $0x68] sm:$0xff]  ;;  %v423_v2 = vld [vmem:[#allocation5 + $0x60] sm:$0xff]  ;;  %v426_v5 = vld [vmem:[#allocation5 + $0x78] sm:$0xff]  ;;  %v3053_v6 = vmov 0.0   ;;  %vm449_vm0 = vcmask 261120   ;;  %p1907_p2 = scmp.ne.s32.totalorder %s2389_s10, 1 }
  0x5b   : > { %v420_v3 = vld [vmem:[#allocation5 + $0x48] sm:$0xff]  ;;  %486 = vmatprep.subr.mxu0 %v424_v1  ;;  %v419_v4 = vld [vmem:[#allocation5 + $0x40] sm:$0xff]  ;;  %526 = vmatprep.mubr.f32.mxu0 %v3053_v6  ;;  %v425_v8 = vld [vmem:[#allocation5 + $0x70] sm:$0xff] }
  0x5c   : > { %487 = vmatpush1.msra.mxu0 %v423_v2  ;;  %v416_v7 = vld [vmem:[#allocation5 + $0x28] sm:$0xff]  ;;  %575 = vmatprep.subr.mxu1 %v426_v5  ;;  %v415_v9 = vld [vmem:[#allocation5 + $0x20] sm:$0xff]  ;;  %v422_v10 = vld [vmem:[#allocation5 + $0x58] sm:$0xff] }
  0x5d   : > { %488 = vmatprep.subr.mxu0 %v420_v3  ;;  %576 = vmatpush1.msra.mxu1 %v425_v8  ;;  %v421_v11 = vld [vmem:[#allocation5 + $0x50] sm:$0xff]  ;;  %v412_v12 = vld [vmem:[#allocation5 + $0x8] sm:$0xff]  ;;  %v418_v13 = vld [vmem:[#allocation5 + $0x38] sm:$0xff] }
  0x5e   : > { %489 = vmatpush1.msra.mxu0 %v419_v4  ;;  %577 = vmatprep.subr.mxu1 %v422_v10  ;;  %v411_v14 = vld [vmem:[#allocation5] sm:$0xff]  ;;  %v417_v15 = vld [vmem:[#allocation5 + $0x30] sm:$0xff]  ;;  %v414_v16 = vld [vmem:[#allocation5 + $0x18] sm:$0xff] }
  0x5f   : > { %490 = vmatprep.subr.mxu0 %v416_v7  ;;  %578 = vmatpush1.msra.mxu1 %v421_v11  ;;  %v407_v17 = vld [vmem:[%s2491_s27] sm:$0xff]  ;;  %v2497_v18 = vld [vmem:[#allocation10 + $0x1e8] sm:$0xff]  ;;  %v2499_v19 = vld [vmem:[#allocation10 + $0x1e0] sm:$0xff] }
  0x60   : > { %491 = vmatpush1.msra.mxu0 %v415_v9  ;;  %579 = vmatprep.subr.mxu1 %v418_v13  ;;  %3105 = vst [vmem:[#allocation19_spill] sm:$0xff] %v2497_v18  ;;  %v413_v20 = vld [vmem:[#allocation5 + $0x10] sm:$0xff]  ;;  %v2501_v21 = vld [vmem:[#allocation10 + $0x1c8] sm:$0xff]  ;;  %v2505_v22 = vld [vmem:[#allocation10 + $0x1c0] sm:$0xff] }
  0x61   : > { %492 = vmatprep.subr.mxu0 %v412_v12  ;;  %580 = vmatpush1.msra.mxu1 %v417_v15  ;;  %v2507_v23 = vld [vmem:[#allocation10 + $0x1f8] sm:$0xff]  ;;  %v2510_v24 = vld [vmem:[#allocation10 + $0x1a8] sm:$0xff]  ;;  %v2514_v25 = vld [vmem:[#allocation10 + $0x1a0] sm:$0xff] }
  0x62   : > { %493 = vmatpush1.msra.mxu0 %v411_v14  ;;  %581 = vmatprep.subr.mxu1 %v414_v16  ;;  %3106 = vst [vmem:[#allocation20_spill] sm:$0xff] %v2507_v23  ;;  %v2516_v26 = vld [vmem:[#allocation10 + $0x1f0] sm:$0xff]  ;;  %v2520_v27 = vld [vmem:[#allocation10 + $0x188] sm:$0xff]  ;;  %v2522_v28 = vld [vmem:[#allocation10 + $0x1d8] sm:$0xff] }
  0x63   : > { %1899 = vmatmul.mubr.msk.f32.vlgmr.msra.gmra.mxu0 %vm449_vm0, %v407_v17  ;;  %729 = vmatprep.subr.mxu0 %v2497_v18  ;;  %v2526_v29 = vld [vmem:[#allocation10 + $0x180] sm:$0xff]  ;;  %v2528_v30 = vld [vmem:[#allocation10 + $0x1d0] sm:$0xff]  ;;  %v2532_v31 = vld [vmem:[#allocation10 + $0x168] sm:$0xff] }
  0x64   : > { %730 = vmatpush1.msra.mxu0 %v2499_v19  ;;  %582 = vmatpush1.msra.mxu1 %v413_v20  ;;  %v2534_v32 = vld [vmem:[#allocation10 + $0x1b8] sm:$0xff]  ;;  %v2538_v33 = vld [vmem:[#allocation10 + $0x160] sm:$0xff]  ;;  %v2540_v34 = vld [vmem:[#allocation10 + $0x1b0] sm:$0xff] }
  0x65   : > { %731 = vmatprep.subr.mxu0 %v2501_v21  ;;  %615 = vmatprep.mubr.f32.mxu1 %v3053_v6  ;;  %v2544_v35 = vld [vmem:[#allocation10 + $0x148] sm:$0xff]  ;;  %v2546_v36 = vld [vmem:[#allocation10 + $0x198] sm:$0xff]  ;;  %v2550_v37 = vld [vmem:[#allocation10 + $0x140] sm:$0xff] }
  0x66   : > { %732 = vmatpush1.msra.mxu0 %v2505_v22  ;;  %800 = vmatprep.subr.mxu1 %v2507_v23  ;;  %v2552_v38 = vld [vmem:[#allocation10 + $0x190] sm:$0xff]  ;;  %v2556_v39 = vld [vmem:[#allocation10 + $0x128] sm:$0xff]  ;;  %v2558_v40 = vld [vmem:[#allocation10 + $0x178] sm:$0xff] }
  0x67   : > { %733 = vmatprep.subr.mxu0 %v2510_v24  ;;  %1903 = vmatmul.mubr.msk.f32.vlgmr.msra.gmra.mxu1 %vm449_vm0, %v407_v17  ;;  %v2562_v41 = vld [vmem:[#allocation10 + $0x120] sm:$0xff]  ;;  %v2564_v42 = vld [vmem:[#allocation10 + $0x170] sm:$0xff]  ;;  %v2568_v43 = vld [vmem:[#allocation10 + $0x108] sm:$0xff] }
  0x68   : > { %734 = vmatpush1.msra.mxu0 %v2514_v25  ;;  %801 = vmatpush1.msra.mxu1 %v2516_v26  ;;  %v2570_v44 = vld [vmem:[#allocation10 + $0x158] sm:$0xff]  ;;  %v2574_v45 = vld [vmem:[#allocation10 + $0x100] sm:$0xff]  ;;  %v2576_v46 = vld [vmem:[#allocation10 + $0x150] sm:$0xff] }
  0x69   : > { %735 = vmatprep.subr.mxu0 %v2520_v27  ;;  %802 = vmatprep.subr.mxu1 %v2522_v28  ;;  %v2580_v47 = vld [vmem:[#allocation10 + $0xe8] sm:$0xff]  ;;  %v2582_v48 = vld [vmem:[#allocation10 + $0x138] sm:$0xff]  ;;  %v2586_v49 = vld [vmem:[#allocation10 + $0xe0] sm:$0xff] }
  0x6a   : > { %736 = vmatpush1.msra.mxu0 %v2526_v29  ;;  %803 = vmatpush1.msra.mxu1 %v2528_v30  ;;  %v2590_v50 = vld [vmem:[#allocation10 + $0x130] sm:$0xff]  ;;  %v408_v51 = vld [vmem:[%s2491_s27 + $0x8] sm:$0xff]  ;;  %v2595_v52 = vld [vmem:[#allocation10 + $0xc8] sm:$0xff] }
  0x6b   : > { %737 = vmatprep.subr.mxu0 %v2532_v31  ;;  %804 = vmatprep.subr.mxu1 %v2534_v32  ;;  %v2597_v53 = vld [vmem:[#allocation10 + $0x118] sm:$0xff]  ;;  %v2601_v54 = vld [vmem:[#allocation10 + $0xc0] sm:$0xff]  ;;  %v2603_v55 = vld [vmem:[#allocation10 + $0x110] sm:$0xff] }
  0x6c   : > { %738 = vmatpush1.msra.mxu0 %v2538_v33  ;;  %805 = vmatpush1.msra.mxu1 %v2540_v34  ;;  %v2607_v56 = vld [vmem:[#allocation10 + $0xa8] sm:$0xff]  ;;  %v2609_v57 = vld [vmem:[#allocation10 + $0xf8] sm:$0xff]  ;;  %v2613_v58 = vld [vmem:[#allocation10 + $0xa0] sm:$0xff] }
  0x6d   : > { %739 = vmatprep.subr.mxu0 %v2544_v35  ;;  %806 = vmatprep.subr.mxu1 %v2546_v36  ;;  %3107 = vst [vmem:[#allocation21_spill] sm:$0xff] %v2613_v58  ;;  %v2617_v59 = vld [vmem:[#allocation10 + $0xf0] sm:$0xff]  ;;  %v409_v60 = vld [vmem:[%s2491_s27 + $0x10] sm:$0xff]  ;;  %v2622_v61 = vld [vmem:[#allocation10 + $0x88] sm:$0xff] }
  0x6e   : > { %740 = vmatpush1.msra.mxu0 %v2550_v37  ;;  %807 = vmatpush1.msra.mxu1 %v2552_v38  ;;  %3108 = vst [vmem:[#allocation22_spill] sm:$0xff] %v2622_v61  ;;  %v2624_v62 = vld [vmem:[#allocation10 + $0xd8] sm:$0xff]  ;;  %v2628_v63 = vld [vmem:[#allocation10 + $0x80] sm:$0xff]  ;;  %v2632_v0 = vld [vmem:[#allocation10 + $0xd0] sm:$0xff] }
  0x6f   : > { %741 = vmatprep.subr.mxu0 %v2556_v39  ;;  %808 = vmatprep.subr.mxu1 %v2558_v40  ;;  %3109 = vst [vmem:[#allocation23_spill] sm:$0xff] %v2628_v63  ;;  %v2634_v1 = vld [vmem:[#allocation10 + $0x68] sm:$0xff]  ;;  %v2638_v2 = vld [vmem:[#allocation10 + $0xb8] sm:$0xff]  ;;  %v2642_v3 = vld [vmem:[#allocation10 + $0x60] sm:$0xff] }
  0x70   : > { %742 = vmatpush1.msra.mxu0 %v2562_v41  ;;  %809 = vmatpush1.msra.mxu1 %v2564_v42  ;;  %3110 = vst [vmem:[#allocation24_spill] sm:$0xff] %v2634_v1  ;;  %3111 = vst [vmem:[#allocation25_spill] sm:$0xff] %v2642_v3  ;;  %v2646_v4 = vld [vmem:[#allocation10 + $0xb0] sm:$0xff]  ;;  %v410_v5 = vld [vmem:[%s2491_s27 + $0x18] sm:$0xff] }
  0x71   : > { %743 = vmatprep.subr.mxu0 %v2568_v43  ;;  %810 = vmatprep.subr.mxu1 %v2570_v44  ;;  %3112 = vst [vmem:[#allocation26_spill] sm:$0xff] %v2646_v4  ;;  %v2651_v7 = vld [vmem:[#allocation10 + $0x48] sm:$0xff]  ;;  %v2653_v8 = vld [vmem:[#allocation10 + $0x98] sm:$0xff]  ;;  %v2657_v9 = vld [vmem:[#allocation10 + $0x40] sm:$0xff] }
  0x72   : > { %744 = vmatpush1.msra.mxu0 %v2574_v45  ;;  %811 = vmatpush1.msra.mxu1 %v2576_v46  ;;  %3113 = vst [vmem:[#allocation27_spill] sm:$0xff] %v2651_v7  ;;  %3114 = vst [vmem:[#allocation28_spill] sm:$0xff] %v2653_v8  ;;  %v2661_v10 = vld [vmem:[#allocation10 + $0x90] sm:$0xff]  ;;  %v2663_v11 = vld [vmem:[#allocation10 + $0x28] sm:$0xff] }
  0x73   : > { %745 = vmatprep.subr.mxu0 %v2580_v47  ;;  %812 = vmatprep.subr.mxu1 %v2582_v48  ;;  %3115 = vst [vmem:[#allocation29_spill] sm:$0xff] %v2657_v9  ;;  %3116 = vst [vmem:[#allocation30_spill] sm:$0xff] %v2661_v10  ;;  %v2667_v12 = vld [vmem:[#allocation10 + $0x78] sm:$0xff]  ;;  %v2671_v13 = vld [vmem:[#allocation10 + $0x20] sm:$0xff] }
  0x74   : > { %532 = vmatprep.mubr.f32.mxu0 %v3053_v6  ;;  %746 = vmatpush1.msra.mxu0 %v2586_v49  ;;  %3117 = vst [vmem:[#allocation31_spill] sm:$0xff] %v2663_v11  ;;  %3118 = vst [vmem:[#allocation32_spill] sm:$0xff] %v2667_v12  ;;  %v2673_v14 = vld [vmem:[#allocation10 + $0x70] sm:$0xff]  ;;  %v2677_v15 = vld [vmem:[#allocation10 + $0x8] sm:$0xff] }
  0x75   : > { %813 = vmatpush1.msra.mxu1 %v2590_v50  ;;  %1900 = vmatmul.mubr.msk.f32.gmra.mxu0 %vm449_vm0, %v408_v51  ;;  %3119 = vst [vmem:[#allocation33_spill] sm:$0xff] %v2671_v13  ;;  %3120 = vst [vmem:[#allocation34_spill] sm:$0xff] %v2673_v14  ;;  %v2679_v16 = vld [vmem:[#allocation10 + $0x58] sm:$0xff]  ;;  %v2683_v17 = vld [vmem:[#allocation10] sm:$0xff] }
  0x76   : > { %747 = vmatprep.subr.mxu0 %v2595_v52  ;;  %814 = vmatprep.subr.mxu1 %v2597_v53  ;;  %3121 = vst [vmem:[#allocation35_spill] sm:$0xff] %v2677_v15  ;;  %3122 = vst [vmem:[#allocation36_spill] sm:$0xff] %v2679_v16  ;;  %v2687_v20 = vld [vmem:[#allocation10 + $0x50] sm:$0xff] }
  0x77   : > { %748 = vmatpush1.msra.mxu0 %v2601_v54  ;;  %815 = vmatpush1.msra.mxu1 %v2603_v55  ;;  %3123 = vst [vmem:[#allocation37_spill] sm:$0xff] %v2683_v17  ;;  %3124 = vst [vmem:[#allocation38_spill] sm:$0xff] %v2687_v20 }
  0x78   : > { %749 = vmatprep.subr.mxu0 %v2607_v56  ;;  %816 = vmatprep.subr.mxu1 %v2609_v57 }
  0x79   : > { %538 = vmatprep.mubr.f32.mxu0 %v3053_v6  ;;  %750 = vmatpush1.msra.mxu0 %v2613_v58 }
  0x7a   : > { %817 = vmatpush1.msra.mxu1 %v2617_v59  ;;  %1901 = vmatmul.mubr.msk.f32.gmra.mxu0 %vm449_vm0, %v409_v60 }
  0x7b   : > { %751 = vmatprep.subr.mxu0 %v2622_v61  ;;  %818 = vmatprep.subr.mxu1 %v2624_v62 }
  0x7c   : > { %621 = vmatprep.mubr.f32.mxu1 %v3053_v6  ;;  %752 = vmatpush1.msra.mxu0 %v2628_v63 }
  0x7d   : > { %819 = vmatpush1.msra.mxu1 %v2632_v0  ;;  %753 = vmatprep.subr.mxu0 %v2634_v1 }
  0x7e   : > { %1904 = vmatmul.mubr.msk.f32.gmra.mxu1 %vm449_vm0, %v408_v51  ;;  %820 = vmatprep.subr.mxu1 %v2638_v2  ;;  %v720_v51 = vld [vmem:[#allocation3] sm:$0xff] }
  0x7f   : > { %544 = vmatprep.mubr.f32.mxu0 %v3053_v6  ;;  %754 = vmatpush1.msra.mxu0 %v2642_v3 }
  0x80   : > { %821 = vmatpush1.msra.mxu1 %v2646_v4  ;;  %1902 = vmatmul.mubr.msk.f32.gmra.mxu0 %vm449_vm0, %v410_v5 }
  0x81   : > { %755 = vmatprep.subr.mxu0 %v2651_v7  ;;  %822 = vmatprep.subr.mxu1 %v2653_v8 }
  0x82   : > { %627 = vmatprep.mubr.f32.mxu1 %v3053_v6  ;;  %756 = vmatpush1.msra.mxu0 %v2657_v9 }
  0x83   : > { %823 = vmatpush1.msra.mxu1 %v2661_v10  ;;  %757 = vmatprep.subr.mxu0 %v2663_v11  ;;  %v2700_v11 = vld [vmem:[#allocation10 + $0x18] sm:$0xff] }
  0x84   : > { %1905 = vmatmul.mubr.msk.f32.gmra.mxu1 %vm449_vm0, %v409_v60  ;;  %824 = vmatprep.subr.mxu1 %v2667_v12  ;;  %v2693_v60 = vld [vmem:[#allocation10 + $0x38] sm:$0xff]  ;;  %3127 = vst [vmem:[#allocation41_spill] sm:$0xff] %v2700_v11 }
  0x85   : > { %758 = vmatpush1.msra.mxu0 %v2671_v13  ;;  %825 = vmatpush1.msra.mxu1 %v2673_v14  ;;  %3125 = vst [vmem:[#allocation39_spill] sm:$0xff] %v2693_v60  ;;  %v2697_v13 = vld [vmem:[#allocation10 + $0x30] sm:$0xff] }
  0x86   : > { %759 = vmatprep.subr.mxu0 %v2677_v15  ;;  %826 = vmatprep.subr.mxu1 %v2679_v16  ;;  %3126 = vst [vmem:[#allocation40_spill] sm:$0xff] %v2697_v13  ;;  %v2703_v15 = vld [vmem:[#allocation10 + $0x10] sm:$0xff] }
  0x87   : > { %633 = vmatprep.mubr.f32.mxu1 %v3053_v6  ;;  %760 = vmatpush1.msra.mxu0 %v2683_v17  ;;  %3128 = vst [vmem:[#allocation42_spill] sm:$0xff] %v2703_v15 }
  0x88   : > { %793 = vmatprep.mubr.f32.mxu0 %v3053_v6  ;;  %827 = vmatpush1.msra.mxu1 %v2687_v20 }
  0x89   : > { %1906 = vmatmul.mubr.msk.f32.gmra.mxu1 %vm449_vm0, %v410_v5  ;;  %794 = vmatmul.mubr.f32.vlgmr.msra.gmra.mxu0 %v720_v51  ;;  %v3129_v5 = vld [vmem:[#allocation31_spill] sm:$0xff] }
  0x8a   : > { %828 = vmatprep.subr.mxu1 %v2693_v60  ;;  %864 = vmatprep.mubr.f32.mxu1 %v3053_v6  ;;  %v3131_v6 = vld [vmem:[#allocation35_spill] sm:$0xff] }
  0x8b   : > { %829 = vmatpush1.msra.mxu1 %v2697_v13  ;;  %900 = vmatprep.subr.mxu0 %v2497_v18 }
  0x8c   : > { %830 = vmatprep.subr.mxu1 %v2700_v11  ;;  %901 = vmatpush1.msra.mxu0 %v2499_v19 }
  0x8d   : > { %831 = vmatpush1.msra.mxu1 %v2703_v15  ;;  %902 = vmatprep.subr.mxu0 %v2501_v21 }
  0x8e   : > { %865 = vmatmul.mubr.f32.vlgmr.msra.gmra.mxu1 %v720_v51  ;;  %971 = vmatprep.subr.mxu1 %v2507_v23  ;;  %v3130_v51 = vld [vmem:[#allocation33_spill] sm:$0xff] }
  0x8f   : > { %972 = vmatpush1.msra.mxu1 %v2516_v26  ;;  %903 = vmatpush1.msra.mxu0 %v2505_v22 }
  0x90   : > { %973 = vmatprep.subr.mxu1 %v2522_v28  ;;  %904 = vmatprep.subr.mxu0 %v2510_v24 }
  0x91   : > { %974 = vmatpush1.msra.mxu1 %v2528_v30  ;;  %905 = vmatpush1.msra.mxu0 %v2514_v25 }
  0x92   : > { %975 = vmatprep.subr.mxu1 %v2534_v32  ;;  %906 = vmatprep.subr.mxu0 %v2520_v27 }
  0x93   : > { %976 = vmatpush1.msra.mxu1 %v2540_v34  ;;  %907 = vmatpush1.msra.mxu0 %v2526_v29 }
  0x94   : > { %977 = vmatprep.subr.mxu1 %v2546_v36  ;;  %908 = vmatprep.subr.mxu0 %v2532_v31 }
  0x95   : > { %978 = vmatpush1.msra.mxu1 %v2552_v38  ;;  %909 = vmatpush1.msra.mxu0 %v2538_v33 }
  0x96   : > { %979 = vmatprep.subr.mxu1 %v2558_v40  ;;  %910 = vmatprep.subr.mxu0 %v2544_v35 }
  0x97   : > { %980 = vmatpush1.msra.mxu1 %v2564_v42  ;;  %911 = vmatpush1.msra.mxu0 %v2550_v37 }
  0x98   : > { %981 = vmatprep.subr.mxu1 %v2570_v44  ;;  %912 = vmatprep.subr.mxu0 %v2556_v39 }
  0x99   : > { %982 = vmatpush1.msra.mxu1 %v2576_v46  ;;  %913 = vmatpush1.msra.mxu0 %v2562_v41 }
  0x9a   : > { %983 = vmatprep.subr.mxu1 %v2582_v48  ;;  %914 = vmatprep.subr.mxu0 %v2568_v43 }
  0x9b   : > { %984 = vmatpush1.msra.mxu1 %v2590_v50  ;;  %915 = vmatpush1.msra.mxu0 %v2574_v45 }
  0x9c   : > { %985 = vmatprep.subr.mxu1 %v2597_v53  ;;  %916 = vmatprep.subr.mxu0 %v2580_v47 }
  0x9d   : > { %986 = vmatpush1.msra.mxu1 %v2603_v55  ;;  %917 = vmatpush1.msra.mxu0 %v2586_v49 }
  0x9e   : > { %987 = vmatprep.subr.mxu1 %v2609_v57  ;;  %918 = vmatprep.subr.mxu0 %v2595_v52 }
  0x9f   : > { %988 = vmatpush1.msra.mxu1 %v2617_v59  ;;  %919 = vmatpush1.msra.mxu0 %v2601_v54 }
  0xa0   : > { %989 = vmatprep.subr.mxu1 %v2624_v62  ;;  %920 = vmatprep.subr.mxu0 %v2607_v56 }
  0xa1   : > { %990 = vmatpush1.msra.mxu1 %v2632_v0  ;;  %921 = vmatpush1.msra.mxu0 %v2613_v58 }
  0xa2   : > { %991 = vmatprep.subr.mxu1 %v2638_v2  ;;  %922 = vmatprep.subr.mxu0 %v2622_v61 }
  0xa3   : > { %992 = vmatpush1.msra.mxu1 %v2646_v4  ;;  %923 = vmatpush1.msra.mxu0 %v2628_v63 }
  0xa4   : > { %993 = vmatprep.subr.mxu1 %v2653_v8  ;;  %924 = vmatprep.subr.mxu0 %v2634_v1 }
  0xa5   : > { %994 = vmatpush1.msra.mxu1 %v2661_v10  ;;  %925 = vmatpush1.msra.mxu0 %v2642_v3 }
  0xa6   : > { %995 = vmatprep.subr.mxu1 %v2667_v12  ;;  %926 = vmatprep.subr.mxu0 %v2651_v7  ;;  %v3132_v7 = vmov 0.0  }
  0xa7   : > { %996 = vmatpush1.msra.mxu1 %v2673_v14  ;;  %927 = vmatpush1.msra.mxu0 %v2657_v9 }
  0xa8   : > { %997 = vmatprep.subr.mxu1 %v2679_v16  ;;  %928 = vmatprep.subr.mxu0 %v3129_v5 }
  0xa9   : > { %998 = vmatpush1.msra.mxu1 %v2687_v20  ;;  %929 = vmatpush1.msra.mxu0 %v3130_v51  ;;  %v429_v51 = vlaneseq }
  0xaa   : > { %999 = vmatprep.subr.mxu1 %v2693_v60  ;;  %930 = vmatprep.subr.mxu0 %v3131_v6 }
  0xab   : > { %1000 = vmatpush1.msra.mxu1 %v2697_v13  ;;  %931 = vmatpush1.msra.mxu0 %v2683_v17  ;;  %v2777_v60 = vshrl.u32 %v429_v51, 7  ;;  %v427_v17 = vld [vmem:[%s3039_s2] sm:$0xf] }
  0xac   : > { %1001 = vmatprep.subr.mxu1 %v2700_v11  ;;  %964 = vmatprep.mubr.f32.mxu0 %v3132_v7 }
  0xad   : > { %1002 = vmatpush1.msra.mxu1 %v2703_v15  ;;  %1035 = vmatprep.mubr.f32.mxu1 %v3132_v7  ;;  %3133 = vst [vmem:[#allocation43_spill] sm:$0xff] %v2777_v60  ;;  %v3080_v6 = vsub.s32 0, %v2777_v60  ;;  %v435_v11 = vsub.s32 1, %v2777_v60  ;;  %v3087_v7 = vsub.s32 2, %v2777_v60 }
  0xae   : > { %1071 = vmatprep.subr.mxu0 %v2497_v18  ;;  %1142 = vmatprep.subr.mxu1 %v2507_v23  ;;  %v3090_v18 = vsub.s32 3, %v2777_v60 }
  0xaf   : > { %v432_v15 = vrot.slane %v427_v17, %v3080_v6  ;;  %v436_v13 = vrot.slane %v427_v17, %v435_v11  ;;  %v440_v51 = vrot.slane %v427_v17, %v3087_v7 }
  0xb0   : > { %v444_v16 = vrot.slane %v427_v17, %v3090_v18 }
 0x123   : > { %v528_v23 = vpop.f32.mrf.mxu0 }
 0x124   : > { %v2788_v5 = vadd.f32 %v528_v23, %v432_v15 }
 0x125   : > { %v530_v20 = vpop.f32.mrf.mxu0 }
 0x126   : > { %3134 = vst [vmem:[#allocation44_spill] sm:$0xff] %v2788_v5  ;;  %v2792_v9 = vadd.f32 %v530_v20, %v436_v13 }
 0x127   : > { %v617_v14 = vpop.f32.mrf.mxu1 }
 0x128   : > { %3135 = vst [vmem:[#allocation45_spill] sm:$0xff] %v2792_v9  ;;  %v2796_v3 = vadd.f32 %v617_v14, %v440_v51 }
 0x129   : > { %v619_v6 = vpop.f32.mrf.mxu1 }
 0x12a   : > { %3136 = vst [vmem:[#allocation46_spill] sm:$0xff] %v2796_v3  ;;  %v2798_v12 = vadd.f32 %v619_v6, %v444_v16 }
 0x12c   : > { %3137 = vst [vmem:[#allocation47_spill] sm:$0xff] %v2798_v12 }
 0x135   : > { %v534_v11 = vpop.f32.mrf.mxu0 }
 0x136   : > { %v2800_v1 = vadd.f32 %v534_v11, %v432_v15 }
 0x137   : > { %v536_v23 = vpop.f32.mrf.mxu0 }
 0x138   : > { %3138 = vst [vmem:[#allocation48_spill] sm:$0xff] %v2800_v1  ;;  %v2802_v5 = vadd.f32 %v536_v23, %v436_v13 }
 0x13a   : > { %3139 = vst [vmem:[#allocation49_spill] sm:$0xff] %v2802_v5  ;;  %v540_v10 = vpop.f32.mrf.mxu0 }
 0x13b   : > { %v2804_v7 = vadd.f32 %v540_v10, %v432_v15 }
 0x13c   : > { %v542_v20 = vpop.f32.mrf.mxu0 }
 0x13d   : > { %3140 = vst [vmem:[#allocation50_spill] sm:$0xff] %v2804_v7  ;;  %v2806_v9 = vadd.f32 %v542_v20, %v436_v13 }
 0x13e   : > { %v623_v60 = vpop.f32.mrf.mxu1 }
 0x13f   : > { %3141 = vst [vmem:[#allocation51_spill] sm:$0xff] %v2806_v9  ;;  %v2808_v17 = vadd.f32 %v623_v60, %v440_v51 }
 0x140   : > { %v625_v14 = vpop.f32.mrf.mxu1  ;;  %v546_v6 = vpop.f32.mrf.mxu0 }
 0x141   : > { %3142 = vst [vmem:[#allocation52_spill] sm:$0xff] %v2808_v17  ;;  %v2810_v18 = vadd.f32 %v625_v14, %v444_v16  ;;  %v547_v5 = vadd.f32 %v546_v6, %v432_v15 }
 0x142   : > { %v548_v1 = vpop.f32.mrf.mxu0 }
 0x143   : > { %3143 = vst [vmem:[#allocation53_spill] sm:$0xff] %v2810_v18  ;;  %v549_v63 = vadd.f32 %v548_v1, %v436_v13 }
 0x144   : > { %v629_v12 = vpop.f32.mrf.mxu1 }
 0x145   : > { %v2812_v3 = vadd.f32 %v629_v12, %v440_v51 }
 0x146   : > { %v631_v11 = vpop.f32.mrf.mxu1 }
 0x147   : > { %3144 = vst [vmem:[#allocation54_spill] sm:$0xff] %v2812_v3  ;;  %v2814_v23 = vadd.f32 %v631_v11, %v444_v16 }
 0x149   : > { %3145 = vst [vmem:[#allocation55_spill] sm:$0xff] %v2814_v23  ;;  %v635_v10 = vpop.f32.mrf.mxu1  ;;  %v795_v7 = vpop.f32.mrf.mxu0 }
 0x14a   : > { %v871_v20 = vadd.f32 %v795_v7, %v547_v5  ;;  %v636_v9 = vadd.f32 %v635_v10, %v440_v51  ;;  %v721_v5 = vld [vmem:[#allocation4] sm:$0xff]  ;;  %v3149_v10 = vld [vmem:[#allocation28_spill] sm:$0xff] }
 0x14b   : > { %v637_v8 = vpop.f32.mrf.mxu1  ;;  %v797_v60 = vpop.f32.mrf.mxu0 }
 0x14c   : > { %v875_v17 = vmul.f32 0.5, %v871_v20  ;;  %v872_v61 = vadd.f32 %v797_v60, %v549_v63  ;;  %v638_v12 = vadd.f32 %v637_v8, %v444_v16  ;;  %v3147_v16 = vld [vmem:[#allocation26_spill] sm:$0xff]  ;;  %v3150_v20 = vld [vmem:[#allocation23_spill] sm:$0xff] }
 0x14d   : > { %v3151_v60 = vld [vmem:[#allocation30_spill] sm:$0xff] }
 0x14e   : > { %2093 = vtanh.f32 %v875_v17  ;;  %v879_v14 = vmul.f32 0.5, %v872_v61  ;;  %v866_v18 = vpop.f32.mrf.mxu1 }
 0x14f   : > { %v873_v4 = vadd.f32 %v866_v18, %v636_v9 }
 0x150   : > { %2095 = vtanh.f32 %v879_v14  ;;  %v868_v3 = vpop.f32.mrf.mxu1  ;;  %v3152_v14 = vld [vmem:[#allocation24_spill] sm:$0xff] }
 0x151   : > { %2097 = vtanh.f32 %v873_v4  ;;  %v874_v11 = vadd.f32 %v868_v3, %v638_v12  ;;  %v3153_v12 = vld [vmem:[#allocation32_spill] sm:$0xff] }
 0x153   : > { %v884_v23 = vmul.f32 0.5, %v874_v11  ;;  %v3154_v11 = vld [vmem:[#allocation25_spill] sm:$0xff] }
 0x155   : > { %2099 = vtanh.f32 %v884_v23  ;;  %v3148_v23 = vld [vmem:[#allocation22_spill] sm:$0xff] }
 0x15b   : > { %v2094_v15 = vpop.eup %2093 }
 0x15c   : > { %v877_v6 = vmul.f32 0.5, %v2094_v15  ;;  %v3155_v15 = vld [vmem:[#allocation34_spill] sm:$0xff] }
 0x15d   : > { %v2096_v58 = vpop.eup %2095 }
 0x15e   : > { %v878_v1 = vadd.f32 0.5, %v877_v6  ;;  %v881_v7 = vmul.f32 0.5, %v2096_v58  ;;  %v2098_v13 = vpop.eup %2097  ;;  %v3146_v58 = vld [vmem:[#allocation21_spill] sm:$0xff]  ;;  %v3156_v6 = vld [vmem:[#allocation27_spill] sm:$0xff] }
 0x160   : > { %v882_v51 = vadd.f32 0.5, %v881_v7  ;;  %v889_v17 = vmul.f32 %v2098_v13, %v878_v1  ;;  %v3157_v1 = vld [vmem:[#allocation36_spill] sm:$0xff]  ;;  %v3158_v7 = vld [vmem:[#allocation29_spill] sm:$0xff]  ;;  %v3159_v13 = vld [vmem:[#allocation38_spill] sm:$0xff] }
 0x162   : > { %v888_v63 = vmul.f32 %v882_v51, %v721_v5  ;;  %v2100_v18 = vpop.eup %2099  ;;  %v3160_v5 = vld [vmem:[#allocation31_spill] sm:$0xff] }
 0x163   : > { %v886_v4 = vmul.f32 0.5, %v2100_v18  ;;  %v3161_v51 = vld [vmem:[#allocation39_spill] sm:$0xff] }
 0x164   : > { %v2816_v61 = vadd.f32 %v889_v17, %v888_v63  ;;  %v3162_v63 = vld [vmem:[#allocation33_spill] sm:$0xff]  ;;  %v3163_v17 = vld [vmem:[#allocation40_spill] sm:$0xff]  ;;  %v3164_v18 = vld [vmem:[#allocation35_spill] sm:$0xff] }
 0x165   : > { %v887_v8 = vadd.f32 0.5, %v886_v4  ;;  %v3165_v4 = vld [vmem:[#allocation41_spill] sm:$0xff] }
 0x166   : > { %2101 = vtanh.f32 %v2816_v61 }
 0x173   : > { %v2102_v3 = vpop.eup %2101 }
 0x174   : > { %v892_v9 = vmul.f32 %v2102_v3, %v887_v8  ;;  %v3166_v8 = vld [vmem:[#allocation37_spill] sm:$0xff]  ;;  %v3167_v3 = vmov 0.0  }
 0x176   : > { %965 = vmatmul.mubr.f32.vlgmr.msra.gmra.mxu0 %v892_v9  ;;  %1036 = vmatmul.mubr.f32.vlgmr.msra.gmra.mxu1 %v892_v9  ;;  %v3168_v9 = vld [vmem:[#allocation42_spill] sm:$0xff] }
 0x177   : > { %1072 = vmatpush1.msra.mxu0 %v2499_v19  ;;  %1143 = vmatpush1.msra.mxu1 %v2516_v26 }
 0x178   : > { %1073 = vmatprep.subr.mxu0 %v2501_v21  ;;  %1144 = vmatprep.subr.mxu1 %v2522_v28 }
 0x179   : > { %1074 = vmatpush1.msra.mxu0 %v2505_v22  ;;  %1145 = vmatpush1.msra.mxu1 %v2528_v30 }
 0x17a   : > { %1075 = vmatprep.subr.mxu0 %v2510_v24  ;;  %1146 = vmatprep.subr.mxu1 %v2534_v32 }
 0x17b   : > { %1076 = vmatpush1.msra.mxu0 %v2514_v25  ;;  %1147 = vmatpush1.msra.mxu1 %v2540_v34 }
 0x17c   : > { %1077 = vmatprep.subr.mxu0 %v2520_v27  ;;  %1148 = vmatprep.subr.mxu1 %v2546_v36 }
 0x17d   : > { %1078 = vmatpush1.msra.mxu0 %v2526_v29  ;;  %1149 = vmatpush1.msra.mxu1 %v2552_v38 }
 0x17e   : > { %1079 = vmatprep.subr.mxu0 %v2532_v31  ;;  %1150 = vmatprep.subr.mxu1 %v2558_v40 }
 0x17f   : > { %1080 = vmatpush1.msra.mxu0 %v2538_v33  ;;  %1151 = vmatpush1.msra.mxu1 %v2564_v42 }
 0x180   : > { %1081 = vmatprep.subr.mxu0 %v2544_v35  ;;  %1152 = vmatprep.subr.mxu1 %v2570_v44 }
 0x181   : > { %1082 = vmatpush1.msra.mxu0 %v2550_v37  ;;  %1153 = vmatpush1.msra.mxu1 %v2576_v46 }
 0x182   : > { %1083 = vmatprep.subr.mxu0 %v2556_v39  ;;  %1154 = vmatprep.subr.mxu1 %v2582_v48 }
 0x183   : > { %1084 = vmatpush1.msra.mxu0 %v2562_v41  ;;  %1155 = vmatpush1.msra.mxu1 %v2590_v50 }
 0x184   : > { %1085 = vmatprep.subr.mxu0 %v2568_v43  ;;  %1156 = vmatprep.subr.mxu1 %v2597_v53 }
 0x185   : > { %1086 = vmatpush1.msra.mxu0 %v2574_v45  ;;  %1157 = vmatpush1.msra.mxu1 %v2603_v55 }
 0x186   : > { %1087 = vmatprep.subr.mxu0 %v2580_v47  ;;  %1158 = vmatprep.subr.mxu1 %v2609_v57 }
 0x187   : > { %1088 = vmatpush1.msra.mxu0 %v2586_v49  ;;  %1159 = vmatpush1.msra.mxu1 %v2617_v59 }
 0x188   : > { %1089 = vmatprep.subr.mxu0 %v2595_v52  ;;  %1160 = vmatprep.subr.mxu1 %v2624_v62 }
 0x189   : > { %1090 = vmatpush1.msra.mxu0 %v2601_v54  ;;  %1161 = vmatpush1.msra.mxu1 %v2632_v0 }
 0x18a   : > { %1091 = vmatprep.subr.mxu0 %v2607_v56  ;;  %1162 = vmatprep.subr.mxu1 %v2638_v2 }
 0x18b   : > { %1092 = vmatpush1.msra.mxu0 %v3146_v58  ;;  %1163 = vmatpush1.msra.mxu1 %v3147_v16 }
 0x18c   : > { %1093 = vmatprep.subr.mxu0 %v3148_v23  ;;  %1164 = vmatprep.subr.mxu1 %v3149_v10 }
 0x18d   : > { %1094 = vmatpush1.msra.mxu0 %v3150_v20  ;;  %1165 = vmatpush1.msra.mxu1 %v3151_v60 }
 0x18e   : > { %1095 = vmatprep.subr.mxu0 %v3152_v14  ;;  %1166 = vmatprep.subr.mxu1 %v3153_v12 }
 0x18f   : > { %1096 = vmatpush1.msra.mxu0 %v3154_v11  ;;  %1167 = vmatpush1.msra.mxu1 %v3155_v15 }
 0x190   : > { %1097 = vmatprep.subr.mxu0 %v3156_v6  ;;  %1168 = vmatprep.subr.mxu1 %v3157_v1  ;;  %v3172_v6 = vld [vmem:[#allocation51_spill] sm:$0xff] }
 0x191   : > { %1098 = vmatpush1.msra.mxu0 %v3158_v7  ;;  %1169 = vmatpush1.msra.mxu1 %v3159_v13  ;;  %v3169_v13 = vld [vmem:[#allocation19_spill] sm:$0xff] }
 0x192   : > { %1099 = vmatprep.subr.mxu0 %v3160_v5  ;;  %1170 = vmatprep.subr.mxu1 %v3161_v51  ;;  %v3170_v5 = vld [vmem:[#allocation20_spill] sm:$0xff] }
 0x193   : > { %1100 = vmatpush1.msra.mxu0 %v3162_v63  ;;  %1171 = vmatpush1.msra.mxu1 %v3163_v17  ;;  %v3171_v63 = vld [vmem:[#allocation50_spill] sm:$0xff] }
 0x194   : > { %1101 = vmatprep.subr.mxu0 %v3164_v18  ;;  %1172 = vmatprep.subr.mxu1 %v3165_v4 }
 0x195   : > { %1102 = vmatpush1.msra.mxu0 %v3166_v8  ;;  %1135 = vmatprep.mubr.f32.mxu0 %v3167_v3  ;;  %v3173_v8 = vld [vmem:[#allocation54_spill] sm:$0xff] }
 0x196   : > { %1173 = vmatpush1.msra.mxu1 %v3168_v9  ;;  %1206 = vmatprep.mubr.f32.mxu1 %v3167_v3  ;;  %v3174_v3 = vld [vmem:[#allocation55_spill] sm:$0xff] }
 0x197   : > { %1242 = vmatprep.subr.mxu0 %v3169_v13  ;;  %1313 = vmatprep.subr.mxu1 %v3170_v5 }
 0x236   : > { %v966_v51 = vpop.f32.mrf.mxu0  ;;  %v1037_v17 = vpop.f32.mrf.mxu1 }
 0x237   : > { %v1042_v7 = vadd.f32 %v966_v51, %v3171_v63  ;;  %v1044_v15 = vadd.f32 %v1037_v17, %v3173_v8 }
 0x238   : > { %v968_v1 = vpop.f32.mrf.mxu0  ;;  %v1039_v9 = vpop.f32.mrf.mxu1 }
 0x239   : > { %v1046_v18 = vmul.f32 0.5, %v1042_v7  ;;  %v1043_v4 = vadd.f32 %v968_v1, %v3172_v6  ;;  %v1045_v12 = vadd.f32 %v1039_v9, %v3174_v3  ;;  %v3199_v9 = vld [vmem:[#allocation44_spill] sm:$0xff] }
 0x23b   : > { %2103 = vtanh.f32 %v1046_v18  ;;  %v1050_v11 = vmul.f32 0.5, %v1043_v4  ;;  %v1055_v13 = vmul.f32 0.5, %v1045_v12 }
 0x23d   : > { %2105 = vtanh.f32 %v1050_v11 }
 0x23e   : > { %2107 = vtanh.f32 %v1044_v15 }
 0x23f   : > { %2109 = vtanh.f32 %v1055_v13 }
 0x248   : > { %v2104_v14 = vpop.eup %2103 }
 0x249   : > { %v1048_v5 = vmul.f32 0.5, %v2104_v14 }
 0x24a   : > { %v2106_v60 = vpop.eup %2105 }
 0x24b   : > { %v1049_v20 = vadd.f32 0.5, %v1048_v5  ;;  %v1052_v51 = vmul.f32 0.5, %v2106_v60  ;;  %v2108_v63 = vpop.eup %2107 }
 0x24c   : > { %v2110_v11 = vpop.eup %2109 }
 0x24d   : > { %v1053_v7 = vadd.f32 0.5, %v1052_v51  ;;  %v1060_v10 = vmul.f32 %v2108_v63, %v1049_v20  ;;  %v1057_v15 = vmul.f32 0.5, %v2110_v11  ;;  %v3201_v11 = vld [vmem:[#allocation46_spill] sm:$0xff] }
 0x24f   : > { %v1059_v6 = vmul.f32 %v1053_v7, %v2816_v61  ;;  %v1058_v17 = vadd.f32 0.5, %v1057_v15  ;;  %v3200_v7 = vld [vmem:[#allocation45_spill] sm:$0xff] }
 0x251   : > { %v2890_v1 = vadd.f32 %v1060_v10, %v1059_v6 }
 0x253   : > { %2111 = vtanh.f32 %v2890_v1 }
 0x260   : > { %v2112_v18 = vpop.eup %2111 }
 0x261   : > { %v1063_v12 = vmul.f32 %v2112_v18, %v1058_v17  ;;  %v3202_v18 = vld [vmem:[#allocation47_spill] sm:$0xff] }
 0x263   : > { %1136 = vmatmul.mubr.f32.vlgmr.msra.gmra.mxu0 %v1063_v12  ;;  %1207 = vmatmul.mubr.f32.vlgmr.msra.gmra.mxu1 %v1063_v12 }
 0x264   : > { %1243 = vmatpush1.msra.mxu0 %v2499_v19  ;;  %1314 = vmatpush1.msra.mxu1 %v2516_v26  ;;  %v3175_v19 = vld [vmem:[#allocation28_spill] sm:$0xff]  ;;  %v3180_v26 = vld [vmem:[#allocation25_spill] sm:$0xff] }
 0x265   : > { %1244 = vmatprep.subr.mxu0 %v2501_v21  ;;  %1315 = vmatprep.subr.mxu1 %v2522_v28  ;;  %v3176_v21 = vld [vmem:[#allocation23_spill] sm:$0xff] }
 0x266   : > { %1245 = vmatpush1.msra.mxu0 %v2505_v22  ;;  %1316 = vmatpush1.msra.mxu1 %v2528_v30  ;;  %v3177_v22 = vld [vmem:[#allocation30_spill] sm:$0xff]  ;;  %v3182_v28 = vld [vmem:[#allocation27_spill] sm:$0xff]  ;;  %v3184_v30 = vld [vmem:[#allocation29_spill] sm:$0xff] }
 0x267   : > { %1246 = vmatprep.subr.mxu0 %v2510_v24  ;;  %1317 = vmatprep.subr.mxu1 %v2534_v32  ;;  %v3178_v24 = vld [vmem:[#allocation24_spill] sm:$0xff]  ;;  %v3186_v32 = vld [vmem:[#allocation31_spill] sm:$0xff] }
 0x268   : > { %1247 = vmatpush1.msra.mxu0 %v2514_v25  ;;  %1318 = vmatpush1.msra.mxu1 %v2540_v34  ;;  %v3179_v25 = vld [vmem:[#allocation32_spill] sm:$0xff]  ;;  %v3188_v34 = vld [vmem:[#allocation33_spill] sm:$0xff] }
 0x269   : > { %1248 = vmatprep.subr.mxu0 %v2520_v27  ;;  %1319 = vmatprep.subr.mxu1 %v2546_v36  ;;  %v3181_v27 = vld [vmem:[#allocation34_spill] sm:$0xff]  ;;  %v3190_v36 = vld [vmem:[#allocation35_spill] sm:$0xff] }
 0x26a   : > { %1249 = vmatpush1.msra.mxu0 %v2526_v29  ;;  %1320 = vmatpush1.msra.mxu1 %v2552_v38  ;;  %v3183_v29 = vld [vmem:[#allocation36_spill] sm:$0xff]  ;;  %v3192_v38 = vld [vmem:[#allocation37_spill] sm:$0xff] }
 0x26b   : > { %1250 = vmatprep.subr.mxu0 %v2532_v31  ;;  %1321 = vmatprep.subr.mxu1 %v2558_v40  ;;  %v3185_v31 = vld [vmem:[#allocation38_spill] sm:$0xff] }
 0x26c   : > { %1251 = vmatpush1.msra.mxu0 %v2538_v33  ;;  %1322 = vmatpush1.msra.mxu1 %v2564_v42  ;;  %v3187_v33 = vld [vmem:[#allocation39_spill] sm:$0xff]  ;;  %v3194_v40 = vld [vmem:[#allocation42_spill] sm:$0xff]  ;;  %v3195_v42 = vld [vmem:[#allocation48_spill] sm:$0xff] }
 0x26d   : > { %1252 = vmatprep.subr.mxu0 %v2544_v35  ;;  %1323 = vmatprep.subr.mxu1 %v2570_v44  ;;  %v3189_v35 = vld [vmem:[#allocation40_spill] sm:$0xff] }
 0x26e   : > { %1253 = vmatpush1.msra.mxu0 %v2550_v37  ;;  %1324 = vmatpush1.msra.mxu1 %v2576_v46  ;;  %v3191_v37 = vld [vmem:[#allocation41_spill] sm:$0xff] }
 0x26f   : > { %1254 = vmatprep.subr.mxu0 %v2556_v39  ;;  %1325 = vmatprep.subr.mxu1 %v2582_v48  ;;  %v3193_v39 = vmov 0.0  }
 0x270   : > { %1255 = vmatpush1.msra.mxu0 %v2562_v41  ;;  %1326 = vmatpush1.msra.mxu1 %v2590_v50 }
 0x271   : > { %1256 = vmatprep.subr.mxu0 %v2568_v43  ;;  %1327 = vmatprep.subr.mxu1 %v2597_v53 }
 0x272   : > { %1257 = vmatpush1.msra.mxu0 %v2574_v45  ;;  %1328 = vmatpush1.msra.mxu1 %v2603_v55 }
 0x273   : > { %1258 = vmatprep.subr.mxu0 %v2580_v47  ;;  %1329 = vmatprep.subr.mxu1 %v2609_v57  ;;  %v3196_v47 = vld [vmem:[#allocation49_spill] sm:$0xff] }
 0x274   : > { %1259 = vmatpush1.msra.mxu0 %v2586_v49  ;;  %1330 = vmatpush1.msra.mxu1 %v2617_v59  ;;  %v3197_v49 = vld [vmem:[#allocation52_spill] sm:$0xff] }
 0x275   : > { %1260 = vmatprep.subr.mxu0 %v2595_v52  ;;  %1331 = vmatprep.subr.mxu1 %v2624_v62 }
 0x276   : > { %1261 = vmatpush1.msra.mxu0 %v2601_v54  ;;  %1332 = vmatpush1.msra.mxu1 %v2632_v0  ;;  %v3198_v54 = vld [vmem:[#allocation53_spill] sm:$0xff] }
 0x277   : > { %1262 = vmatprep.subr.mxu0 %v2607_v56  ;;  %1333 = vmatprep.subr.mxu1 %v2638_v2 }
 0x278   : > { %1263 = vmatpush1.msra.mxu0 %v3146_v58  ;;  %1334 = vmatpush1.msra.mxu1 %v3147_v16 }
 0x279   : > { %1264 = vmatprep.subr.mxu0 %v3148_v23  ;;  %1335 = vmatprep.subr.mxu1 %v3175_v19 }
 0x27a   : > { %1265 = vmatpush1.msra.mxu0 %v3176_v21  ;;  %1336 = vmatpush1.msra.mxu1 %v3177_v22 }
 0x27b   : > { %1266 = vmatprep.subr.mxu0 %v3178_v24  ;;  %1337 = vmatprep.subr.mxu1 %v3179_v25 }
 0x27c   : > { %1267 = vmatpush1.msra.mxu0 %v3180_v26  ;;  %1338 = vmatpush1.msra.mxu1 %v3181_v27 }
 0x27d   : > { %1268 = vmatprep.subr.mxu0 %v3182_v28  ;;  %1339 = vmatprep.subr.mxu1 %v3183_v29 }
 0x27e   : > { %1269 = vmatpush1.msra.mxu0 %v3184_v30  ;;  %1340 = vmatpush1.msra.mxu1 %v3185_v31 }
 0x27f   : > { %1270 = vmatprep.subr.mxu0 %v3186_v32  ;;  %1341 = vmatprep.subr.mxu1 %v3187_v33 }
 0x280   : > { %1271 = vmatpush1.msra.mxu0 %v3188_v34  ;;  %1342 = vmatpush1.msra.mxu1 %v3189_v35 }
 0x281   : > { %1272 = vmatprep.subr.mxu0 %v3190_v36  ;;  %1343 = vmatprep.subr.mxu1 %v3191_v37 }
 0x282   : > { %1273 = vmatpush1.msra.mxu0 %v3192_v38  ;;  %1306 = vmatprep.mubr.f32.mxu0 %v3193_v39 }
 0x283   : > { %1344 = vmatpush1.msra.mxu1 %v3194_v40  ;;  %1377 = vmatprep.mubr.f32.mxu1 %v3193_v39 }
 0x323   : > { %v1137_v41 = vpop.f32.mrf.mxu0  ;;  %v1208_v44 = vpop.f32.mrf.mxu1 }
 0x324   : > { %v1213_v43 = vadd.f32 %v1137_v41, %v3195_v42  ;;  %v1215_v50 = vadd.f32 %v1208_v44, %v3197_v49 }
 0x325   : > { %v1139_v45 = vpop.f32.mrf.mxu0  ;;  %v1210_v53 = vpop.f32.mrf.mxu1 }
 0x326   : > { %v1217_v46 = vmul.f32 0.5, %v1213_v43  ;;  %v1214_v48 = vadd.f32 %v1139_v45, %v3196_v47  ;;  %v1216_v55 = vadd.f32 %v1210_v53, %v3198_v54 }
 0x328   : > { %2113 = vtanh.f32 %v1217_v46  ;;  %v1221_v52 = vmul.f32 0.5, %v1214_v48  ;;  %v1226_v56 = vmul.f32 0.5, %v1216_v55 }
 0x32a   : > { %2115 = vtanh.f32 %v1221_v52 }
 0x32b   : > { %2117 = vtanh.f32 %v1215_v50 }
 0x32c   : > { %2119 = vtanh.f32 %v1226_v56 }
 0x335   : > { %v2114_v57 = vpop.eup %2113 }
 0x336   : > { %v1219_v59 = vmul.f32 0.5, %v2114_v57 }
 0x337   : > { %v2116_v62 = vpop.eup %2115 }
 0x338   : > { %v1220_v0 = vadd.f32 0.5, %v1219_v59  ;;  %v1223_v2 = vmul.f32 0.5, %v2116_v62  ;;  %v2118_v61 = vpop.eup %2117 }
 0x339   : > { %v2120_v20 = vpop.eup %2119 }
 0x33a   : > { %v1224_v58 = vadd.f32 0.5, %v1223_v2  ;;  %v1231_v16 = vmul.f32 %v2118_v61, %v1220_v0  ;;  %v1228_v60 = vmul.f32 0.5, %v2120_v20 }
 0x33c   : > { %v1230_v23 = vmul.f32 %v1224_v58, %v2890_v1  ;;  %v1229_v14 = vadd.f32 0.5, %v1228_v60 }
 0x33e   : > { %v1232_v10 = vadd.f32 %v1231_v16, %v1230_v23 }
 0x340   : > { %2121 = vtanh.f32 %v1232_v10 }
 0x34d   : > { %v2122_v4 = vpop.eup %2121 }
 0x34e   : > { %v1234_v8 = vmul.f32 %v2122_v4, %v1229_v14 }
 0x350   : > { %1307 = vmatmul.mubr.f32.vlgmr.msra.gmra.mxu0 %v1234_v8  ;;  %1378 = vmatmul.mubr.f32.vlgmr.msra.gmra.mxu1 %v1234_v8 }
 0x410   : > { %v1308_v3 = vpop.f32.mrf.mxu0  ;;  %v1379_v5 = vpop.f32.mrf.mxu1 }
 0x411   : > { %v1384_v13 = vadd.f32 %v1308_v3, %v3199_v9  ;;  %v1386_v1 = vadd.f32 %v1379_v5, %v3201_v11 }
 0x412   : > { %v1310_v51 = vpop.f32.mrf.mxu0  ;;  %v1381_v17 = vpop.f32.mrf.mxu1 }
 0x413   : > { %v1388_v63 = vmul.f32 0.5, %v1384_v13  ;;  %v1385_v6 = vadd.f32 %v1310_v51, %v3200_v7  ;;  %v1387_v12 = vadd.f32 %v1381_v17, %v3202_v18 }
 0x415   : > { %2123 = vtanh.f32 %v1388_v63  ;;  %v1392_v15 = vmul.f32 0.5, %v1385_v6  ;;  %v1397_v19 = vmul.f32 0.5, %v1387_v12 }
 0x417   : > { %2125 = vtanh.f32 %v1392_v15 }
 0x418   : > { %2127 = vtanh.f32 %v1386_v1 }
 0x419   : > { %2129 = vtanh.f32 %v1397_v19 }
 0x422   : > { %v2124_v21 = vpop.eup %2123 }
 0x423   : > { %v1390_v22 = vmul.f32 0.5, %v2124_v21 }
 0x424   : > { %v2126_v24 = vpop.eup %2125 }
 0x425   : > { %v1391_v25 = vadd.f32 0.5, %v1390_v22  ;;  %v1394_v26 = vmul.f32 0.5, %v2126_v24  ;;  %v2128_v27 = vpop.eup %2127 }
 0x426   : > { %v2130_v32 = vpop.eup %2129 }
 0x427   : > { %v1395_v28 = vadd.f32 0.5, %v1394_v26  ;;  %v1402_v29 = vmul.f32 %v2128_v27, %v1391_v25  ;;  %v1399_v33 = vmul.f32 0.5, %v2130_v32 }
 0x429   : > { %v1401_v30 = vmul.f32 %v1395_v28, %v1232_v10  ;;  %v1400_v34 = vadd.f32 0.5, %v1399_v33 }
 0x42b   : > { %v1403_v31 = vadd.f32 %v1402_v29, %v1401_v30 }
 0x42d   : > { %2131 = vtanh.f32 %v1403_v31  ;;  %1407 = vst [vmem:[#allocation4] sm:$0xff] %v1403_v31 }
 0x439   : > { %1411 = sbr.rel (%p1907_p2) target bundleno = 1526 (0x5f6), region = 84 }
 0x43a   : > { %v2132_v35 = vpop.eup %2131 }
 0x43b   : > { %v2966_v36 = vmul.f32 %v2132_v35, %v1400_v34 }
 0x43d   : > { %1406 = vst [vmem:[#allocation3] sm:$0xff] %v2966_v36 }
 0x43e   : > { %v1426_v37 = vld [vmem:[#allocation8 + $0x68] sm:$0xff]  ;;  %v1425_v38 = vld [vmem:[#allocation8 + $0x60] sm:$0xff]  ;;  %v1428_v41 = vld [vmem:[#allocation8 + $0x78] sm:$0xff]  ;;  %v2330_v42 = vmov 0.0   ;;  %vm2331_vm1 = vmmov 0  }
 0x43f   : > { %v1422_v39 = vld [vmem:[#allocation8 + $0x48] sm:$0xff]  ;;  %1473 = vmatprep.subr.mxu0 %v1426_v37  ;;  %v1421_v40 = vld [vmem:[#allocation8 + $0x40] sm:$0xff]  ;;  %1513 = vmatprep.mubr.f32.mxu0 %v2330_v42  ;;  %v1427_v44 = vld [vmem:[#allocation8 + $0x70] sm:$0xff] }
 0x440   : > { %1474 = vmatpush1.msra.mxu0 %v1425_v38  ;;  %v1418_v43 = vld [vmem:[#allocation8 + $0x28] sm:$0xff]  ;;  %1543 = vmatprep.subr.mxu1 %v1428_v41  ;;  %v1417_v45 = vld [vmem:[#allocation8 + $0x20] sm:$0xff]  ;;  %v1424_v46 = vld [vmem:[#allocation8 + $0x58] sm:$0xff] }
 0x441   : > { %1475 = vmatprep.subr.mxu0 %v1422_v39  ;;  %1544 = vmatpush1.msra.mxu1 %v1427_v44  ;;  %v1423_v47 = vld [vmem:[#allocation8 + $0x50] sm:$0xff]  ;;  %v1414_v48 = vld [vmem:[#allocation8 + $0x8] sm:$0xff]  ;;  %v1420_v49 = vld [vmem:[#allocation8 + $0x38] sm:$0xff] }
 0x442   : > { %1476 = vmatpush1.msra.mxu0 %v1421_v40  ;;  %1545 = vmatprep.subr.mxu1 %v1424_v46  ;;  %v1419_v50 = vld [vmem:[#allocation8 + $0x30] sm:$0xff]  ;;  %v1413_v52 = vld [vmem:[#allocation8] sm:$0xff]  ;;  %v1416_v53 = vld [vmem:[#allocation8 + $0x18] sm:$0xff] }
 0x443   : > { %1477 = vmatprep.subr.mxu0 %v1418_v43  ;;  %1546 = vmatpush1.msra.mxu1 %v1423_v47  ;;  %v1412_v54 = vld [vmem:[%s2491_s27] sm:$0xff]  ;;  %v1633_v56 = vld [vmem:[#allocation13 + $0x78] sm:$0xff]  ;;  %v1631_v62 = vld [vmem:[#allocation13 + $0x68] sm:$0xff] }
 0x444   : > { %1478 = vmatpush1.msra.mxu0 %v1417_v45  ;;  %1547 = vmatprep.subr.mxu1 %v1420_v49  ;;  %v1415_v55 = vld [vmem:[#allocation8 + $0x10] sm:$0xff]  ;;  %v1617_v59 = vld [vmem:[#allocation11 + $0x78] sm:$0xff]  ;;  %v1630_v2 = vld [vmem:[#allocation13 + $0x60] sm:$0xff] }
 0x445   : > { %1479 = vmatprep.subr.mxu0 %v1414_v48  ;;  %1548 = vmatpush1.msra.mxu1 %v1419_v50  ;;  %v1632_v57 = vld [vmem:[#allocation13 + $0x70] sm:$0xff]  ;;  %v1615_v61 = vld [vmem:[#allocation11 + $0x68] sm:$0xff]  ;;  %v1629_v58 = vld [vmem:[#allocation13 + $0x58] sm:$0xff] }
 0x446   : > { %1480 = vmatpush1.msra.mxu0 %v1413_v52  ;;  %1549 = vmatprep.subr.mxu1 %v1416_v53  ;;  %v1616_v0 = vld [vmem:[#allocation11 + $0x70] sm:$0xff]  ;;  %v1614_v16 = vld [vmem:[#allocation11 + $0x60] sm:$0xff]  ;;  %v1613_v10 = vld [vmem:[#allocation11 + $0x58] sm:$0xff] }
 0x447   : > { %1908 = vmatmul.mubr.msk.f32.vlgmr.msra.gmra.mxu0 %vm449_vm0, %v1412_v54  ;;  %1550 = vmatpush1.msra.mxu1 %v1415_v55  ;;  %v1628_v23 = vld [vmem:[#allocation13 + $0x50] sm:$0xff]  ;;  %v1627_v20 = vld [vmem:[#allocation13 + $0x48] sm:$0xff]  ;;  %v1626_v14 = vld [vmem:[#allocation13 + $0x40] sm:$0xff] }
 0x448   : > { %1583 = vmatprep.mubr.f32.mxu1 %v2330_v42  ;;  %1949 = vmatprep.subr.mxu0 %v2330_v42  ;;  %v1612_v60 = vld [vmem:[#allocation11 + $0x50] sm:$0xff]  ;;  %v1611_v4 = vld [vmem:[#allocation11 + $0x48] sm:$0xff]  ;;  %v1625_v8 = vld [vmem:[#allocation13 + $0x38] sm:$0xff] }
 0x449   : > { %1909 = vmatmul.mubr.msk.f32.vlgmr.msra.gmra.mxu1 %vm449_vm0, %v1412_v54  ;;  %1984 = vmatprep.subr.mxu1 %v2330_v42  ;;  %v1610_v3 = vld [vmem:[#allocation11 + $0x40] sm:$0xff]  ;;  %v1624_v9 = vld [vmem:[#allocation13 + $0x30] sm:$0xff]  ;;  %v1609_v13 = vld [vmem:[#allocation11 + $0x38] sm:$0xff] }
 0x44a   : > { %1950 = vmatpush3.msra.mxu0 %v1633_v56  ;;  %1985 = vmatpush3.msra.mxu1 %v1617_v59  ;;  %v1623_v5 = vld [vmem:[#allocation13 + $0x28] sm:$0xff]  ;;  %v1608_v51 = vld [vmem:[#allocation11 + $0x30] sm:$0xff]  ;;  %v1622_v63 = vld [vmem:[#allocation13 + $0x20] sm:$0xff] }
 0x44b   : > { %1951 = vmatprep.subr.mxu0 %v2330_v42  ;;  %1986 = vmatprep.subr.mxu1 %v2330_v42  ;;  %v1607_v7 = vld [vmem:[#allocation11 + $0x28] sm:$0xff]  ;;  %v1621_v6 = vld [vmem:[#allocation13 + $0x18] sm:$0xff]  ;;  %v1606_v11 = vld [vmem:[#allocation11 + $0x20] sm:$0xff] }
 0x44c   : > { %1952 = vmatpush3.msra.mxu0 %v1632_v57  ;;  %1987 = vmatpush3.msra.mxu1 %v1616_v0  ;;  %v1620_v1 = vld [vmem:[#allocation13 + $0x10] sm:$0xff]  ;;  %v1605_v15 = vld [vmem:[#allocation11 + $0x18] sm:$0xff]  ;;  %v1619_v17 = vld [vmem:[#allocation13 + $0x8] sm:$0xff] }
 0x44d   : > { %1953 = vmatprep.subr.mxu0 %v2330_v42  ;;  %1988 = vmatprep.subr.mxu1 %v2330_v42  ;;  %v1604_v18 = vld [vmem:[#allocation11 + $0x10] sm:$0xff]  ;;  %v1618_v12 = vld [vmem:[#allocation13] sm:$0xff]  ;;  %v1603_v19 = vld [vmem:[#allocation11 + $0x8] sm:$0xff] }
 0x44e   : > { %1954 = vmatpush3.msra.mxu0 %v1631_v62  ;;  %1989 = vmatpush3.msra.mxu1 %v1615_v61  ;;  %v1602_v21 = vld [vmem:[#allocation11] sm:$0xff]  ;;  %v1429_v22 = vld [vmem:[%s3041_s4] sm:$0xf]  ;;  %v3203_v24 = vld [vmem:[#allocation43_spill] sm:$0xff] }
 0x44f   : > { %1955 = vmatprep.subr.mxu0 %v2330_v42  ;;  %1990 = vmatprep.subr.mxu1 %v2330_v42  ;;  %v3204_v25 = vsub.s32 0, %v3203_v24  ;;  %v3205_v27 = vsub.s32 2, %v3203_v24  ;;  %v3206_v35 = vsub.s32 3, %v3203_v24  ;;  %v1910_v54 = vld [vmem:[%s3045_s8] ss:$0 sm:$0xff] }
 0x450   : > { %1956 = vmatpush3.msra.mxu0 %v1630_v2  ;;  %1991 = vmatpush3.msra.mxu1 %v1614_v16 }
 0x451   : > { %1957 = vmatprep.subr.mxu0 %v2330_v42  ;;  %1992 = vmatprep.subr.mxu1 %v2330_v42  ;;  %v1434_v26 = vrot.slane %v1429_v22, %v3204_v25  ;;  %v1438_v28 = vrot.slane %v1429_v22, %v3205_v27 }
 0x452   : > { %1958 = vmatpush3.msra.mxu0 %v1629_v58  ;;  %1993 = vmatpush3.msra.mxu1 %v1613_v10 }
 0x453   : > { %1959 = vmatprep.subr.mxu0 %v2330_v42  ;;  %1994 = vmatprep.subr.mxu1 %v2330_v42 }
 0x454   : > { %1960 = vmatpush3.msra.mxu0 %v1628_v23  ;;  %1995 = vmatpush3.msra.mxu1 %v1612_v60 }
 0x455   : > { %1961 = vmatprep.subr.mxu0 %v2330_v42  ;;  %1996 = vmatprep.subr.mxu1 %v2330_v42 }
 0x456   : > { %1962 = vmatpush3.msra.mxu0 %v1627_v20  ;;  %1997 = vmatpush3.msra.mxu1 %v1611_v4 }
 0x457   : > { %1963 = vmatprep.subr.mxu0 %v2330_v42  ;;  %1998 = vmatprep.subr.mxu1 %v2330_v42 }
 0x458   : > { %1964 = vmatpush3.msra.mxu0 %v1626_v14  ;;  %1999 = vmatpush3.msra.mxu1 %v1610_v3 }
 0x459   : > { %1965 = vmatprep.subr.mxu0 %v2330_v42  ;;  %2000 = vmatprep.subr.mxu1 %v2330_v42 }
 0x45a   : > { %1966 = vmatpush3.msra.mxu0 %v1625_v8  ;;  %2001 = vmatpush3.msra.mxu1 %v1609_v13 }
 0x45b   : > { %1967 = vmatprep.subr.mxu0 %v2330_v42  ;;  %2002 = vmatprep.subr.mxu1 %v2330_v42 }
 0x45c   : > { %1968 = vmatpush3.msra.mxu0 %v1624_v9  ;;  %2003 = vmatpush3.msra.mxu1 %v1608_v51 }
 0x45d   : > { %1969 = vmatprep.subr.mxu0 %v2330_v42  ;;  %2004 = vmatprep.subr.mxu1 %v2330_v42 }
 0x45e   : > { %1970 = vmatpush3.msra.mxu0 %v1623_v5  ;;  %2005 = vmatpush3.msra.mxu1 %v1607_v7 }
 0x45f   : > { %1971 = vmatprep.subr.mxu0 %v2330_v42  ;;  %2006 = vmatprep.subr.mxu1 %v2330_v42 }
 0x460   : > { %1972 = vmatpush3.msra.mxu0 %v1622_v63  ;;  %2007 = vmatpush3.msra.mxu1 %v1606_v11 }
 0x461   : > { %1973 = vmatprep.subr.mxu0 %v2330_v42  ;;  %2008 = vmatprep.subr.mxu1 %v2330_v42 }
 0x462   : > { %1974 = vmatpush3.msra.mxu0 %v1621_v6  ;;  %2009 = vmatpush3.msra.mxu1 %v1605_v15 }
 0x463   : > { %1975 = vmatprep.subr.mxu0 %v2330_v42  ;;  %2010 = vmatprep.subr.mxu1 %v2330_v42 }
 0x464   : > { %1976 = vmatpush3.msra.mxu0 %v1620_v1  ;;  %2011 = vmatpush3.msra.mxu1 %v1604_v18 }
 0x465   : > { %1977 = vmatprep.subr.mxu0 %v2330_v42  ;;  %2012 = vmatprep.subr.mxu1 %v2330_v42 }
 0x466   : > { %1978 = vmatpush3.msra.mxu0 %v1619_v17  ;;  %1981 = vmatprep.mubr.msk.f32.mxu0 %vm2331_vm1, %v2330_v42 }
 0x467   : > { %1979 = vmatprep.subr.mxu0 %v2330_v42  ;;  %2013 = vmatpush3.msra.mxu1 %v1603_v19 }
 0x468   : > { %1980 = vmatpush3.msra.mxu0 %v1618_v12  ;;  %2014 = vmatprep.subr.mxu1 %v2330_v42 }
 0x469   : > { %1982 = vmatmul.mubr.f32.vlgmr.msra.gmra.mxu0 %v2966_v36  ;;  %2016 = vmatprep.mubr.msk.f32.mxu1 %vm2331_vm1, %v2330_v42  ;;  %v1442_v36 = vrot.slane %v1429_v22, %v3206_v35 }
 0x46a   : > { %2015 = vmatpush3.msra.mxu1 %v1602_v21 }
 0x507   : > { %v1515_v29 = vpop.f32.mrf.mxu0 }
 0x508   : > { %v1516_v30 = vadd.f32 %v1515_v29, %v1434_v26 }
 0x509   : > { %v1517_v31 = vpop.f32.mrf.mxu0  ;;  %v1585_v32 = vpop.f32.mrf.mxu1 }
 0x50a   : > { %v1590_v33 = vmul.f32 0.5, %v1516_v30  ;;  %v1586_v34 = vadd.f32 %v1585_v32, %v1438_v28 }
 0x50b   : > { %v1587_v37 = vpop.f32.mrf.mxu1 }
 0x50c   : > { %2133 = vtanh.f32 %v1590_v33  ;;  %v1588_v38 = vadd.f32 %v1587_v37, %v1442_v36 }
 0x50d   : > { %2135 = vtanh.f32 %v1586_v34 }
 0x50e   : > { %v1595_v39 = vmul.f32 0.5, %v1588_v38 }
 0x510   : > { %2137 = vtanh.f32 %v1595_v39 }
 0x519   : > { %v2134_v40 = vpop.eup %2133 }
 0x51a   : > { %v1592_v41 = vmul.f32 0.5, %v2134_v40  ;;  %v2136_v42 = vpop.eup %2135 }
 0x51c   : > { %v1593_v43 = vadd.f32 0.5, %v1592_v41 }
 0x51d   : > { %v2138_v45 = vpop.eup %2137 }
 0x51e   : > { %v1599_v44 = vmul.f32 %v2136_v42, %v1593_v43  ;;  %v1597_v46 = vmul.f32 0.5, %v2138_v45 }
 0x520   : > { %2139 = vtanh.f32 %v1599_v44  ;;  %v1598_v47 = vadd.f32 0.5, %v1597_v46 }
 0x529   : > { %v1700_v50 = vpop.f32.mrf.mxu0 }
 0x52b   : > { %v1983_v52 = vpop.f32.mrf.mxu0 }
 0x52d   : > { %v2140_v48 = vpop.eup %2139 }
 0x52e   : > { %v1601_v49 = vmul.f32 %v2140_v48, %v1598_v47 }
 0x530   : > { %2017 = vmatmul.mubr.f32.vlgmr.msra.gmra.mxu1 %v1601_v49 }
 0x5f0   : > { %v1770_v53 = vpop.f32.mrf.mxu1 }
 0x5f1   : > { %v1771_v55 = vadd.f32 %v1770_v53, %v1700_v50 }
 0x5f2   : > { %v2018_v56 = vpop.f32.mrf.mxu1 }
 0x5f3   : > { %v1781_v57 = vadd.f32 %v1910_v54, %v1771_v55 }
 0x5f5   : > { %1782 = vst [vmem:[#allocation14] sm:$0xff] %v1781_v57 }
 0x5f6 PF: > { %p2069_p3 = scmp.eq.s32.totalorder %s2389_s10, 1  ;;  %s2332_s23 = smov [#allocation14]  }
 0x5f7   : > { %s1790_s24 = sshll.u32 %s2332_s23, 4  ;;  %s1791_s24 = int_to_ptr.vmem [resolvable:$true] %s1790_s24 }
 0x5f8   : > { %s2271_s18 = scalar_lea.vmem %s1791_s24, 128  ;;  %p2278_p8 = scmp.lt.s32.totalorder %s1791_s24, %s1791_s24 }
 0x5f9   : > { %p2272_p6 = scmp.ne.s32.totalorder %s1791_s24, %s2271_s18  ;;  %p2279_p9 = scmp.lt.s32.totalorder %s2271_s18, %s2271_s18 }
 0x5fb   : > { %p2273_p7 = pnand %p2272_p6, %p2069_p3  ;;  %p2280_p10 = por %p2279_p9, %p2278_p8 }
 0x5fd   : > { %p2274_p1 = pneg %p2273_p7 }
 0x5ff   : > { %p2281_p11 = pnand %p2280_p10, %p2274_p1 }
 0x601   : > { %2284 = shalt.err (!%p2281_p11)
}
 0x602   : > { %2040 = dma.vmem_to_hbm [thread:$0]  (%p2069_p3), %s1791_s24, 128, %s3046_s9, [#allocation7]  }
 0x603   : > { %2312 = dma.done.wait (%p2069_p3), [#allocation7], 128  }
 0x604   : > { %2314 = vsyncadd (%p2069_p3), [#allocation7], 4294967168 }
 0x605 PF: > { %s23_s30 = sadd.s32 1, %s2317_s30  }
 0x606   : > { %p20_p12 = scmp.ge.s32.totalorder %s23_s30, 4  }
 0x608   :  { %22 = sbr.rel (!%p20_p12) target bundleno = 4 (0x4), region = 116 }
 0x60d   :  { %1803 = vsyncpa [#allocation6], 1 }
 0x60e   :  { %1805 = vsyncpa [#allocation6 + $0x1], 1 }
 0x60f   :  { %1806 = vsyncpa [#allocation9], 1 }
 0x610   :  { %1807 = vsyncpa [#allocation12], 1 }
 0x611   :  { %1808 = vsyncpa [#allocation7], 1 }
 0x612   :  { %1810 = vsyncpa [#allocation7 + $0x1], 1 }

// kernel: tpu_custom_call.1
= control target key start
LH: loop header
LB: loop body
LE: loop exit
PB: predicated region body
PF: predicated region fallthrough
CT: control target
= control target key end

     0   :  { %14 = vsyncpa [#allocation6], 0  ;;  %s3037_s0 = inlined_call_operand.vmem [shape: f32[64,32], index: 0, kind: input, shape index: {}]   ;;  %s3038_s1 = inlined_call_operand.hbm [shape: f32[32,512], index: 1, kind: input, shape index: {}]   ;;  %s3039_s2 = inlined_call_operand.vmem [shape: f32[1,512], index: 2, kind: input, shape index: {}]   ;;  %s3040_s3 = inlined_call_operand.hbm [shape: f32[32,512], index: 3, kind: input, shape index: {}]   ;;  %s3041_s4 = inlined_call_operand.vmem [shape: f32[1,512], index: 4, kind: input, shape index: {}]   ;;  %s3042_s5 = inlined_call_operand.hbm [shape: f32[128,512], index: 5, kind: input, shape index: {}]   ;;  %s3043_s6 = inlined_call_operand.hbm [shape: f32[128,128], index: 6, kind: input, shape index: {}]   ;;  %s3044_s7 = inlined_call_operand.hbm [shape: f32[128,128], index: 7, kind: input, shape index: {}]   ;;  %s3045_s8 = inlined_call_operand.vmem [shape: f32[1,128], index: 8, kind: input, shape index: {}]   ;;  %s3046_s9 = inlined_call_operand.hbm [shape: f32[8,128], index: 9, kind: output, shape index: {}]  }
   0x1   :  { %15 = vsyncpa [#allocation9], 0 }
   0x2   :  { %16 = vsyncpa [#allocation12], 0 }
   0x3   :  { %17 = vsyncpa [#allocation7], 0  ;;  %s2383_s30 = smov 0  }
   0x4 LB: > { %s2389_s10 = sadd.s32 4294967295, %s2317_s30   ;;  %p1883_p0 = scmp.ge.s32.totalorder %s2317_s30, 1  ;;  %s2317_s30 = sphi %s2383_s30, %s23_s30  }
   0x5   : > { %p245_p1 = scmp.lt.s32.totalorder %s2317_s30, 3  ;;  %p1884_p2 = scmp.ne.s32.totalorder %s2389_s10, 0 }
   0x6   : > { %p2059_p3 = scmp.eq.s32.totalorder %s2389_s10, 0  ;;  %s2319_s12 = smov [#allocation8]  }
   0x7   : > { %p2395_p4 = pnand %p1883_p0, %p245_p1  ;;  %s273_s13 = sshll.u32 %s2319_s12, 4  ;;  %s274_s13 = int_to_ptr.vmem [resolvable:$true] %s273_s13 }
   0x8   : > { %s2320_s14 = smov [#allocation11]   ;;  %s2321_s17 = smov [#allocation5]  }
   0x9   : > { %p2043_p5 = pneg %p2395_p4  ;;  %s302_s15 = sshll.u32 %s2320_s14, 4  ;;  %s2401_s15 = int_to_ptr.vmem [resolvable:$true] %s302_s15 }
   0xa   : > { %s2409_s18 = sshll.u32 %s2321_s17, 4  ;;  %s2152_s20 = scalar_lea.vmem %s274_s13, 2048  ;;  %s258_s18 = int_to_ptr.vmem [resolvable:$true] %s2409_s18 }
   0xb   : > { %p2405_p6 = pnand %p2059_p3, %p2043_p5  ;;  %p2153_p8 = scmp.ne.s32.totalorder %s274_s13, %s2152_s20 }
   0xc   : > { %p2160_p11 = scmp.lt.s32.totalorder %s274_s13, %s274_s13  ;;  %p2161_p12 = scmp.lt.s32.totalorder %s2152_s20, %s2152_s20 }
   0xd   : > { %p2413_p7 = pneg %p2405_p6 }
   0xe   : > { %p2162_p13 = por %p2161_p12, %p2160_p11 }
   0xf   : > { %p2155_p9 = pnand %p2153_p8, %p2413_p7 }
  0x11   : > { %p2156_p10 = pneg %p2155_p9 }
  0x13   : > { %p2163_p0 = pnand %p2162_p13, %p2156_p10 }
  0x15   : > { %2166 = shalt.err (!%p2163_p0)
}
  0x16   : > { %s2322_s21 = smov 512   ;;  %s2323_s22 = smov 32  }
  0x17   : > { %2049 = dma.hbm_to_vmem [thread:$0]  (!%p2405_p6), %s3040_s3, 2048, %s274_s13, [#allocation9], %s2322_s21, %s2322_s21, %s2323_s22  }
  0x18   : > { %s2178_s25 = scalar_lea.vmem %s2401_s15, 2048  ;;  %p2186_p9 = scmp.lt.s32.totalorder %s2401_s15, %s2401_s15 }
  0x19   : > { %p2179_p1 = scmp.ne.s32.totalorder %s2401_s15, %s2178_s25  ;;  %p2187_p10 = scmp.lt.s32.totalorder %s2178_s25, %s2178_s25 }
  0x1b   : > { %p2181_p5 = pnand %p2179_p1, %p2413_p7  ;;  %p2188_p11 = por %p2187_p10, %p2186_p9 }
  0x1d   : > { %p2182_p8 = pneg %p2181_p5 }
  0x1f   : > { %p2189_p12 = pnand %p2188_p11, %p2182_p8 }
  0x21   : > { %2192 = shalt.err (!%p2189_p12)
}
  0x22   : > { %s2324_s26 = smov 128   ;;  %s2325_s27 = smov 8  }
  0x23   : > { %2055 = dma.hbm_to_vmem [thread:$0]  (!%p2405_p6), %s3043_s6, 2048, %s2401_s15, [#allocation12], %s2324_s26, %s2324_s26, %s2325_s27  }
  0x24   : > { %s2326_s12 = smov [#allocation10]   ;;  %s2204_s14 = scalar_lea.vmem %s258_s18, 2048 }
  0x25   : > { %s289_s13 = sshll.u32 %s2326_s12, 4  ;;  %p2205_p13 = scmp.ne.s32.totalorder %s258_s18, %s2204_s14  ;;  %s290_s13 = int_to_ptr.vmem [resolvable:$true] %s289_s13 }
  0x26   : > { %p2212_p5 = scmp.lt.s32.totalorder %s258_s18, %s258_s18  ;;  %p2213_p8 = scmp.lt.s32.totalorder %s2204_s14, %s2204_s14 }
  0x27   : > { %p2207_p0 = pnand %p2205_p13, %p2413_p7 }
  0x28   : > { %p2214_p9 = por %p2213_p8, %p2212_p5 }
  0x29   : > { %p2208_p1 = pneg %p2207_p0 }
  0x2b   : > { %p2215_p10 = pnand %p2214_p9, %p2208_p1 }
  0x2d   : > { %2218 = shalt.err (!%p2215_p10)
}
  0x2e   : > { %2046 = dma.hbm_to_vmem [thread:$0]  (!%p2405_p6), %s3038_s1, 2048, %s258_s18, [#allocation6], %s2322_s21, %s2322_s21, %s2323_s22  }
  0x2f   : > { %s2230_s20 = scalar_lea.vmem %s290_s13, 8192  ;;  %p2238_p0 = scmp.lt.s32.totalorder %s290_s13, %s290_s13 }
  0x30   : > { %p2231_p11 = scmp.ne.s32.totalorder %s290_s13, %s2230_s20  ;;  %p2239_p5 = scmp.lt.s32.totalorder %s2230_s20, %s2230_s20 }
  0x32   : > { %p2233_p12 = pnand %p2231_p11, %p2413_p7  ;;  %p2240_p1 = por %p2239_p5, %p2238_p0 }
  0x34   : > { %p2234_p13 = pneg %p2233_p12 }
  0x36   : > { %p2241_p8 = pnand %p2240_p1, %p2234_p13 }
  0x38   : > { %2244 = shalt.err (!%p2241_p8)
}
  0x39   : > { %2052 = dma.hbm_to_vmem [thread:$0]  (!%p2405_p6), %s3042_s5, 8192, %s290_s13, [#allocation9], %s2322_s21, %s2322_s21, %s2323_s22  }
  0x3a   : > { %s2327_s18 = smov [#allocation13]  }
  0x3b   : > { %s315_s25 = sshll.u32 %s2327_s18, 4  ;;  %s316_s25 = int_to_ptr.vmem [resolvable:$true] %s315_s25 }
  0x3c   : > { %s2256_s28 = scalar_lea.vmem %s316_s25, 2048  ;;  %p2264_p12 = scmp.lt.s32.totalorder %s316_s25, %s316_s25 }
  0x3d   : > { %p2257_p9 = scmp.ne.s32.totalorder %s316_s25, %s2256_s28  ;;  %p2265_p13 = scmp.lt.s32.totalorder %s2256_s28, %s2256_s28 }
  0x3f   : > { %p2259_p10 = pnand %p2257_p9, %p2413_p7  ;;  %p2266_p0 = por %p2265_p13, %p2264_p12 }
  0x41   : > { %p2260_p11 = pneg %p2259_p10 }
  0x43   : > { %p2267_p5 = pnand %p2266_p0, %p2260_p11 }
  0x45   : > { %2270 = shalt.err (!%p2267_p5)
}
  0x46   : > { %2058 = dma.hbm_to_vmem [thread:$0]  (!%p2405_p6), %s3044_s7, 2048, %s316_s25, [#allocation12], %s2324_s26, %s2324_s26, %s2325_s27  }
  0x47   : > { %345 = sbr.rel (%p2395_p4) target bundleno = 1541 (0x605), region = 56 }
  0x4c   : > { %2300 = dma.done.wait (%p2059_p3), [#allocation6], 2048  }
  0x4d   : > { %2302 = vsyncadd (%p2059_p3), [#allocation6], 4294965248 }
  0x4e   : > { %2304 = dma.done.wait (%p2059_p3), [#allocation9], 10240  }
  0x4f   : > { %2306 = vsyncadd (%p2059_p3), [#allocation9], 4294957056 }
  0x50   : > { %2308 = dma.done.wait (%p2059_p3), [#allocation12], 4096  }
  0x51   : > { %2310 = vsyncadd (%p2059_p3), [#allocation12], 4294963200  ;;  %s393_s11 = ssub.s32 1, %s2389_s10 }
  0x52   : > { %s1896_s16 = sshll.u32 %s393_s11, 2 }
  0x53   : > { %p395_p4 = scmp.lt.s32.totalorder %s1896_s16, 7  ;;  %404 = sbr.rel (%p1884_p2) target bundleno = 90 (0x5a), region = 80 }
  0x55   : > { %s3208_s16 = smov (!%p395_p4, %s1896_s16), 7 }
  0x56   : > { %s1897_s19 = sshll.u32 %s3208_s16, 3 }
  0x57   : > { %s2491_s27 = scalar_lea.vmem %s3037_s0, %s1897_s19 }
  0x58   : > { %v2328_v0 = vmov 0.0  }
  0x59   : > { %405 = vst [vmem:[#allocation3] sm:$0xff] %v2328_v0  ;;  %406 = vst [vmem:[#allocation4] sm:$0xff] %v2328_v0 }
  0x5a PF: > { %v424_v1 = vld [vmem:[#allocation5 + $0x68] sm:$0xff]  ;;  %v423_v2 = vld [vmem:[#allocation5 + $0x60] sm:$0xff]  ;;  %v426_v5 = vld [vmem:[#allocation5 + $0x78] sm:$0xff]  ;;  %v3053_v6 = vmov 0.0   ;;  %vm449_vm0 = vcmask 261120   ;;  %p1907_p2 = scmp.ne.s32.totalorder %s2389_s10, 1 }
  0x5b   : > { %v420_v3 = vld [vmem:[#allocation5 + $0x48] sm:$0xff]  ;;  %486 = vmatprep.subr.mxu0 %v424_v1  ;;  %v419_v4 = vld [vmem:[#allocation5 + $0x40] sm:$0xff]  ;;  %526 = vmatprep.mubr.f32.mxu0 %v3053_v6  ;;  %v425_v8 = vld [vmem:[#allocation5 + $0x70] sm:$0xff] }
  0x5c   : > { %487 = vmatpush1.msra.mxu0 %v423_v2  ;;  %v416_v7 = vld [vmem:[#allocation5 + $0x28] sm:$0xff]  ;;  %575 = vmatprep.subr.mxu1 %v426_v5  ;;  %v415_v9 = vld [vmem:[#allocation5 + $0x20] sm:$0xff]  ;;  %v422_v10 = vld [vmem:[#allocation5 + $0x58] sm:$0xff] }
  0x5d   : > { %488 = vmatprep.subr.mxu0 %v420_v3  ;;  %576 = vmatpush1.msra.mxu1 %v425_v8  ;;  %v421_v11 = vld [vmem:[#allocation5 + $0x50] sm:$0xff]  ;;  %v412_v12 = vld [vmem:[#allocation5 + $0x8] sm:$0xff]  ;;  %v418_v13 = vld [vmem:[#allocation5 + $0x38] sm:$0xff] }
  0x5e   : > { %489 = vmatpush1.msra.mxu0 %v419_v4  ;;  %577 = vmatprep.subr.mxu1 %v422_v10  ;;  %v411_v14 = vld [vmem:[#allocation5] sm:$0xff]  ;;  %v417_v15 = vld [vmem:[#allocation5 + $0x30] sm:$0xff]  ;;  %v414_v16 = vld [vmem:[#allocation5 + $0x18] sm:$0xff] }
  0x5f   : > { %490 = vmatprep.subr.mxu0 %v416_v7  ;;  %578 = vmatpush1.msra.mxu1 %v421_v11  ;;  %v407_v17 = vld [vmem:[%s2491_s27] sm:$0xff]  ;;  %v2497_v18 = vld [vmem:[#allocation10 + $0x1e8] sm:$0xff]  ;;  %v2499_v19 = vld [vmem:[#allocation10 + $0x1e0] sm:$0xff] }
  0x60   : > { %491 = vmatpush1.msra.mxu0 %v415_v9  ;;  %579 = vmatprep.subr.mxu1 %v418_v13  ;;  %3105 = vst [vmem:[#allocation19_spill] sm:$0xff] %v2497_v18  ;;  %v413_v20 = vld [vmem:[#allocation5 + $0x10] sm:$0xff]  ;;  %v2501_v21 = vld [vmem:[#allocation10 + $0x1c8] sm:$0xff]  ;;  %v2505_v22 = vld [vmem:[#allocation10 + $0x1c0] sm:$0xff] }
  0x61   : > { %492 = vmatprep.subr.mxu0 %v412_v12  ;;  %580 = vmatpush1.msra.mxu1 %v417_v15  ;;  %v2507_v23 = vld [vmem:[#allocation10 + $0x1f8] sm:$0xff]  ;;  %v2510_v24 = vld [vmem:[#allocation10 + $0x1a8] sm:$0xff]  ;;  %v2514_v25 = vld [vmem:[#allocation10 + $0x1a0] sm:$0xff] }
  0x62   : > { %493 = vmatpush1.msra.mxu0 %v411_v14  ;;  %581 = vmatprep.subr.mxu1 %v414_v16  ;;  %3106 = vst [vmem:[#allocation20_spill] sm:$0xff] %v2507_v23  ;;  %v2516_v26 = vld [vmem:[#allocation10 + $0x1f0] sm:$0xff]  ;;  %v2520_v27 = vld [vmem:[#allocation10 + $0x188] sm:$0xff]  ;;  %v2522_v28 = vld [vmem:[#allocation10 + $0x1d8] sm:$0xff] }
  0x63   : > { %1899 = vmatmul.mubr.msk.f32.vlgmr.msra.gmra.mxu0 %vm449_vm0, %v407_v17  ;;  %729 = vmatprep.subr.mxu0 %v2497_v18  ;;  %v2526_v29 = vld [vmem:[#allocation10 + $0x180] sm:$0xff]  ;;  %v2528_v30 = vld [vmem:[#allocation10 + $0x1d0] sm:$0xff]  ;;  %v2532_v31 = vld [vmem:[#allocation10 + $0x168] sm:$0xff] }
  0x64   : > { %730 = vmatpush1.msra.mxu0 %v2499_v19  ;;  %582 = vmatpush1.msra.mxu1 %v413_v20  ;;  %v2534_v32 = vld [vmem:[#allocation10 + $0x1b8] sm:$0xff]  ;;  %v2538_v33 = vld [vmem:[#allocation10 + $0x160] sm:$0xff]  ;;  %v2540_v34 = vld [vmem:[#allocation10 + $0x1b0] sm:$0xff] }
  0x65   : > { %731 = vmatprep.subr.mxu0 %v2501_v21  ;;  %615 = vmatprep.mubr.f32.mxu1 %v3053_v6  ;;  %v2544_v35 = vld [vmem:[#allocation10 + $0x148] sm:$0xff]  ;;  %v2546_v36 = vld [vmem:[#allocation10 + $0x198] sm:$0xff]  ;;  %v2550_v37 = vld [vmem:[#allocation10 + $0x140] sm:$0xff] }
  0x66   : > { %732 = vmatpush1.msra.mxu0 %v2505_v22  ;;  %800 = vmatprep.subr.mxu1 %v2507_v23  ;;  %v2552_v38 = vld [vmem:[#allocation10 + $0x190] sm:$0xff]  ;;  %v2556_v39 = vld [vmem:[#allocation10 + $0x128] sm:$0xff]  ;;  %v2558_v40 = vld [vmem:[#allocation10 + $0x178] sm:$0xff] }
  0x67   : > { %733 = vmatprep.subr.mxu0 %v2510_v24  ;;  %1903 = vmatmul.mubr.msk.f32.vlgmr.msra.gmra.mxu1 %vm449_vm0, %v407_v17  ;;  %v2562_v41 = vld [vmem:[#allocation10 + $0x120] sm:$0xff]  ;;  %v2564_v42 = vld [vmem:[#allocation10 + $0x170] sm:$0xff]  ;;  %v2568_v43 = vld [vmem:[#allocation10 + $0x108] sm:$0xff] }
  0x68   : > { %734 = vmatpush1.msra.mxu0 %v2514_v25  ;;  %801 = vmatpush1.msra.mxu1 %v2516_v26  ;;  %v2570_v44 = vld [vmem:[#allocation10 + $0x158] sm:$0xff]  ;;  %v2574_v45 = vld [vmem:[#allocation10 + $0x100] sm:$0xff]  ;;  %v2576_v46 = vld [vmem:[#allocation10 + $0x150] sm:$0xff] }
  0x69   : > { %735 = vmatprep.subr.mxu0 %v2520_v27  ;;  %802 = vmatprep.subr.mxu1 %v2522_v28  ;;  %v2580_v47 = vld [vmem:[#allocation10 + $0xe8] sm:$0xff]  ;;  %v2582_v48 = vld [vmem:[#allocation10 + $0x138] sm:$0xff]  ;;  %v2586_v49 = vld [vmem:[#allocation10 + $0xe0] sm:$0xff] }
  0x6a   : > { %736 = vmatpush1.msra.mxu0 %v2526_v29  ;;  %803 = vmatpush1.msra.mxu1 %v2528_v30  ;;  %v2590_v50 = vld [vmem:[#allocation10 + $0x130] sm:$0xff]  ;;  %v408_v51 = vld [vmem:[%s2491_s27 + $0x8] sm:$0xff]  ;;  %v2595_v52 = vld [vmem:[#allocation10 + $0xc8] sm:$0xff] }
  0x6b   : > { %737 = vmatprep.subr.mxu0 %v2532_v31  ;;  %804 = vmatprep.subr.mxu1 %v2534_v32  ;;  %v2597_v53 = vld [vmem:[#allocation10 + $0x118] sm:$0xff]  ;;  %v2601_v54 = vld [vmem:[#allocation10 + $0xc0] sm:$0xff]  ;;  %v2603_v55 = vld [vmem:[#allocation10 + $0x110] sm:$0xff] }
  0x6c   : > { %738 = vmatpush1.msra.mxu0 %v2538_v33  ;;  %805 = vmatpush1.msra.mxu1 %v2540_v34  ;;  %v2607_v56 = vld [vmem:[#allocation10 + $0xa8] sm:$0xff]  ;;  %v2609_v57 = vld [vmem:[#allocation10 + $0xf8] sm:$0xff]  ;;  %v2613_v58 = vld [vmem:[#allocation10 + $0xa0] sm:$0xff] }
  0x6d   : > { %739 = vmatprep.subr.mxu0 %v2544_v35  ;;  %806 = vmatprep.subr.mxu1 %v2546_v36  ;;  %3107 = vst [vmem:[#allocation21_spill] sm:$0xff] %v2613_v58  ;;  %v2617_v59 = vld [vmem:[#allocation10 + $0xf0] sm:$0xff]  ;;  %v409_v60 = vld [vmem:[%s2491_s27 + $0x10] sm:$0xff]  ;;  %v2622_v61 = vld [vmem:[#allocation10 + $0x88] sm:$0xff] }
  0x6e   : > { %740 = vmatpush1.msra.mxu0 %v2550_v37  ;;  %807 = vmatpush1.msra.mxu1 %v2552_v38  ;;  %3108 = vst [vmem:[#allocation22_spill] sm:$0xff] %v2622_v61  ;;  %v2624_v62 = vld [vmem:[#allocation10 + $0xd8] sm:$0xff]  ;;  %v2628_v63 = vld [vmem:[#allocation10 + $0x80] sm:$0xff]  ;;  %v2632_v0 = vld [vmem:[#allocation10 + $0xd0] sm:$0xff] }
  0x6f   : > { %741 = vmatprep.subr.mxu0 %v2556_v39  ;;  %808 = vmatprep.subr.mxu1 %v2558_v40  ;;  %3109 = vst [vmem:[#allocation23_spill] sm:$0xff] %v2628_v63  ;;  %v2634_v1 = vld [vmem:[#allocation10 + $0x68] sm:$0xff]  ;;  %v2638_v2 = vld [vmem:[#allocation10 + $0xb8] sm:$0xff]  ;;  %v2642_v3 = vld [vmem:[#allocation10 + $0x60] sm:$0xff] }
  0x70   : > { %742 = vmatpush1.msra.mxu0 %v2562_v41  ;;  %809 = vmatpush1.msra.mxu1 %v2564_v42  ;;  %3110 = vst [vmem:[#allocation24_spill] sm:$0xff] %v2634_v1  ;;  %3111 = vst [vmem:[#allocation25_spill] sm:$0xff] %v2642_v3  ;;  %v2646_v4 = vld [vmem:[#allocation10 + $0xb0] sm:$0xff]  ;;  %v410_v5 = vld [vmem:[%s2491_s27 + $0x18] sm:$0xff] }
  0x71   : > { %743 = vmatprep.subr.mxu0 %v2568_v43  ;;  %810 = vmatprep.subr.mxu1 %v2570_v44  ;;  %3112 = vst [vmem:[#allocation26_spill] sm:$0xff] %v2646_v4  ;;  %v2651_v7 = vld [vmem:[#allocation10 + $0x48] sm:$0xff]  ;;  %v2653_v8 = vld [vmem:[#allocation10 + $0x98] sm:$0xff]  ;;  %v2657_v9 = vld [vmem:[#allocation10 + $0x40] sm:$0xff] }
  0x72   : > { %744 = vmatpush1.msra.mxu0 %v2574_v45  ;;  %811 = vmatpush1.msra.mxu1 %v2576_v46  ;;  %3113 = vst [vmem:[#allocation27_spill] sm:$0xff] %v2651_v7  ;;  %3114 = vst [vmem:[#allocation28_spill] sm:$0xff] %v2653_v8  ;;  %v2661_v10 = vld [vmem:[#allocation10 + $0x90] sm:$0xff]  ;;  %v2663_v11 = vld [vmem:[#allocation10 + $0x28] sm:$0xff] }
  0x73   : > { %745 = vmatprep.subr.mxu0 %v2580_v47  ;;  %812 = vmatprep.subr.mxu1 %v2582_v48  ;;  %3115 = vst [vmem:[#allocation29_spill] sm:$0xff] %v2657_v9  ;;  %3116 = vst [vmem:[#allocation30_spill] sm:$0xff] %v2661_v10  ;;  %v2667_v12 = vld [vmem:[#allocation10 + $0x78] sm:$0xff]  ;;  %v2671_v13 = vld [vmem:[#allocation10 + $0x20] sm:$0xff] }
  0x74   : > { %532 = vmatprep.mubr.f32.mxu0 %v3053_v6  ;;  %746 = vmatpush1.msra.mxu0 %v2586_v49  ;;  %3117 = vst [vmem:[#allocation31_spill] sm:$0xff] %v2663_v11  ;;  %3118 = vst [vmem:[#allocation32_spill] sm:$0xff] %v2667_v12  ;;  %v2673_v14 = vld [vmem:[#allocation10 + $0x70] sm:$0xff]  ;;  %v2677_v15 = vld [vmem:[#allocation10 + $0x8] sm:$0xff] }
  0x75   : > { %813 = vmatpush1.msra.mxu1 %v2590_v50  ;;  %1900 = vmatmul.mubr.msk.f32.gmra.mxu0 %vm449_vm0, %v408_v51  ;;  %3119 = vst [vmem:[#allocation33_spill] sm:$0xff] %v2671_v13  ;;  %3120 = vst [vmem:[#allocation34_spill] sm:$0xff] %v2673_v14  ;;  %v2679_v16 = vld [vmem:[#allocation10 + $0x58] sm:$0xff]  ;;  %v2683_v17 = vld [vmem:[#allocation10] sm:$0xff] }
  0x76   : > { %747 = vmatprep.subr.mxu0 %v2595_v52  ;;  %814 = vmatprep.subr.mxu1 %v2597_v53  ;;  %3121 = vst [vmem:[#allocation35_spill] sm:$0xff] %v2677_v15  ;;  %3122 = vst [vmem:[#allocation36_spill] sm:$0xff] %v2679_v16  ;;  %v2687_v20 = vld [vmem:[#allocation10 + $0x50] sm:$0xff] }
  0x77   : > { %748 = vmatpush1.msra.mxu0 %v2601_v54  ;;  %815 = vmatpush1.msra.mxu1 %v2603_v55  ;;  %3123 = vst [vmem:[#allocation37_spill] sm:$0xff] %v2683_v17  ;;  %3124 = vst [vmem:[#allocation38_spill] sm:$0xff] %v2687_v20 }
  0x78   : > { %749 = vmatprep.subr.mxu0 %v2607_v56  ;;  %816 = vmatprep.subr.mxu1 %v2609_v57 }
  0x79   : > { %538 = vmatprep.mubr.f32.mxu0 %v3053_v6  ;;  %750 = vmatpush1.msra.mxu0 %v2613_v58 }
  0x7a   : > { %817 = vmatpush1.msra.mxu1 %v2617_v59  ;;  %1901 = vmatmul.mubr.msk.f32.gmra.mxu0 %vm449_vm0, %v409_v60 }
  0x7b   : > { %751 = vmatprep.subr.mxu0 %v2622_v61  ;;  %818 = vmatprep.subr.mxu1 %v2624_v62 }
  0x7c   : > { %621 = vmatprep.mubr.f32.mxu1 %v3053_v6  ;;  %752 = vmatpush1.msra.mxu0 %v2628_v63 }
  0x7d   : > { %819 = vmatpush1.msra.mxu1 %v2632_v0  ;;  %753 = vmatprep.subr.mxu0 %v2634_v1 }
  0x7e   : > { %1904 = vmatmul.mubr.msk.f32.gmra.mxu1 %vm449_vm0, %v408_v51  ;;  %820 = vmatprep.subr.mxu1 %v2638_v2  ;;  %v720_v51 = vld [vmem:[#allocation3] sm:$0xff] }
  0x7f   : > { %544 = vmatprep.mubr.f32.mxu0 %v3053_v6  ;;  %754 = vmatpush1.msra.mxu0 %v2642_v3 }
  0x80   : > { %821 = vmatpush1.msra.mxu1 %v2646_v4  ;;  %1902 = vmatmul.mubr.msk.f32.gmra.mxu0 %vm449_vm0, %v410_v5 }
  0x81   : > { %755 = vmatprep.subr.mxu0 %v2651_v7  ;;  %822 = vmatprep.subr.mxu1 %v2653_v8 }
  0x82   : > { %627 = vmatprep.mubr.f32.mxu1 %v3053_v6  ;;  %756 = vmatpush1.msra.mxu0 %v2657_v9 }
  0x83   : > { %823 = vmatpush1.msra.mxu1 %v2661_v10  ;;  %757 = vmatprep.subr.mxu0 %v2663_v11  ;;  %v2700_v11 = vld [vmem:[#allocation10 + $0x18] sm:$0xff] }
  0x84   : > { %1905 = vmatmul.mubr.msk.f32.gmra.mxu1 %vm449_vm0, %v409_v60  ;;  %824 = vmatprep.subr.mxu1 %v2667_v12  ;;  %v2693_v60 = vld [vmem:[#allocation10 + $0x38] sm:$0xff]  ;;  %3127 = vst [vmem:[#allocation41_spill] sm:$0xff] %v2700_v11 }
  0x85   : > { %758 = vmatpush1.msra.mxu0 %v2671_v13  ;;  %825 = vmatpush1.msra.mxu1 %v2673_v14  ;;  %3125 = vst [vmem:[#allocation39_spill] sm:$0xff] %v2693_v60  ;;  %v2697_v13 = vld [vmem:[#allocation10 + $0x30] sm:$0xff] }
  0x86   : > { %759 = vmatprep.subr.mxu0 %v2677_v15  ;;  %826 = vmatprep.subr.mxu1 %v2679_v16  ;;  %3126 = vst [vmem:[#allocation40_spill] sm:$0xff] %v2697_v13  ;;  %v2703_v15 = vld [vmem:[#allocation10 + $0x10] sm:$0xff] }
  0x87   : > { %633 = vmatprep.mubr.f32.mxu1 %v3053_v6  ;;  %760 = vmatpush1.msra.mxu0 %v2683_v17  ;;  %3128 = vst [vmem:[#allocation42_spill] sm:$0xff] %v2703_v15 }
  0x88   : > { %793 = vmatprep.mubr.f32.mxu0 %v3053_v6  ;;  %827 = vmatpush1.msra.mxu1 %v2687_v20 }
  0x89   : > { %1906 = vmatmul.mubr.msk.f32.gmra.mxu1 %vm449_vm0, %v410_v5  ;;  %794 = vmatmul.mubr.f32.vlgmr.msra.gmra.mxu0 %v720_v51  ;;  %v3129_v5 = vld [vmem:[#allocation31_spill] sm:$0xff] }
  0x8a   : > { %828 = vmatprep.subr.mxu1 %v2693_v60  ;;  %864 = vmatprep.mubr.f32.mxu1 %v3053_v6  ;;  %v3131_v6 = vld [vmem:[#allocation35_spill] sm:$0xff] }
  0x8b   : > { %829 = vmatpush1.msra.mxu1 %v2697_v13  ;;  %900 = vmatprep.subr.mxu0 %v2497_v18 }
  0x8c   : > { %830 = vmatprep.subr.mxu1 %v2700_v11  ;;  %901 = vmatpush1.msra.mxu0 %v2499_v19 }
  0x8d   : > { %831 = vmatpush1.msra.mxu1 %v2703_v15  ;;  %902 = vmatprep.subr.mxu0 %v2501_v21 }
  0x8e   : > { %865 = vmatmul.mubr.f32.vlgmr.msra.gmra.mxu1 %v720_v51  ;;  %971 = vmatprep.subr.mxu1 %v2507_v23  ;;  %v3130_v51 = vld [vmem:[#allocation33_spill] sm:$0xff] }
  0x8f   : > { %972 = vmatpush1.msra.mxu1 %v2516_v26  ;;  %903 = vmatpush1.msra.mxu0 %v2505_v22 }
  0x90   : > { %973 = vmatprep.subr.mxu1 %v2522_v28  ;;  %904 = vmatprep.subr.mxu0 %v2510_v24 }
  0x91   : > { %974 = vmatpush1.msra.mxu1 %v2528_v30  ;;  %905 = vmatpush1.msra.mxu0 %v2514_v25 }
  0x92   : > { %975 = vmatprep.subr.mxu1 %v2534_v32  ;;  %906 = vmatprep.subr.mxu0 %v2520_v27 }
  0x93   : > { %976 = vmatpush1.msra.mxu1 %v2540_v34  ;;  %907 = vmatpush1.msra.mxu0 %v2526_v29 }
  0x94   : > { %977 = vmatprep.subr.mxu1 %v2546_v36  ;;  %908 = vmatprep.subr.mxu0 %v2532_v31 }
  0x95   : > { %978 = vmatpush1.msra.mxu1 %v2552_v38  ;;  %909 = vmatpush1.msra.mxu0 %v2538_v33 }
  0x96   : > { %979 = vmatprep.subr.mxu1 %v2558_v40  ;;  %910 = vmatprep.subr.mxu0 %v2544_v35 }
  0x97   : > { %980 = vmatpush1.msra.mxu1 %v2564_v42  ;;  %911 = vmatpush1.msra.mxu0 %v2550_v37 }
  0x98   : > { %981 = vmatprep.subr.mxu1 %v2570_v44  ;;  %912 = vmatprep.subr.mxu0 %v2556_v39 }
  0x99   : > { %982 = vmatpush1.msra.mxu1 %v2576_v46  ;;  %913 = vmatpush1.msra.mxu0 %v2562_v41 }
  0x9a   : > { %983 = vmatprep.subr.mxu1 %v2582_v48  ;;  %914 = vmatprep.subr.mxu0 %v2568_v43 }
  0x9b   : > { %984 = vmatpush1.msra.mxu1 %v2590_v50  ;;  %915 = vmatpush1.msra.mxu0 %v2574_v45 }
  0x9c   : > { %985 = vmatprep.subr.mxu1 %v2597_v53  ;;  %916 = vmatprep.subr.mxu0 %v2580_v47 }
  0x9d   : > { %986 = vmatpush1.msra.mxu1 %v2603_v55  ;;  %917 = vmatpush1.msra.mxu0 %v2586_v49 }
  0x9e   : > { %987 = vmatprep.subr.mxu1 %v2609_v57  ;;  %918 = vmatprep.subr.mxu0 %v2595_v52 }
  0x9f   : > { %988 = vmatpush1.msra.mxu1 %v2617_v59  ;;  %919 = vmatpush1.msra.mxu0 %v2601_v54 }
  0xa0   : > { %989 = vmatprep.subr.mxu1 %v2624_v62  ;;  %920 = vmatprep.subr.mxu0 %v2607_v56 }
  0xa1   : > { %990 = vmatpush1.msra.mxu1 %v2632_v0  ;;  %921 = vmatpush1.msra.mxu0 %v2613_v58 }
  0xa2   : > { %991 = vmatprep.subr.mxu1 %v2638_v2  ;;  %922 = vmatprep.subr.mxu0 %v2622_v61 }
  0xa3   : > { %992 = vmatpush1.msra.mxu1 %v2646_v4  ;;  %923 = vmatpush1.msra.mxu0 %v2628_v63 }
  0xa4   : > { %993 = vmatprep.subr.mxu1 %v2653_v8  ;;  %924 = vmatprep.subr.mxu0 %v2634_v1 }
  0xa5   : > { %994 = vmatpush1.msra.mxu1 %v2661_v10  ;;  %925 = vmatpush1.msra.mxu0 %v2642_v3 }
  0xa6   : > { %995 = vmatprep.subr.mxu1 %v2667_v12  ;;  %926 = vmatprep.subr.mxu0 %v2651_v7  ;;  %v3132_v7 = vmov 0.0  }
  0xa7   : > { %996 = vmatpush1.msra.mxu1 %v2673_v14  ;;  %927 = vmatpush1.msra.mxu0 %v2657_v9 }
  0xa8   : > { %997 = vmatprep.subr.mxu1 %v2679_v16  ;;  %928 = vmatprep.subr.mxu0 %v3129_v5 }
  0xa9   : > { %998 = vmatpush1.msra.mxu1 %v2687_v20  ;;  %929 = vmatpush1.msra.mxu0 %v3130_v51  ;;  %v429_v51 = vlaneseq }
  0xaa   : > { %999 = vmatprep.subr.mxu1 %v2693_v60  ;;  %930 = vmatprep.subr.mxu0 %v3131_v6 }
  0xab   : > { %1000 = vmatpush1.msra.mxu1 %v2697_v13  ;;  %931 = vmatpush1.msra.mxu0 %v2683_v17  ;;  %v2777_v60 = vshrl.u32 %v429_v51, 7  ;;  %v427_v17 = vld [vmem:[%s3039_s2] sm:$0xf] }
  0xac   : > { %1001 = vmatprep.subr.mxu1 %v2700_v11  ;;  %964 = vmatprep.mubr.f32.mxu0 %v3132_v7 }
  0xad   : > { %1002 = vmatpush1.msra.mxu1 %v2703_v15  ;;  %1035 = vmatprep.mubr.f32.mxu1 %v3132_v7  ;;  %3133 = vst [vmem:[#allocation43_spill] sm:$0xff] %v2777_v60  ;;  %v3080_v6 = vsub.s32 0, %v2777_v60  ;;  %v435_v11 = vsub.s32 1, %v2777_v60  ;;  %v3087_v7 = vsub.s32 2, %v2777_v60 }
  0xae   : > { %1071 = vmatprep.subr.mxu0 %v2497_v18  ;;  %1142 = vmatprep.subr.mxu1 %v2507_v23  ;;  %v3090_v18 = vsub.s32 3, %v2777_v60 }
  0xaf   : > { %v432_v15 = vrot.slane %v427_v17, %v3080_v6  ;;  %v436_v13 = vrot.slane %v427_v17, %v435_v11  ;;  %v440_v51 = vrot.slane %v427_v17, %v3087_v7 }
  0xb0   : > { %v444_v16 = vrot.slane %v427_v17, %v3090_v18 }
 0x123   : > { %v528_v23 = vpop.f32.mrf.mxu0 }
 0x124   : > { %v2788_v5 = vadd.f32 %v528_v23, %v432_v15 }
 0x125   : > { %v530_v20 = vpop.f32.mrf.mxu0 }
 0x126   : > { %3134 = vst [vmem:[#allocation44_spill] sm:$0xff] %v2788_v5  ;;  %v2792_v9 = vadd.f32 %v530_v20, %v436_v13 }
 0x127   : > { %v617_v14 = vpop.f32.mrf.mxu1 }
 0x128   : > { %3135 = vst [vmem:[#allocation45_spill] sm:$0xff] %v2792_v9  ;;  %v2796_v3 = vadd.f32 %v617_v14, %v440_v51 }
 0x129   : > { %v619_v6 = vpop.f32.mrf.mxu1 }
 0x12a   : > { %3136 = vst [vmem:[#allocation46_spill] sm:$0xff] %v2796_v3  ;;  %v2798_v12 = vadd.f32 %v619_v6, %v444_v16 }
 0x12c   : > { %3137 = vst [vmem:[#allocation47_spill] sm:$0xff] %v2798_v12 }
 0x135   : > { %v534_v11 = vpop.f32.mrf.mxu0 }
 0x136   : > { %v2800_v1 = vadd.f32 %v534_v11, %v432_v15 }
 0x137   : > { %v536_v23 = vpop.f32.mrf.mxu0 }
 0x138   : > { %3138 = vst [vmem:[#allocation48_spill] sm:$0xff] %v2800_v1  ;;  %v2802_v5 = vadd.f32 %v536_v23, %v436_v13 }
 0x13a   : > { %3139 = vst [vmem:[#allocation49_spill] sm:$0xff] %v2802_v5  ;;  %v540_v10 = vpop.f32.mrf.mxu0 }
 0x13b   : > { %v2804_v7 = vadd.f32 %v540_v10, %v432_v15 }
 0x13c   : > { %v542_v20 = vpop.f32.mrf.mxu0 }
 0x13d   : > { %3140 = vst [vmem:[#allocation50_spill] sm:$0xff] %v2804_v7  ;;  %v2806_v9 = vadd.f32 %v542_v20, %v436_v13 }
 0x13e   : > { %v623_v60 = vpop.f32.mrf.mxu1 }
 0x13f   : > { %3141 = vst [vmem:[#allocation51_spill] sm:$0xff] %v2806_v9  ;;  %v2808_v17 = vadd.f32 %v623_v60, %v440_v51 }
 0x140   : > { %v625_v14 = vpop.f32.mrf.mxu1  ;;  %v546_v6 = vpop.f32.mrf.mxu0 }
 0x141   : > { %3142 = vst [vmem:[#allocation52_spill] sm:$0xff] %v2808_v17  ;;  %v2810_v18 = vadd.f32 %v625_v14, %v444_v16  ;;  %v547_v5 = vadd.f32 %v546_v6, %v432_v15 }
 0x142   : > { %v548_v1 = vpop.f32.mrf.mxu0 }
 0x143   : > { %3143 = vst [vmem:[#allocation53_spill] sm:$0xff] %v2810_v18  ;;  %v549_v63 = vadd.f32 %v548_v1, %v436_v13 }
 0x144   : > { %v629_v12 = vpop.f32.mrf.mxu1 }
 0x145   : > { %v2812_v3 = vadd.f32 %v629_v12, %v440_v51 }
 0x146   : > { %v631_v11 = vpop.f32.mrf.mxu1 }
 0x147   : > { %3144 = vst [vmem:[#allocation54_spill] sm:$0xff] %v2812_v3  ;;  %v2814_v23 = vadd.f32 %v631_v11, %v444_v16 }
 0x149   : > { %3145 = vst [vmem:[#allocation55_spill] sm:$0xff] %v2814_v23  ;;  %v635_v10 = vpop.f32.mrf.mxu1  ;;  %v795_v7 = vpop.f32.mrf.mxu0 }
 0x14a   : > { %v871_v20 = vadd.f32 %v795_v7, %v547_v5  ;;  %v636_v9 = vadd.f32 %v635_v10, %v440_v51  ;;  %v721_v5 = vld [vmem:[#allocation4] sm:$0xff]  ;;  %v3149_v10 = vld [vmem:[#allocation28_spill] sm:$0xff] }
 0x14b   : > { %v637_v8 = vpop.f32.mrf.mxu1  ;;  %v797_v60 = vpop.f32.mrf.mxu0 }
 0x14c   : > { %v875_v17 = vmul.f32 0.5, %v871_v20  ;;  %v872_v61 = vadd.f32 %v797_v60, %v549_v63  ;;  %v638_v12 = vadd.f32 %v637_v8, %v444_v16  ;;  %v3147_v16 = vld [vmem:[#allocation26_spill] sm:$0xff]  ;;  %v3150_v20 = vld [vmem:[#allocation23_spill] sm:$0xff] }
 0x14d   : > { %v3151_v60 = vld [vmem:[#allocation30_spill] sm:$0xff] }
 0x14e   : > { %2093 = vtanh.f32 %v875_v17  ;;  %v879_v14 = vmul.f32 0.5, %v872_v61  ;;  %v866_v18 = vpop.f32.mrf.mxu1 }
 0x14f   : > { %v873_v4 = vadd.f32 %v866_v18, %v636_v9 }
 0x150   : > { %2095 = vtanh.f32 %v879_v14  ;;  %v868_v3 = vpop.f32.mrf.mxu1  ;;  %v3152_v14 = vld [vmem:[#allocation24_spill] sm:$0xff] }
 0x151   : > { %2097 = vtanh.f32 %v873_v4  ;;  %v874_v11 = vadd.f32 %v868_v3, %v638_v12  ;;  %v3153_v12 = vld [vmem:[#allocation32_spill] sm:$0xff] }
 0x153   : > { %v884_v23 = vmul.f32 0.5, %v874_v11  ;;  %v3154_v11 = vld [vmem:[#allocation25_spill] sm:$0xff] }
 0x155   : > { %2099 = vtanh.f32 %v884_v23  ;;  %v3148_v23 = vld [vmem:[#allocation22_spill] sm:$0xff] }
 0x15b   : > { %v2094_v15 = vpop.eup %2093 }
 0x15c   : > { %v877_v6 = vmul.f32 0.5, %v2094_v15  ;;  %v3155_v15 = vld [vmem:[#allocation34_spill] sm:$0xff] }
 0x15d   : > { %v2096_v58 = vpop.eup %2095 }
 0x15e   : > { %v878_v1 = vadd.f32 0.5, %v877_v6  ;;  %v881_v7 = vmul.f32 0.5, %v2096_v58  ;;  %v2098_v13 = vpop.eup %2097  ;;  %v3146_v58 = vld [vmem:[#allocation21_spill] sm:$0xff]  ;;  %v3156_v6 = vld [vmem:[#allocation27_spill] sm:$0xff] }
 0x160   : > { %v882_v51 = vadd.f32 0.5, %v881_v7  ;;  %v889_v17 = vmul.f32 %v2098_v13, %v878_v1  ;;  %v3157_v1 = vld [vmem:[#allocation36_spill] sm:$0xff]  ;;  %v3158_v7 = vld [vmem:[#allocation29_spill] sm:$0xff]  ;;  %v3159_v13 = vld [vmem:[#allocation38_spill] sm:$0xff] }
 0x162   : > { %v888_v63 = vmul.f32 %v882_v51, %v721_v5  ;;  %v2100_v18 = vpop.eup %2099  ;;  %v3160_v5 = vld [vmem:[#allocation31_spill] sm:$0xff] }
 0x163   : > { %v886_v4 = vmul.f32 0.5, %v2100_v18  ;;  %v3161_v51 = vld [vmem:[#allocation39_spill] sm:$0xff] }
 0x164   : > { %v2816_v61 = vadd.f32 %v889_v17, %v888_v63  ;;  %v3162_v63 = vld [vmem:[#allocation33_spill] sm:$0xff]  ;;  %v3163_v17 = vld [vmem:[#allocation40_spill] sm:$0xff]  ;;  %v3164_v18 = vld [vmem:[#allocation35_spill] sm:$0xff] }
 0x165   : > { %v887_v8 = vadd.f32 0.5, %v886_v4  ;;  %v3165_v4 = vld [vmem:[#allocation41_spill] sm:$0xff] }
 0x166   : > { %2101 = vtanh.f32 %v2816_v61 }
 0x173   : > { %v2102_v3 = vpop.eup %2101 }
 0x174   : > { %v892_v9 = vmul.f32 %v2102_v3, %v887_v8  ;;  %v3166_v8 = vld [vmem:[#allocation37_spill] sm:$0xff]  ;;  %v3167_v3 = vmov 0.0  }
 0x176   : > { %965 = vmatmul.mubr.f32.vlgmr.msra.gmra.mxu0 %v892_v9  ;;  %1036 = vmatmul.mubr.f32.vlgmr.msra.gmra.mxu1 %v892_v9  ;;  %v3168_v9 = vld [vmem:[#allocation42_spill] sm:$0xff] }
 0x177   : > { %1072 = vmatpush1.msra.mxu0 %v2499_v19  ;;  %1143 = vmatpush1.msra.mxu1 %v2516_v26 }
 0x178   : > { %1073 = vmatprep.subr.mxu0 %v2501_v21  ;;  %1144 = vmatprep.subr.mxu1 %v2522_v28 }
 0x179   : > { %1074 = vmatpush1.msra.mxu0 %v2505_v22  ;;  %1145 = vmatpush1.msra.mxu1 %v2528_v30 }
 0x17a   : > { %1075 = vmatprep.subr.mxu0 %v2510_v24  ;;  %1146 = vmatprep.subr.mxu1 %v2534_v32 }
 0x17b   : > { %1076 = vmatpush1.msra.mxu0 %v2514_v25  ;;  %1147 = vmatpush1.msra.mxu1 %v2540_v34 }
 0x17c   : > { %1077 = vmatprep.subr.mxu0 %v2520_v27  ;;  %1148 = vmatprep.subr.mxu1 %v2546_v36 }
 0x17d   : > { %1078 = vmatpush1.msra.mxu0 %v2526_v29  ;;  %1149 = vmatpush1.msra.mxu1 %v2552_v38 }
 0x17e   : > { %1079 = vmatprep.subr.mxu0 %v2532_v31  ;;  %1150 = vmatprep.subr.mxu1 %v2558_v40 }
 0x17f   : > { %1080 = vmatpush1.msra.mxu0 %v2538_v33  ;;  %1151 = vmatpush1.msra.mxu1 %v2564_v42 }
 0x180   : > { %1081 = vmatprep.subr.mxu0 %v2544_v35  ;;  %1152 = vmatprep.subr.mxu1 %v2570_v44 }
 0x181   : > { %1082 = vmatpush1.msra.mxu0 %v2550_v37  ;;  %1153 = vmatpush1.msra.mxu1 %v2576_v46 }
 0x182   : > { %1083 = vmatprep.subr.mxu0 %v2556_v39  ;;  %1154 = vmatprep.subr.mxu1 %v2582_v48 }
 0x183   : > { %1084 = vmatpush1.msra.mxu0 %v2562_v41  ;;  %1155 = vmatpush1.msra.mxu1 %v2590_v50 }
 0x184   : > { %1085 = vmatprep.subr.mxu0 %v2568_v43  ;;  %1156 = vmatprep.subr.mxu1 %v2597_v53 }
 0x185   : > { %1086 = vmatpush1.msra.mxu0 %v2574_v45  ;;  %1157 = vmatpush1.msra.mxu1 %v2603_v55 }
 0x186   : > { %1087 = vmatprep.subr.mxu0 %v2580_v47  ;;  %1158 = vmatprep.subr.mxu1 %v2609_v57 }
 0x187   : > { %1088 = vmatpush1.msra.mxu0 %v2586_v49  ;;  %1159 = vmatpush1.msra.mxu1 %v2617_v59 }
 0x188   : > { %1089 = vmatprep.subr.mxu0 %v2595_v52  ;;  %1160 = vmatprep.subr.mxu1 %v2624_v62 }
 0x189   : > { %1090 = vmatpush1.msra.mxu0 %v2601_v54  ;;  %1161 = vmatpush1.msra.mxu1 %v2632_v0 }
 0x18a   : > { %1091 = vmatprep.subr.mxu0 %v2607_v56  ;;  %1162 = vmatprep.subr.mxu1 %v2638_v2 }
 0x18b   : > { %1092 = vmatpush1.msra.mxu0 %v3146_v58  ;;  %1163 = vmatpush1.msra.mxu1 %v3147_v16 }
 0x18c   : > { %1093 = vmatprep.subr.mxu0 %v3148_v23  ;;  %1164 = vmatprep.subr.mxu1 %v3149_v10 }
 0x18d   : > { %1094 = vmatpush1.msra.mxu0 %v3150_v20  ;;  %1165 = vmatpush1.msra.mxu1 %v3151_v60 }
 0x18e   : > { %1095 = vmatprep.subr.mxu0 %v3152_v14  ;;  %1166 = vmatprep.subr.mxu1 %v3153_v12 }
 0x18f   : > { %1096 = vmatpush1.msra.mxu0 %v3154_v11  ;;  %1167 = vmatpush1.msra.mxu1 %v3155_v15 }
 0x190   : > { %1097 = vmatprep.subr.mxu0 %v3156_v6  ;;  %1168 = vmatprep.subr.mxu1 %v3157_v1  ;;  %v3172_v6 = vld [vmem:[#allocation51_spill] sm:$0xff] }
 0x191   : > { %1098 = vmatpush1.msra.mxu0 %v3158_v7  ;;  %1169 = vmatpush1.msra.mxu1 %v3159_v13  ;;  %v3169_v13 = vld [vmem:[#allocation19_spill] sm:$0xff] }
 0x192   : > { %1099 = vmatprep.subr.mxu0 %v3160_v5  ;;  %1170 = vmatprep.subr.mxu1 %v3161_v51  ;;  %v3170_v5 = vld [vmem:[#allocation20_spill] sm:$0xff] }
 0x193   : > { %1100 = vmatpush1.msra.mxu0 %v3162_v63  ;;  %1171 = vmatpush1.msra.mxu1 %v3163_v17  ;;  %v3171_v63 = vld [vmem:[#allocation50_spill] sm:$0xff] }
 0x194   : > { %1101 = vmatprep.subr.mxu0 %v3164_v18  ;;  %1172 = vmatprep.subr.mxu1 %v3165_v4 }
 0x195   : > { %1102 = vmatpush1.msra.mxu0 %v3166_v8  ;;  %1135 = vmatprep.mubr.f32.mxu0 %v3167_v3  ;;  %v3173_v8 = vld [vmem:[#allocation54_spill] sm:$0xff] }
 0x196   : > { %1173 = vmatpush1.msra.mxu1 %v3168_v9  ;;  %1206 = vmatprep.mubr.f32.mxu1 %v3167_v3  ;;  %v3174_v3 = vld [vmem:[#allocation55_spill] sm:$0xff] }
 0x197   : > { %1242 = vmatprep.subr.mxu0 %v3169_v13  ;;  %1313 = vmatprep.subr.mxu1 %v3170_v5 }
 0x236   : > { %v966_v51 = vpop.f32.mrf.mxu0  ;;  %v1037_v17 = vpop.f32.mrf.mxu1 }
 0x237   : > { %v1042_v7 = vadd.f32 %v966_v51, %v3171_v63  ;;  %v1044_v15 = vadd.f32 %v1037_v17, %v3173_v8 }
 0x238   : > { %v968_v1 = vpop.f32.mrf.mxu0  ;;  %v1039_v9 = vpop.f32.mrf.mxu1 }
 0x239   : > { %v1046_v18 = vmul.f32 0.5, %v1042_v7  ;;  %v1043_v4 = vadd.f32 %v968_v1, %v3172_v6  ;;  %v1045_v12 = vadd.f32 %v1039_v9, %v3174_v3  ;;  %v3199_v9 = vld [vmem:[#allocation44_spill] sm:$0xff] }
 0x23b   : > { %2103 = vtanh.f32 %v1046_v18  ;;  %v1050_v11 = vmul.f32 0.5, %v1043_v4  ;;  %v1055_v13 = vmul.f32 0.5, %v1045_v12 }
 0x23d   : > { %2105 = vtanh.f32 %v1050_v11 }
 0x23e   : > { %2107 = vtanh.f32 %v1044_v15 }
 0x23f   : > { %2109 = vtanh.f32 %v1055_v13 }
 0x248   : > { %v2104_v14 = vpop.eup %2103 }
 0x249   : > { %v1048_v5 = vmul.f32 0.5, %v2104_v14 }
 0x24a   : > { %v2106_v60 = vpop.eup %2105 }
 0x24b   : > { %v1049_v20 = vadd.f32 0.5, %v1048_v5  ;;  %v1052_v51 = vmul.f32 0.5, %v2106_v60  ;;  %v2108_v63 = vpop.eup %2107 }
 0x24c   : > { %v2110_v11 = vpop.eup %2109 }
 0x24d   : > { %v1053_v7 = vadd.f32 0.5, %v1052_v51  ;;  %v1060_v10 = vmul.f32 %v2108_v63, %v1049_v20  ;;  %v1057_v15 = vmul.f32 0.5, %v2110_v11  ;;  %v3201_v11 = vld [vmem:[#allocation46_spill] sm:$0xff] }
 0x24f   : > { %v1059_v6 = vmul.f32 %v1053_v7, %v2816_v61  ;;  %v1058_v17 = vadd.f32 0.5, %v1057_v15  ;;  %v3200_v7 = vld [vmem:[#allocation45_spill] sm:$0xff] }
 0x251   : > { %v2890_v1 = vadd.f32 %v1060_v10, %v1059_v6 }
 0x253   : > { %2111 = vtanh.f32 %v2890_v1 }
 0x260   : > { %v2112_v18 = vpop.eup %2111 }
 0x261   : > { %v1063_v12 = vmul.f32 %v2112_v18, %v1058_v17  ;;  %v3202_v18 = vld [vmem:[#allocation47_spill] sm:$0xff] }
 0x263   : > { %1136 = vmatmul.mubr.f32.vlgmr.msra.gmra.mxu0 %v1063_v12  ;;  %1207 = vmatmul.mubr.f32.vlgmr.msra.gmra.mxu1 %v1063_v12 }
 0x264   : > { %1243 = vmatpush1.msra.mxu0 %v2499_v19  ;;  %1314 = vmatpush1.msra.mxu1 %v2516_v26  ;;  %v3175_v19 = vld [vmem:[#allocation28_spill] sm:$0xff]  ;;  %v3180_v26 = vld [vmem:[#allocation25_spill] sm:$0xff] }
 0x265   : > { %1244 = vmatprep.subr.mxu0 %v2501_v21  ;;  %1315 = vmatprep.subr.mxu1 %v2522_v28  ;;  %v3176_v21 = vld [vmem:[#allocation23_spill] sm:$0xff] }
 0x266   : > { %1245 = vmatpush1.msra.mxu0 %v2505_v22  ;;  %1316 = vmatpush1.msra.mxu1 %v2528_v30  ;;  %v3177_v22 = vld [vmem:[#allocation30_spill] sm:$0xff]  ;;  %v3182_v28 = vld [vmem:[#allocation27_spill] sm:$0xff]  ;;  %v3184_v30 = vld [vmem:[#allocation29_spill] sm:$0xff] }
 0x267   : > { %1246 = vmatprep.subr.mxu0 %v2510_v24  ;;  %1317 = vmatprep.subr.mxu1 %v2534_v32  ;;  %v3178_v24 = vld [vmem:[#allocation24_spill] sm:$0xff]  ;;  %v3186_v32 = vld [vmem:[#allocation31_spill] sm:$0xff] }
 0x268   : > { %1247 = vmatpush1.msra.mxu0 %v2514_v25  ;;  %1318 = vmatpush1.msra.mxu1 %v2540_v34  ;;  %v3179_v25 = vld [vmem:[#allocation32_spill] sm:$0xff]  ;;  %v3188_v34 = vld [vmem:[#allocation33_spill] sm:$0xff] }
 0x269   : > { %1248 = vmatprep.subr.mxu0 %v2520_v27  ;;  %1319 = vmatprep.subr.mxu1 %v2546_v36  ;;  %v3181_v27 = vld [vmem:[#allocation34_spill] sm:$0xff]  ;;  %v3190_v36 = vld [vmem:[#allocation35_spill] sm:$0xff] }
 0x26a   : > { %1249 = vmatpush1.msra.mxu0 %v2526_v29  ;;  %1320 = vmatpush1.msra.mxu1 %v2552_v38  ;;  %v3183_v29 = vld [vmem:[#allocation36_spill] sm:$0xff]  ;;  %v3192_v38 = vld [vmem:[#allocation37_spill] sm:$0xff] }
 0x26b   : > { %1250 = vmatprep.subr.mxu0 %v2532_v31  ;;  %1321 = vmatprep.subr.mxu1 %v2558_v40  ;;  %v3185_v31 = vld [vmem:[#allocation38_spill] sm:$0xff] }
 0x26c   : > { %1251 = vmatpush1.msra.mxu0 %v2538_v33  ;;  %1322 = vmatpush1.msra.mxu1 %v2564_v42  ;;  %v3187_v33 = vld [vmem:[#allocation39_spill] sm:$0xff]  ;;  %v3194_v40 = vld [vmem:[#allocation42_spill] sm:$0xff]  ;;  %v3195_v42 = vld [vmem:[#allocation48_spill] sm:$0xff] }
 0x26d   : > { %1252 = vmatprep.subr.mxu0 %v2544_v35  ;;  %1323 = vmatprep.subr.mxu1 %v2570_v44  ;;  %v3189_v35 = vld [vmem:[#allocation40_spill] sm:$0xff] }
 0x26e   : > { %1253 = vmatpush1.msra.mxu0 %v2550_v37  ;;  %1324 = vmatpush1.msra.mxu1 %v2576_v46  ;;  %v3191_v37 = vld [vmem:[#allocation41_spill] sm:$0xff] }
 0x26f   : > { %1254 = vmatprep.subr.mxu0 %v2556_v39  ;;  %1325 = vmatprep.subr.mxu1 %v2582_v48  ;;  %v3193_v39 = vmov 0.0  }
 0x270   : > { %1255 = vmatpush1.msra.mxu0 %v2562_v41  ;;  %1326 = vmatpush1.msra.mxu1 %v2590_v50 }
 0x271   : > { %1256 = vmatprep.subr.mxu0 %v2568_v43  ;;  %1327 = vmatprep.subr.mxu1 %v2597_v53 }
 0x272   : > { %1257 = vmatpush1.msra.mxu0 %v2574_v45  ;;  %1328 = vmatpush1.msra.mxu1 %v2603_v55 }
 0x273   : > { %1258 = vmatprep.subr.mxu0 %v2580_v47  ;;  %1329 = vmatprep.subr.mxu1 %v2609_v57  ;;  %v3196_v47 = vld [vmem:[#allocation49_spill] sm:$0xff] }
 0x274   : > { %1259 = vmatpush1.msra.mxu0 %v2586_v49  ;;  %1330 = vmatpush1.msra.mxu1 %v2617_v59  ;;  %v3197_v49 = vld [vmem:[#allocation52_spill] sm:$0xff] }
 0x275   : > { %1260 = vmatprep.subr.mxu0 %v2595_v52  ;;  %1331 = vmatprep.subr.mxu1 %v2624_v62 }
 0x276   : > { %1261 = vmatpush1.msra.mxu0 %v2601_v54  ;;  %1332 = vmatpush1.msra.mxu1 %v2632_v0  ;;  %v3198_v54 = vld [vmem:[#allocation53_spill] sm:$0xff] }
 0x277   : > { %1262 = vmatprep.subr.mxu0 %v2607_v56  ;;  %1333 = vmatprep.subr.mxu1 %v2638_v2 }
 0x278   : > { %1263 = vmatpush1.msra.mxu0 %v3146_v58  ;;  %1334 = vmatpush1.msra.mxu1 %v3147_v16 }
 0x279   : > { %1264 = vmatprep.subr.mxu0 %v3148_v23  ;;  %1335 = vmatprep.subr.mxu1 %v3175_v19 }
 0x27a   : > { %1265 = vmatpush1.msra.mxu0 %v3176_v21  ;;  %1336 = vmatpush1.msra.mxu1 %v3177_v22 }
 0x27b   : > { %1266 = vmatprep.subr.mxu0 %v3178_v24  ;;  %1337 = vmatprep.subr.mxu1 %v3179_v25 }
 0x27c   : > { %1267 = vmatpush1.msra.mxu0 %v3180_v26  ;;  %1338 = vmatpush1.msra.mxu1 %v3181_v27 }
 0x27d   : > { %1268 = vmatprep.subr.mxu0 %v3182_v28  ;;  %1339 = vmatprep.subr.mxu1 %v3183_v29 }
 0x27e   : > { %1269 = vmatpush1.msra.mxu0 %v3184_v30  ;;  %1340 = vmatpush1.msra.mxu1 %v3185_v31 }
 0x27f   : > { %1270 = vmatprep.subr.mxu0 %v3186_v32  ;;  %1341 = vmatprep.subr.mxu1 %v3187_v33 }
 0x280   : > { %1271 = vmatpush1.msra.mxu0 %v3188_v34  ;;  %1342 = vmatpush1.msra.mxu1 %v3189_v35 }
 0x281   : > { %1272 = vmatprep.subr.mxu0 %v3190_v36  ;;  %1343 = vmatprep.subr.mxu1 %v3191_v37 }
 0x282   : > { %1273 = vmatpush1.msra.mxu0 %v3192_v38  ;;  %1306 = vmatprep.mubr.f32.mxu0 %v3193_v39 }
 0x283   : > { %1344 = vmatpush1.msra.mxu1 %v3194_v40  ;;  %1377 = vmatprep.mubr.f32.mxu1 %v3193_v39 }
 0x323   : > { %v1137_v41 = vpop.f32.mrf.mxu0  ;;  %v1208_v44 = vpop.f32.mrf.mxu1 }
 0x324   : > { %v1213_v43 = vadd.f32 %v1137_v41, %v3195_v42  ;;  %v1215_v50 = vadd.f32 %v1208_v44, %v3197_v49 }
 0x325   : > { %v1139_v45 = vpop.f32.mrf.mxu0  ;;  %v1210_v53 = vpop.f32.mrf.mxu1 }
 0x326   : > { %v1217_v46 = vmul.f32 0.5, %v1213_v43  ;;  %v1214_v48 = vadd.f32 %v1139_v45, %v3196_v47  ;;  %v1216_v55 = vadd.f32 %v1210_v53, %v3198_v54 }
 0x328   : > { %2113 = vtanh.f32 %v1217_v46  ;;  %v1221_v52 = vmul.f32 0.5, %v1214_v48  ;;  %v1226_v56 = vmul.f32 0.5, %v1216_v55 }
 0x32a   : > { %2115 = vtanh.f32 %v1221_v52 }
 0x32b   : > { %2117 = vtanh.f32 %v1215_v50 }
 0x32c   : > { %2119 = vtanh.f32 %v1226_v56 }
 0x335   : > { %v2114_v57 = vpop.eup %2113 }
 0x336   : > { %v1219_v59 = vmul.f32 0.5, %v2114_v57 }
 0x337   : > { %v2116_v62 = vpop.eup %2115 }
 0x338   : > { %v1220_v0 = vadd.f32 0.5, %v1219_v59  ;;  %v1223_v2 = vmul.f32 0.5, %v2116_v62  ;;  %v2118_v61 = vpop.eup %2117 }
 0x339   : > { %v2120_v20 = vpop.eup %2119 }
 0x33a   : > { %v1224_v58 = vadd.f32 0.5, %v1223_v2  ;;  %v1231_v16 = vmul.f32 %v2118_v61, %v1220_v0  ;;  %v1228_v60 = vmul.f32 0.5, %v2120_v20 }
 0x33c   : > { %v1230_v23 = vmul.f32 %v1224_v58, %v2890_v1  ;;  %v1229_v14 = vadd.f32 0.5, %v1228_v60 }
 0x33e   : > { %v1232_v10 = vadd.f32 %v1231_v16, %v1230_v23 }
 0x340   : > { %2121 = vtanh.f32 %v1232_v10 }
 0x34d   : > { %v2122_v4 = vpop.eup %2121 }
 0x34e   : > { %v1234_v8 = vmul.f32 %v2122_v4, %v1229_v14 }
 0x350   : > { %1307 = vmatmul.mubr.f32.vlgmr.msra.gmra.mxu0 %v1234_v8  ;;  %1378 = vmatmul.mubr.f32.vlgmr.msra.gmra.mxu1 %v1234_v8 }
 0x410   : > { %v1308_v3 = vpop.f32.mrf.mxu0  ;;  %v1379_v5 = vpop.f32.mrf.mxu1 }
 0x411   : > { %v1384_v13 = vadd.f32 %v1308_v3, %v3199_v9  ;;  %v1386_v1 = vadd.f32 %v1379_v5, %v3201_v11 }
 0x412   : > { %v1310_v51 = vpop.f32.mrf.mxu0  ;;  %v1381_v17 = vpop.f32.mrf.mxu1 }
 0x413   : > { %v1388_v63 = vmul.f32 0.5, %v1384_v13  ;;  %v1385_v6 = vadd.f32 %v1310_v51, %v3200_v7  ;;  %v1387_v12 = vadd.f32 %v1381_v17, %v3202_v18 }
 0x415   : > { %2123 = vtanh.f32 %v1388_v63  ;;  %v1392_v15 = vmul.f32 0.5, %v1385_v6  ;;  %v1397_v19 = vmul.f32 0.5, %v1387_v12 }
 0x417   : > { %2125 = vtanh.f32 %v1392_v15 }
 0x418   : > { %2127 = vtanh.f32 %v1386_v1 }
 0x419   : > { %2129 = vtanh.f32 %v1397_v19 }
 0x422   : > { %v2124_v21 = vpop.eup %2123 }
 0x423   : > { %v1390_v22 = vmul.f32 0.5, %v2124_v21 }
 0x424   : > { %v2126_v24 = vpop.eup %2125 }
 0x425   : > { %v1391_v25 = vadd.f32 0.5, %v1390_v22  ;;  %v1394_v26 = vmul.f32 0.5, %v2126_v24  ;;  %v2128_v27 = vpop.eup %2127 }
 0x426   : > { %v2130_v32 = vpop.eup %2129 }
 0x427   : > { %v1395_v28 = vadd.f32 0.5, %v1394_v26  ;;  %v1402_v29 = vmul.f32 %v2128_v27, %v1391_v25  ;;  %v1399_v33 = vmul.f32 0.5, %v2130_v32 }
 0x429   : > { %v1401_v30 = vmul.f32 %v1395_v28, %v1232_v10  ;;  %v1400_v34 = vadd.f32 0.5, %v1399_v33 }
 0x42b   : > { %v1403_v31 = vadd.f32 %v1402_v29, %v1401_v30 }
 0x42d   : > { %2131 = vtanh.f32 %v1403_v31  ;;  %1407 = vst [vmem:[#allocation4] sm:$0xff] %v1403_v31 }
 0x439   : > { %1411 = sbr.rel (%p1907_p2) target bundleno = 1526 (0x5f6), region = 84 }
 0x43a   : > { %v2132_v35 = vpop.eup %2131 }
 0x43b   : > { %v2966_v36 = vmul.f32 %v2132_v35, %v1400_v34 }
 0x43d   : > { %1406 = vst [vmem:[#allocation3] sm:$0xff] %v2966_v36 }
 0x43e   : > { %v1426_v37 = vld [vmem:[#allocation8 + $0x68] sm:$0xff]  ;;  %v1425_v38 = vld [vmem:[#allocation8 + $0x60] sm:$0xff]  ;;  %v1428_v41 = vld [vmem:[#allocation8 + $0x78] sm:$0xff]  ;;  %v2330_v42 = vmov 0.0   ;;  %vm2331_vm1 = vmmov 0  }
 0x43f   : > { %v1422_v39 = vld [vmem:[#allocation8 + $0x48] sm:$0xff]  ;;  %1473 = vmatprep.subr.mxu0 %v1426_v37  ;;  %v1421_v40 = vld [vmem:[#allocation8 + $0x40] sm:$0xff]  ;;  %1513 = vmatprep.mubr.f32.mxu0 %v2330_v42  ;;  %v1427_v44 = vld [vmem:[#allocation8 + $0x70] sm:$0xff] }
 0x440   : > { %1474 = vmatpush1.msra.mxu0 %v1425_v38  ;;  %v1418_v43 = vld [vmem:[#allocation8 + $0x28] sm:$0xff]  ;;  %1543 = vmatprep.subr.mxu1 %v1428_v41  ;;  %v1417_v45 = vld [vmem:[#allocation8 + $0x20] sm:$0xff]  ;;  %v1424_v46 = vld [vmem:[#allocation8 + $0x58] sm:$0xff] }
 0x441   : > { %1475 = vmatprep.subr.mxu0 %v1422_v39  ;;  %1544 = vmatpush1.msra.mxu1 %v1427_v44  ;;  %v1423_v47 = vld [vmem:[#allocation8 + $0x50] sm:$0xff]  ;;  %v1414_v48 = vld [vmem:[#allocation8 + $0x8] sm:$0xff]  ;;  %v1420_v49 = vld [vmem:[#allocation8 + $0x38] sm:$0xff] }
 0x442   : > { %1476 = vmatpush1.msra.mxu0 %v1421_v40  ;;  %1545 = vmatprep.subr.mxu1 %v1424_v46  ;;  %v1419_v50 = vld [vmem:[#allocation8 + $0x30] sm:$0xff]  ;;  %v1413_v52 = vld [vmem:[#allocation8] sm:$0xff]  ;;  %v1416_v53 = vld [vmem:[#allocation8 + $0x18] sm:$0xff] }
 0x443   : > { %1477 = vmatprep.subr.mxu0 %v1418_v43  ;;  %1546 = vmatpush1.msra.mxu1 %v1423_v47  ;;  %v1412_v54 = vld [vmem:[%s2491_s27] sm:$0xff]  ;;  %v1633_v56 = vld [vmem:[#allocation13 + $0x78] sm:$0xff]  ;;  %v1631_v62 = vld [vmem:[#allocation13 + $0x68] sm:$0xff] }
 0x444   : > { %1478 = vmatpush1.msra.mxu0 %v1417_v45  ;;  %1547 = vmatprep.subr.mxu1 %v1420_v49  ;;  %v1415_v55 = vld [vmem:[#allocation8 + $0x10] sm:$0xff]  ;;  %v1617_v59 = vld [vmem:[#allocation11 + $0x78] sm:$0xff]  ;;  %v1630_v2 = vld [vmem:[#allocation13 + $0x60] sm:$0xff] }
 0x445   : > { %1479 = vmatprep.subr.mxu0 %v1414_v48  ;;  %1548 = vmatpush1.msra.mxu1 %v1419_v50  ;;  %v1632_v57 = vld [vmem:[#allocation13 + $0x70] sm:$0xff]  ;;  %v1615_v61 = vld [vmem:[#allocation11 + $0x68] sm:$0xff]  ;;  %v1629_v58 = vld [vmem:[#allocation13 + $0x58] sm:$0xff] }
 0x446   : > { %1480 = vmatpush1.msra.mxu0 %v1413_v52  ;;  %1549 = vmatprep.subr.mxu1 %v1416_v53  ;;  %v1616_v0 = vld [vmem:[#allocation11 + $0x70] sm:$0xff]  ;;  %v1614_v16 = vld [vmem:[#allocation11 + $0x60] sm:$0xff]  ;;  %v1613_v10 = vld [vmem:[#allocation11 + $0x58] sm:$0xff] }
 0x447   : > { %1908 = vmatmul.mubr.msk.f32.vlgmr.msra.gmra.mxu0 %vm449_vm0, %v1412_v54  ;;  %1550 = vmatpush1.msra.mxu1 %v1415_v55  ;;  %v1628_v23 = vld [vmem:[#allocation13 + $0x50] sm:$0xff]  ;;  %v1627_v20 = vld [vmem:[#allocation13 + $0x48] sm:$0xff]  ;;  %v1626_v14 = vld [vmem:[#allocation13 + $0x40] sm:$0xff] }
 0x448   : > { %1583 = vmatprep.mubr.f32.mxu1 %v2330_v42  ;;  %1949 = vmatprep.subr.mxu0 %v2330_v42  ;;  %v1612_v60 = vld [vmem:[#allocation11 + $0x50] sm:$0xff]  ;;  %v1611_v4 = vld [vmem:[#allocation11 + $0x48] sm:$0xff]  ;;  %v1625_v8 = vld [vmem:[#allocation13 + $0x38] sm:$0xff] }
 0x449   : > { %1909 = vmatmul.mubr.msk.f32.vlgmr.msra.gmra.mxu1 %vm449_vm0, %v1412_v54  ;;  %1984 = vmatprep.subr.mxu1 %v2330_v42  ;;  %v1610_v3 = vld [vmem:[#allocation11 + $0x40] sm:$0xff]  ;;  %v1624_v9 = vld [vmem:[#allocation13 + $0x30] sm:$0xff]  ;;  %v1609_v13 = vld [vmem:[#allocation11 + $0x38] sm:$0xff] }
 0x44a   : > { %1950 = vmatpush3.msra.mxu0 %v1633_v56  ;;  %1985 = vmatpush3.msra.mxu1 %v1617_v59  ;;  %v1623_v5 = vld [vmem:[#allocation13 + $0x28] sm:$0xff]  ;;  %v1608_v51 = vld [vmem:[#allocation11 + $0x30] sm:$0xff]  ;;  %v1622_v63 = vld [vmem:[#allocation13 + $0x20] sm:$0xff] }
 0x44b   : > { %1951 = vmatprep.subr.mxu0 %v2330_v42  ;;  %1986 = vmatprep.subr.mxu1 %v2330_v42  ;;  %v1607_v7 = vld [vmem:[#allocation11 + $0x28] sm:$0xff]  ;;  %v1621_v6 = vld [vmem:[#allocation13 + $0x18] sm:$0xff]  ;;  %v1606_v11 = vld [vmem:[#allocation11 + $0x20] sm:$0xff] }
 0x44c   : > { %1952 = vmatpush3.msra.mxu0 %v1632_v57  ;;  %1987 = vmatpush3.msra.mxu1 %v1616_v0  ;;  %v1620_v1 = vld [vmem:[#allocation13 + $0x10] sm:$0xff]  ;;  %v1605_v15 = vld [vmem:[#allocation11 + $0x18] sm:$0xff]  ;;  %v1619_v17 = vld [vmem:[#allocation13 + $0x8] sm:$0xff] }
 0x44d   : > { %1953 = vmatprep.subr.mxu0 %v2330_v42  ;;  %1988 = vmatprep.subr.mxu1 %v2330_v42  ;;  %v1604_v18 = vld [vmem:[#allocation11 + $0x10] sm:$0xff]  ;;  %v1618_v12 = vld [vmem:[#allocation13] sm:$0xff]  ;;  %v1603_v19 = vld [vmem:[#allocation11 + $0x8] sm:$0xff] }
 0x44e   : > { %1954 = vmatpush3.msra.mxu0 %v1631_v62  ;;  %1989 = vmatpush3.msra.mxu1 %v1615_v61  ;;  %v1602_v21 = vld [vmem:[#allocation11] sm:$0xff]  ;;  %v1429_v22 = vld [vmem:[%s3041_s4] sm:$0xf]  ;;  %v3203_v24 = vld [vmem:[#allocation43_spill] sm:$0xff] }
 0x44f   : > { %1955 = vmatprep.subr.mxu0 %v2330_v42  ;;  %1990 = vmatprep.subr.mxu1 %v2330_v42  ;;  %v3204_v25 = vsub.s32 0, %v3203_v24  ;;  %v3205_v27 = vsub.s32 2, %v3203_v24  ;;  %v3206_v35 = vsub.s32 3, %v3203_v24  ;;  %v1910_v54 = vld [vmem:[%s3045_s8] ss:$0 sm:$0xff] }
 0x450   : > { %1956 = vmatpush3.msra.mxu0 %v1630_v2  ;;  %1991 = vmatpush3.msra.mxu1 %v1614_v16 }
 0x451   : > { %1957 = vmatprep.subr.mxu0 %v2330_v42  ;;  %1992 = vmatprep.subr.mxu1 %v2330_v42  ;;  %v1434_v26 = vrot.slane %v1429_v22, %v3204_v25  ;;  %v1438_v28 = vrot.slane %v1429_v22, %v3205_v27 }
 0x452   : > { %1958 = vmatpush3.msra.mxu0 %v1629_v58  ;;  %1993 = vmatpush3.msra.mxu1 %v1613_v10 }
 0x453   : > { %1959 = vmatprep.subr.mxu0 %v2330_v42  ;;  %1994 = vmatprep.subr.mxu1 %v2330_v42 }
 0x454   : > { %1960 = vmatpush3.msra.mxu0 %v1628_v23  ;;  %1995 = vmatpush3.msra.mxu1 %v1612_v60 }
 0x455   : > { %1961 = vmatprep.subr.mxu0 %v2330_v42  ;;  %1996 = vmatprep.subr.mxu1 %v2330_v42 }
 0x456   : > { %1962 = vmatpush3.msra.mxu0 %v1627_v20  ;;  %1997 = vmatpush3.msra.mxu1 %v1611_v4 }
 0x457   : > { %1963 = vmatprep.subr.mxu0 %v2330_v42  ;;  %1998 = vmatprep.subr.mxu1 %v2330_v42 }
 0x458   : > { %1964 = vmatpush3.msra.mxu0 %v1626_v14  ;;  %1999 = vmatpush3.msra.mxu1 %v1610_v3 }
 0x459   : > { %1965 = vmatprep.subr.mxu0 %v2330_v42  ;;  %2000 = vmatprep.subr.mxu1 %v2330_v42 }
 0x45a   : > { %1966 = vmatpush3.msra.mxu0 %v1625_v8  ;;  %2001 = vmatpush3.msra.mxu1 %v1609_v13 }
 0x45b   : > { %1967 = vmatprep.subr.mxu0 %v2330_v42  ;;  %2002 = vmatprep.subr.mxu1 %v2330_v42 }
 0x45c   : > { %1968 = vmatpush3.msra.mxu0 %v1624_v9  ;;  %2003 = vmatpush3.msra.mxu1 %v1608_v51 }
 0x45d   : > { %1969 = vmatprep.subr.mxu0 %v2330_v42  ;;  %2004 = vmatprep.subr.mxu1 %v2330_v42 }
 0x45e   : > { %1970 = vmatpush3.msra.mxu0 %v1623_v5  ;;  %2005 = vmatpush3.msra.mxu1 %v1607_v7 }
 0x45f   : > { %1971 = vmatprep.subr.mxu0 %v2330_v42  ;;  %2006 = vmatprep.subr.mxu1 %v2330_v42 }
 0x460   : > { %1972 = vmatpush3.msra.mxu0 %v1622_v63  ;;  %2007 = vmatpush3.msra.mxu1 %v1606_v11 }
 0x461   : > { %1973 = vmatprep.subr.mxu0 %v2330_v42  ;;  %2008 = vmatprep.subr.mxu1 %v2330_v42 }
 0x462   : > { %1974 = vmatpush3.msra.mxu0 %v1621_v6  ;;  %2009 = vmatpush3.msra.mxu1 %v1605_v15 }
 0x463   : > { %1975 = vmatprep.subr.mxu0 %v2330_v42  ;;  %2010 = vmatprep.subr.mxu1 %v2330_v42 }
 0x464   : > { %1976 = vmatpush3.msra.mxu0 %v1620_v1  ;;  %2011 = vmatpush3.msra.mxu1 %v1604_v18 }
 0x465   : > { %1977 = vmatprep.subr.mxu0 %v2330_v42  ;;  %2012 = vmatprep.subr.mxu1 %v2330_v42 }
 0x466   : > { %1978 = vmatpush3.msra.mxu0 %v1619_v17  ;;  %1981 = vmatprep.mubr.msk.f32.mxu0 %vm2331_vm1, %v2330_v42 }
 0x467   : > { %1979 = vmatprep.subr.mxu0 %v2330_v42  ;;  %2013 = vmatpush3.msra.mxu1 %v1603_v19 }
 0x468   : > { %1980 = vmatpush3.msra.mxu0 %v1618_v12  ;;  %2014 = vmatprep.subr.mxu1 %v2330_v42 }
 0x469   : > { %1982 = vmatmul.mubr.f32.vlgmr.msra.gmra.mxu0 %v2966_v36  ;;  %2016 = vmatprep.mubr.msk.f32.mxu1 %vm2331_vm1, %v2330_v42  ;;  %v1442_v36 = vrot.slane %v1429_v22, %v3206_v35 }
 0x46a   : > { %2015 = vmatpush3.msra.mxu1 %v1602_v21 }
 0x507   : > { %v1515_v29 = vpop.f32.mrf.mxu0 }
 0x508   : > { %v1516_v30 = vadd.f32 %v1515_v29, %v1434_v26 }
 0x509   : > { %v1517_v31 = vpop.f32.mrf.mxu0  ;;  %v1585_v32 = vpop.f32.mrf.mxu1 }
 0x50a   : > { %v1590_v33 = vmul.f32 0.5, %v1516_v30  ;;  %v1586_v34 = vadd.f32 %v1585_v32, %v1438_v28 }
 0x50b   : > { %v1587_v37 = vpop.f32.mrf.mxu1 }
 0x50c   : > { %2133 = vtanh.f32 %v1590_v33  ;;  %v1588_v38 = vadd.f32 %v1587_v37, %v1442_v36 }
 0x50d   : > { %2135 = vtanh.f32 %v1586_v34 }
 0x50e   : > { %v1595_v39 = vmul.f32 0.5, %v1588_v38 }
 0x510   : > { %2137 = vtanh.f32 %v1595_v39 }
 0x519   : > { %v2134_v40 = vpop.eup %2133 }
 0x51a   : > { %v1592_v41 = vmul.f32 0.5, %v2134_v40  ;;  %v2136_v42 = vpop.eup %2135 }
 0x51c   : > { %v1593_v43 = vadd.f32 0.5, %v1592_v41 }
 0x51d   : > { %v2138_v45 = vpop.eup %2137 }
 0x51e   : > { %v1599_v44 = vmul.f32 %v2136_v42, %v1593_v43  ;;  %v1597_v46 = vmul.f32 0.5, %v2138_v45 }
 0x520   : > { %2139 = vtanh.f32 %v1599_v44  ;;  %v1598_v47 = vadd.f32 0.5, %v1597_v46 }
 0x529   : > { %v1700_v50 = vpop.f32.mrf.mxu0 }
 0x52b   : > { %v1983_v52 = vpop.f32.mrf.mxu0 }
 0x52d   : > { %v2140_v48 = vpop.eup %2139 }
 0x52e   : > { %v1601_v49 = vmul.f32 %v2140_v48, %v1598_v47 }
 0x530   : > { %2017 = vmatmul.mubr.f32.vlgmr.msra.gmra.mxu1 %v1601_v49 }
 0x5f0   : > { %v1770_v53 = vpop.f32.mrf.mxu1 }
 0x5f1   : > { %v1771_v55 = vadd.f32 %v1770_v53, %v1700_v50 }
 0x5f2   : > { %v2018_v56 = vpop.f32.mrf.mxu1 }
 0x5f3   : > { %v1781_v57 = vadd.f32 %v1910_v54, %v1771_v55 }
 0x5f5   : > { %1782 = vst [vmem:[#allocation14] sm:$0xff] %v1781_v57 }
 0x5f6 PF: > { %p2069_p3 = scmp.eq.s32.totalorder %s2389_s10, 1  ;;  %s2332_s23 = smov [#allocation14]  }
 0x5f7   : > { %s1790_s24 = sshll.u32 %s2332_s23, 4  ;;  %s1791_s24 = int_to_ptr.vmem [resolvable:$true] %s1790_s24 }
 0x5f8   : > { %s2271_s18 = scalar_lea.vmem %s1791_s24, 128  ;;  %p2278_p8 = scmp.lt.s32.totalorder %s1791_s24, %s1791_s24 }
 0x5f9   : > { %p2272_p6 = scmp.ne.s32.totalorder %s1791_s24, %s2271_s18  ;;  %p2279_p9 = scmp.lt.s32.totalorder %s2271_s18, %s2271_s18 }
 0x5fb   : > { %p2273_p7 = pnand %p2272_p6, %p2069_p3  ;;  %p2280_p10 = por %p2279_p9, %p2278_p8 }
 0x5fd   : > { %p2274_p1 = pneg %p2273_p7 }
 0x5ff   : > { %p2281_p11 = pnand %p2280_p10, %p2274_p1 }
 0x601   : > { %2284 = shalt.err (!%p2281_p11)
}
 0x602   : > { %2040 = dma.vmem_to_hbm [thread:$0]  (%p2069_p3), %s1791_s24, 128, %s3046_s9, [#allocation7]  }
 0x603   : > { %2312 = dma.done.wait (%p2069_p3), [#allocation7], 128  }
 0x604   : > { %2314 = vsyncadd (%p2069_p3), [#allocation7], 4294967168 }
 0x605 PF: > { %s23_s30 = sadd.s32 1, %s2317_s30  }
 0x606   : > { %p20_p12 = scmp.ge.s32.totalorder %s23_s30, 4  }
 0x608   :  { %22 = sbr.rel (!%p20_p12) target bundleno = 4 (0x4), region = 116 }
 0x60d   :  { %1803 = vsyncpa [#allocation6], 1 }
 0x60e   :  { %1805 = vsyncpa [#allocation6 + $0x1], 1 }
 0x60f   :  { %1806 = vsyncpa [#allocation9], 1 }
 0x610   :  { %1807 = vsyncpa [#allocation12], 1 }
 0x611   :  { %1808 = vsyncpa [#allocation7], 1 }
 0x612   :  { %1810 = vsyncpa [#allocation7 + $0x1], 1 }

</bundles_post_ra>
